<compile_context>
chip_gen: v5e
topology: v5e:2x2
jax: 0.10.0
libtpu: 0.0.40
codegen_flags: <defaults>
</compile_context>

<pallas_src>
import jax
import jax.numpy as jnp
from jax.experimental import pallas as pl
from jax.experimental.pallas import tpu as pltpu

LN_EPS = 1e-5          # nn.LayerNorm default eps
LEAKY_SLOPE = 0.01     # nn.LeakyReLU default negative_slope

# column indices inside the packed (C, 13) f32 slab
_BVO_A, _G1_A, _BE1_A, _B2_A, _G2_A, _BE2_A = 0, 1, 2, 3, 4, 5
_BVO_B, _G1_B, _BE1_B, _B2_B, _G2_B, _BE2_B = 6, 7, 8, 9, 10, 11
_BC = 12
_NUM_C_COLS = 13


# ----------------------------------------------------------------------------
# Fused kernel: per grid step it processes Bt batch elements (lane-concatenated)
#   f2_low  = xbl (f_low , xi_high)      (C, Bt*L_low)
#   f2_high = xbl1(f_high, xi_low)       (C, Bt*L_high)
#   out     = 2 * conv1x1(cat(f2_low, nearest_up(f2_high)))   (C, Bt*L_low)
# All activations are channel-major: (C, tokens-on-lanes).
# ----------------------------------------------------------------------------
def _fused_kernel(fl_ref, fh_ref, sh_ref, sl_ref,
                  wvo_ref, w1_ref, w2_ref, wc_ref,
                  colc_ref, colf_ref, sel_ref, o_ref):
    Bt, C, Ll = fl_ref.shape
    Lh = fh_ref.shape[2]

    colc = colc_ref[...]                        # (C, 13) f32
    colf = colf_ref[...]                        # (dff, 2) f32

    def col_c(i):
        return colc[:, i:i + 1]                 # (C, 1)

    def col_f(i):
        return colf[:, i:i + 1]                 # (dff, 1)

    def layer_norm(x, g, b):
        # LayerNorm over the channel (sublane) axis; single-pass statistics.
        mu = jnp.mean(x, axis=0, keepdims=True)
        ex2 = jnp.mean(x * x, axis=0, keepdims=True)
        var = ex2 - mu * mu
        return (x - mu) * jax.lax.rsqrt(var + LN_EPS) * g + b

    def lane_cat(ref, L):
        # (Bt, C, L) -> (C, Bt*L) lane concatenation (tiny VMEM copies).
        return jnp.concatenate([ref[b] for b in range(Bt)], axis=-1)

    def fusion_cat(wvo, bvo, s_ref, L):
        # kv-seq-len == 1  =>  softmax weight == 1, attention output is
        # out_proj(value_proj(src)) for every query (pre-folded wvo/bvo).
        cols = []
        for b in range(Bt):
            s_row = s_ref[b]                                          # (1, C)
            f = jnp.sum(wvo * s_row, axis=-1, keepdims=True) + bvo    # (C, 1)
            cols.append(jnp.broadcast_to(f, (C, L)))
        return jnp.concatenate(cols, axis=-1)                         # (C, Bt*L)

    def xbl_block(x, fusion, g1, be1, w1, b1, w2, b2, g2, be2):
        x = x + fusion                                                # + dropout1(.) with p=0
        x = layer_norm(x, g1, be1)                                    # norm1
        h = jnp.dot(w1, x.astype(jnp.bfloat16),
                    preferred_element_type=jnp.float32) + b1          # linear1 -> (dff, tok)
        h = jnp.where(h >= 0, h, LEAKY_SLOPE * h)                     # LeakyReLU
        y = jnp.dot(w2, h.astype(jnp.bfloat16),
                    preferred_element_type=jnp.float32) + b2          # linear2 -> (C, tok)
        return layer_norm(x + y, g2, be2)                             # norm2

    # low path: xbl(f_low, xi_high)
    xA = xbl_block(lane_cat(fl_ref, Ll),
                   fusion_cat(wvo_ref[0], col_c(_BVO_A), sh_ref, Ll),
                   col_c(_G1_A), col_c(_BE1_A), w1_ref[0], col_f(0),
                   w2_ref[0], col_c(_B2_A), col_c(_G2_A), col_c(_BE2_A))
    # high path: xbl1(f_high, xi_low)
    xB = xbl_block(lane_cat(fh_ref, Lh),
                   fusion_cat(wvo_ref[1], col_c(_BVO_B), sl_ref, Lh),
                   col_c(_G1_B), col_c(_BE1_B), w1_ref[1], col_f(1),
                   w2_ref[1], col_c(_B2_B), col_c(_G2_B), col_c(_BE2_B))

    # Nearest-neighbour upsample as a block-diagonal 0/1 selection matmul,
    # applied to the bf16 activations BEFORE the conv: selection of bf16 values
    # is exact, so no extra rounding is introduced on the output path.
    xB_up = jnp.dot(xB.astype(jnp.bfloat16), sel_ref[...],
                    preferred_element_type=jnp.float32)               # (C, Bt*Ll)

    # out = (2*Wc_low) @ xA + (2*Wc_high) @ up(xB) + 2*bc
    out = (jnp.dot(wc_ref[0], xA.astype(jnp.bfloat16),
                   preferred_element_type=jnp.float32)
           + jnp.dot(wc_ref[1], xB_up.astype(jnp.bfloat16),
                     preferred_element_type=jnp.float32)
           + col_c(_BC))                                              # (C, Bt*Ll)

    out = out.astype(o_ref.dtype)
    for b in range(Bt):
        o_ref[b] = out[:, b * Ll:(b + 1) * Ll]


# ----------------------------------------------------------------------------
# Wrapper: only free reshapes + tiny constant-folded setup around one pallas_call.
# ----------------------------------------------------------------------------
def xboundlearnerv2_forward(f_low, f_high, xi_low, xi_high, params,
                            *, batch_per_step=None, out_dtype=jnp.bfloat16):
    B, C, Hl, Wl = f_low.shape
    _, _, Hh, Wh = f_high.shape
    Ll, Lh = Hl * Wl, Hh * Wh
    dff = params['w1'].shape[1]

    # S=1 collapse of the cross attention requires kv-seq-len exactly 1.
    assert xi_low.shape[1] == 1 and xi_high.shape[1] == 1

    if batch_per_step is None:
        # One grid step, whole batch lane-concatenated (best on single-TC
        # v5e/v6e; also makes the high path lane-dense for B>=2).
        # TODO(synk): on v7x with B > 2, pass batch_per_step=ceil(B/2) to keep a
        # 2-way "parallel" grid for the megacore.
        batch_per_step = B
    assert B % batch_per_step == 0
    Bt = batch_per_step
    n_steps = B // Bt

    fl = f_low.reshape(B, C, Ll)       # NCHW is already channel-major tokens
    fh = f_high.reshape(B, C, Lh)

    # Nearest-neighbour selection (PyTorch: src = floor(dst * in / out)),
    # block-diagonal over the Bt lane-concatenated batch elements.
    ri = (jnp.arange(Hl) * Hh) // Hl
    ci = (jnp.arange(Wl) * Wh) // Wl
    src = (ri[:, None] * Wh + ci[None, :]).reshape(Ll)                          # (Ll,)
    sel1 = (jnp.arange(Lh)[:, None] == src[None, :]).astype(jnp.float32)        # (Lh, Ll)
    sel = jnp.kron(jnp.eye(Bt, dtype=jnp.float32), sel1).astype(jnp.bfloat16)   # (Bt*Lh, Bt*Ll)

    weights = [params['wvo'], params['w1'], params['w2'], params['wc'],
               params['colc'], params['colf'], sel]

    def batch_spec(shape):
        rest = tuple(shape[1:])
        nz = len(rest)
        return pl.BlockSpec((Bt,) + rest, lambda i, _nz=nz: (i,) + (0,) * _nz)

    def const_spec(shape):
        nd = len(shape)
        return pl.BlockSpec(tuple(shape), lambda i, _nd=nd: (0,) * _nd)

    in_specs = ([batch_spec(fl.shape), batch_spec(fh.shape),
                 batch_spec(xi_high.shape), batch_spec(xi_low.shape)]
                + [const_spec(w.shape) for w in weights])

    # Advisory cost estimate so the XLA scheduler can overlap this tiny call.
    ff_flops = 4 * dff * C * B * (Ll + Lh)                 # linear1 + linear2, both paths
    conv_flops = 4 * C * C * B * Ll                        # both conv halves on (C, B*Ll)
    sel_flops = n_steps * 2 * C * (Bt * Lh) * (Bt * Ll)    # upsample selection matmul
    fuse_flops = 4 * B * C * C                             # attention-collapse mat-vecs
    operands = [fl, fh, xi_high, xi_low] + weights
    bytes_accessed = int(sum(int(x.size) * x.dtype.itemsize for x in operands)
                         + B * C * Ll * jnp.dtype(out_dtype).itemsize)
    cost = pl.CostEstimate(flops=int(ff_flops + conv_flops + sel_flops + fuse_flops),
                           transcendentals=int(2 * B * (Ll + Lh)),   # rsqrt per LN token
                           bytes_accessed=bytes_accessed)

    out = pl.pallas_call(
        _fused_kernel,
        out_shape=jax.ShapeDtypeStruct((B, C, Ll), out_dtype),
        grid=(n_steps,),
        in_specs=in_specs,
        out_specs=pl.BlockSpec((Bt, C, Ll), lambda i: (i, 0, 0)),
        compiler_params=pltpu.CompilerParams(
            dimension_semantics=("parallel",)),
        cost_estimate=cost,
    )(fl, fh, xi_high, xi_low, *weights)

    return out.reshape(B, C, Hl, Wl)


# ----------------------------------------------------------------------------
# Parameters.  Raw params follow PyTorch layout ((out, in) Linear weights);
# fold_params produces the packed operands the kernel consumes.
# ----------------------------------------------------------------------------
def init_raw_xbl(key, C, dff):
    ks = jax.random.split(key, 8)
    sc = 0.05
    return {
        'wv': jax.random.normal(ks[0], (C, C), jnp.float32) * sc,     # value proj
        'bv': jax.random.normal(ks[1], (C,), jnp.float32) * sc,
        'wo': jax.random.normal(ks[2], (C, C), jnp.float32) * sc,     # out proj
        'bo': jax.random.normal(ks[3], (C,), jnp.float32) * sc,
        'g1': jnp.ones((C,), jnp.float32), 'be1': jnp.zeros((C,), jnp.float32),
        'w1': jax.random.normal(ks[4], (dff, C), jnp.float32) * sc,   # linear1
        'b1': jax.random.normal(ks[5], (dff,), jnp.float32) * sc,
        'w2': jax.random.normal(ks[6], (C, dff), jnp.float32) * sc,   # linear2
        'b2': jax.random.normal(ks[7], (C,), jnp.float32) * sc,
        'g2': jnp.ones((C,), jnp.float32), 'be2': jnp.zeros((C,), jnp.float32),
    }


def init_raw_params(key, C, dff):
    k0, k1, k2, k3 = jax.random.split(key, 4)
    return {
        'xbl': init_raw_xbl(k0, C, dff),
        'xbl1': init_raw_xbl(k1, C, dff),
        'conv_w': jax.random.normal(k2, (C, 2 * C), jnp.float32) * 0.05,  # 1x1 conv (out, in)
        'conv_b': jax.random.normal(k3, (C,), jnp.float32) * 0.05,
    }


def fold_params(raw, C):
    A, Bp = raw['xbl'], raw['xbl1']

    def fold_attn(rp):
        return rp['wo'] @ rp['wv'], rp['wo'] @ rp['bv'] + rp['bo']

    wvoA, bvoA = fold_attn(A)
    wvoB, bvoB = fold_attn(Bp)

    # packed (C, 13) column slab; order must match the _* index constants
    colc = jnp.stack(
        [bvoA, A['g1'], A['be1'], A['b2'], A['g2'], A['be2'],
         bvoB, Bp['g1'], Bp['be1'], Bp['b2'], Bp['g2'], Bp['be2'],
         2.0 * raw['conv_b']], axis=1).astype(jnp.float32)            # (C, 13)
    colf = jnp.stack([A['b1'], Bp['b1']], axis=1).astype(jnp.float32)  # (dff, 2)

    return {
        'wvo': jnp.stack([wvoA, wvoB]).astype(jnp.float32),            # (2, C, C)
        'w1': jnp.stack([A['w1'], Bp['w1']]).astype(jnp.bfloat16),     # (2, dff, C)
        'w2': jnp.stack([A['w2'], Bp['w2']]).astype(jnp.bfloat16),     # (2, C, dff)
        # factor 2 from `return f2 + f2` folded into the conv weights/bias
        'wc': jnp.stack([2.0 * raw['conv_w'][:, :C],
                         2.0 * raw['conv_w'][:, C:]]).astype(jnp.bfloat16),  # (2, C, C)
        'colc': colc,
        'colf': colf,
    }


# ----------------------------------------------------------------------------
# Pure-JAX f32 reference (mirrors the PyTorch module) for a sanity check.
# ----------------------------------------------------------------------------
def _ln_ref(x, g, b):
    mu = x.mean(-1, keepdims=True)
    var = ((x - mu) ** 2).mean(-1, keepdims=True)
    return (x - mu) / jnp.sqrt(var + LN_EPS) * g + b


def _xbl_ref(x_tok, s_vec, rp):
    fusion = rp['wo'] @ (rp['wv'] @ s_vec + rp['bv']) + rp['bo']       # (C,)
    x = x_tok + fusion[None, :]
    x = _ln_ref(x, rp['g1'], rp['be1'])
    h = x @ rp['w1'].T + rp['b1']
    h = jnp.where(h >= 0, h, LEAKY_SLOPE * h)
    x = x + h @ rp['w2'].T + rp['b2']
    return _ln_ref(x, rp['g2'], rp['be2'])


def reference_forward(f_low, f_high, xi_low, xi_high, raw):
    B, C, Hl, Wl = f_low.shape
    _, _, Hh, Wh = f_high.shape
    tl = f_low.reshape(B, C, Hl * Wl).transpose(0, 2, 1)               # (B, L, C)
    th = f_high.reshape(B, C, Hh * Wh).transpose(0, 2, 1)
    f2l = jax.vmap(_xbl_ref, in_axes=(0, 0, None))(tl, xi_high[:, 0, :], raw['xbl'])
    f2h = jax.vmap(_xbl_ref, in_axes=(0, 0, None))(th, xi_low[:, 0, :], raw['xbl1'])
    f2l = f2l.transpose(0, 2, 1).reshape(B, C, Hl, Wl)
    f2h = f2h.transpose(0, 2, 1).reshape(B, C, Hh, Wh)
    ri = (jnp.arange(Hl) * Hh) // Hl
    ci = (jnp.arange(Wl) * Wh) // Wl
    f2h = f2h[:, :, ri][:, :, :, ci]                                   # nearest upsample
    cat = jnp.concatenate([f2l, f2h], axis=1)                          # (B, 2C, Hl, Wl)
    y = (jnp.einsum('oi,bihw->bohw', raw['conv_w'], cat)
         + raw['conv_b'][None, :, None, None])
    return y + y


if __name__ == "__main__":
    # d_model=32, nhead=4, dim_feedforward=64; low 16x16, high 8x8 feature maps.
    B, C, dff = 2, 32, 64
    Hl = Wl = 16
    Hh = Wh = 8

    key = jax.random.PRNGKey(0)
    k_par, k1, k2, k3, k4 = jax.random.split(key, 5)

    raw = init_raw_params(k_par, C, dff)
    params = fold_params(raw, C)

    f_low = jax.random.normal(k1, (B, C, Hl, Wl), jnp.float32)
    f_high = jax.random.normal(k2, (B, C, Hh, Wh), jnp.float32)
    xi_low = jax.random.normal(k3, (B, 1, C), jnp.float32)
    xi_high = jax.random.normal(k4, (B, 1, C), jnp.float32)

    fwd = jax.jit(xboundlearnerv2_forward)
    out = fwd(f_low, f_high, xi_low, xi_high, params)
    jax.block_until_ready(out)

    assert out.shape == (B, C, Hl, Wl), out.shape
    out_f32 = out.astype(jnp.float32)
    assert bool(jnp.all(jnp.isfinite(out_f32)))

    # Loose-tolerance check against the f32 reference (kernel uses bf16 MXU
    # operands and a bf16 output store).
    ref = reference_forward(f_low, f_high, xi_low, xi_high, raw)
    err = float(jnp.max(jnp.abs(out_f32 - ref)))
    assert err < 1.5e-1, f"max abs err {err}"

    print("KERNEL_OK")
</pallas_src>

<mosaic_0001>
module attributes {stable_mosaic.version = 11 : i64} {
  func.func @_fused_kernel(%arg0: i32, %arg1: memref<2x32x256xf32, #tpu.memory_space<vmem>>, %arg2: memref<2x32x64xf32, #tpu.memory_space<vmem>>, %arg3: memref<2x1x32xf32, #tpu.memory_space<vmem>>, %arg4: memref<2x1x32xf32, #tpu.memory_space<vmem>>, %arg5: memref<2x32x32xf32, #tpu.memory_space<vmem>>, %arg6: memref<2x64x32xbf16, #tpu.memory_space<vmem>>, %arg7: memref<2x32x64xbf16, #tpu.memory_space<vmem>>, %arg8: memref<2x32x32xbf16, #tpu.memory_space<vmem>>, %arg9: memref<32x13xf32, #tpu.memory_space<vmem>>, %arg10: memref<64x2xf32, #tpu.memory_space<vmem>>, %arg11: memref<128x512xbf16, #tpu.memory_space<vmem>>, %arg12: memref<2x32x256xbf16, #tpu.memory_space<vmem>>) attributes {dimension_semantics = [#tpu.dimension_semantics<parallel>], iteration_bounds = array<i64: 1>, scalar_prefetch = 0 : i64, scratch_operands = 0 : i64, tpu.core_type = #tpu.core_type<tc>, window_params = [{transform_indices = @transform_0, window_bounds = array<i64: 2, 32, 256>}, {transform_indices = @transform_1, window_bounds = array<i64: 2, 32, 64>}, {transform_indices = @transform_2, window_bounds = array<i64: 2, 1, 32>}, {transform_indices = @transform_3, window_bounds = array<i64: 2, 1, 32>}, {pipeline_mode = #tpu.pipeline_mode<synchronous>, transform_indices = @transform_4, window_bounds = array<i64: 2, 32, 32>}, {pipeline_mode = #tpu.pipeline_mode<synchronous>, transform_indices = @transform_5, window_bounds = array<i64: 2, 64, 32>}, {pipeline_mode = #tpu.pipeline_mode<synchronous>, transform_indices = @transform_6, window_bounds = array<i64: 2, 32, 64>}, {pipeline_mode = #tpu.pipeline_mode<synchronous>, transform_indices = @transform_7, window_bounds = array<i64: 2, 32, 32>}, {pipeline_mode = #tpu.pipeline_mode<synchronous>, transform_indices = @transform_8, window_bounds = array<i64: 32, 13>}, {pipeline_mode = #tpu.pipeline_mode<synchronous>, transform_indices = @transform_9, window_bounds = array<i64: 64, 2>}, {pipeline_mode = #tpu.pipeline_mode<synchronous>, transform_indices = @transform_10, window_bounds = array<i64: 128, 512>}, {transform_indices = @transform_11, window_bounds = array<i64: 2, 32, 256>}]} {
    %c0 = arith.constant 0 : index
    %c0_0 = arith.constant 0 : index
    %0 = vector.load %arg9[%c0, %c0_0] : memref<32x13xf32, #tpu.memory_space<vmem>>, vector<32x13xf32>
    %c0_1 = arith.constant 0 : index
    %c0_2 = arith.constant 0 : index
    %1 = vector.load %arg10[%c0_1, %c0_2] : memref<64x2xf32, #tpu.memory_space<vmem>>, vector<64x2xf32>
    %c0_3 = arith.constant 0 : index
    %c0_4 = arith.constant 0 : index
    %c0_5 = arith.constant 0 : index
    %2 = vector.load %arg1[%c0_3, %c0_4, %c0_5] : memref<2x32x256xf32, #tpu.memory_space<vmem>>, vector<1x32x256xf32>
    %3 = vector.shape_cast %2 : vector<1x32x256xf32> to vector<32x256xf32>
    %c1 = arith.constant 1 : index
    %c0_6 = arith.constant 0 : index
    %c0_7 = arith.constant 0 : index
    %4 = vector.load %arg1[%c1, %c0_6, %c0_7] : memref<2x32x256xf32, #tpu.memory_space<vmem>>, vector<1x32x256xf32>
    %5 = vector.shape_cast %4 : vector<1x32x256xf32> to vector<32x256xf32>
    %6 = tpu.concatenate %3, %5 in 1 : vector<32x256xf32>, vector<32x256xf32> -> vector<32x512xf32>
    %c0_8 = arith.constant 0 : index
    %c0_9 = arith.constant 0 : index
    %c0_10 = arith.constant 0 : index
    %7 = vector.load %arg5[%c0_8, %c0_9, %c0_10] : memref<2x32x32xf32, #tpu.memory_space<vmem>>, vector<1x32x32xf32>
    %8 = vector.shape_cast %7 : vector<1x32x32xf32> to vector<32x32xf32>
    %9 = vector.extract_strided_slice %0 {offsets = [0, 0], sizes = [32, 1], strides = [1, 1]} : vector<32x13xf32> to vector<32x1xf32>
    %c0_11 = arith.constant 0 : index
    %c0_12 = arith.constant 0 : index
    %c0_13 = arith.constant 0 : index
    %10 = vector.load %arg3[%c0_11, %c0_12, %c0_13] : memref<2x1x32xf32, #tpu.memory_space<vmem>>, vector<1x1x32xf32>
    %11 = vector.shape_cast %10 : vector<1x1x32xf32> to vector<1x32xf32>
    %12 = vector.broadcast %11 : vector<1x32xf32> to vector<32x32xf32>
    %13 = arith.mulf %8, %12 : vector<32x32xf32>
    %cst = arith.constant dense<0.000000e+00> : vector<32xf32>
    %14 = vector.multi_reduction <add>, %13, %cst [1] : vector<32x32xf32> to vector<32xf32>
    %15 = vector.shape_cast %14 : vector<32xf32> to vector<32x1xf32>
    %16 = arith.addf %15, %9 : vector<32x1xf32>
    %17 = vector.shape_cast %16 : vector<32x1xf32> to vector<32x1xf32>
    %18 = vector.broadcast %17 : vector<32x1xf32> to vector<32x256xf32>
    %c1_14 = arith.constant 1 : index
    %c0_15 = arith.constant 0 : index
    %c0_16 = arith.constant 0 : index
    %19 = vector.load %arg3[%c1_14, %c0_15, %c0_16] : memref<2x1x32xf32, #tpu.memory_space<vmem>>, vector<1x1x32xf32>
    %20 = vector.shape_cast %19 : vector<1x1x32xf32> to vector<1x32xf32>
    %21 = vector.broadcast %20 : vector<1x32xf32> to vector<32x32xf32>
    %22 = arith.mulf %8, %21 : vector<32x32xf32>
    %cst_17 = arith.constant dense<0.000000e+00> : vector<32xf32>
    %23 = vector.multi_reduction <add>, %22, %cst_17 [1] : vector<32x32xf32> to vector<32xf32>
    %24 = vector.shape_cast %23 : vector<32xf32> to vector<32x1xf32>
    %25 = arith.addf %24, %9 : vector<32x1xf32>
    %26 = vector.shape_cast %25 : vector<32x1xf32> to vector<32x1xf32>
    %27 = vector.broadcast %26 : vector<32x1xf32> to vector<32x256xf32>
    %28 = tpu.concatenate %18, %27 in 1 : vector<32x256xf32>, vector<32x256xf32> -> vector<32x512xf32>
    %29 = vector.extract_strided_slice %0 {offsets = [0, 1], sizes = [32, 1], strides = [1, 1]} : vector<32x13xf32> to vector<32x1xf32>
    %30 = vector.extract_strided_slice %0 {offsets = [0, 2], sizes = [32, 1], strides = [1, 1]} : vector<32x13xf32> to vector<32x1xf32>
    %c0_18 = arith.constant 0 : index
    %c0_19 = arith.constant 0 : index
    %c0_20 = arith.constant 0 : index
    %31 = vector.load %arg6[%c0_18, %c0_19, %c0_20] : memref<2x64x32xbf16, #tpu.memory_space<vmem>>, vector<1x64x32xbf16>
    %32 = vector.shape_cast %31 : vector<1x64x32xbf16> to vector<64x32xbf16>
    %33 = vector.extract_strided_slice %1 {offsets = [0, 0], sizes = [64, 1], strides = [1, 1]} : vector<64x2xf32> to vector<64x1xf32>
    %c0_21 = arith.constant 0 : index
    %c0_22 = arith.constant 0 : index
    %c0_23 = arith.constant 0 : index
    %34 = vector.load %arg7[%c0_21, %c0_22, %c0_23] : memref<2x32x64xbf16, #tpu.memory_space<vmem>>, vector<1x32x64xbf16>
    %35 = vector.shape_cast %34 : vector<1x32x64xbf16> to vector<32x64xbf16>
    %36 = vector.extract_strided_slice %0 {offsets = [0, 3], sizes = [32, 1], strides = [1, 1]} : vector<32x13xf32> to vector<32x1xf32>
    %37 = vector.extract_strided_slice %0 {offsets = [0, 4], sizes = [32, 1], strides = [1, 1]} : vector<32x13xf32> to vector<32x1xf32>
    %38 = vector.extract_strided_slice %0 {offsets = [0, 5], sizes = [32, 1], strides = [1, 1]} : vector<32x13xf32> to vector<32x1xf32>
    %39 = arith.addf %6, %28 : vector<32x512xf32>
    %cst_24 = arith.constant dense<0.000000e+00> : vector<512xf32>
    %40 = vector.multi_reduction <add>, %39, %cst_24 [0] : vector<32x512xf32> to vector<512xf32>
    %41 = vector.shape_cast %40 : vector<512xf32> to vector<1x512xf32>
    %cst_25 = arith.constant 3.200000e+01 : f32
    %42 = vector.broadcast %cst_25 : f32 to vector<1x512xf32>
    %43 = arith.divf %41, %42 : vector<1x512xf32>
    %44 = arith.mulf %39, %39 : vector<32x512xf32>
    %cst_26 = arith.constant dense<0.000000e+00> : vector<512xf32>
    %45 = vector.multi_reduction <add>, %44, %cst_26 [0] : vector<32x512xf32> to vector<512xf32>
    %46 = vector.shape_cast %45 : vector<512xf32> to vector<1x512xf32>
    %cst_27 = arith.constant 3.200000e+01 : f32
    %47 = vector.broadcast %cst_27 : f32 to vector<1x512xf32>
    %48 = arith.divf %46, %47 : vector<1x512xf32>
    %49 = arith.mulf %43, %43 : vector<1x512xf32>
    %50 = arith.subf %48, %49 : vector<1x512xf32>
    %51 = vector.broadcast %43 : vector<1x512xf32> to vector<32x512xf32>
    %52 = arith.subf %39, %51 : vector<32x512xf32>
    %cst_28 = arith.constant 9.99999974E-6 : f32
    %53 = vector.broadcast %cst_28 : f32 to vector<1x512xf32>
    %54 = arith.addf %50, %53 : vector<1x512xf32>
    %55 = math.rsqrt %54 : vector<1x512xf32>
    %56 = vector.broadcast %55 : vector<1x512xf32> to vector<32x512xf32>
    %57 = arith.mulf %52, %56 : vector<32x512xf32>
    %58 = vector.broadcast %29 : vector<32x1xf32> to vector<32x512xf32>
    %59 = arith.mulf %57, %58 : vector<32x512xf32>
    %60 = vector.broadcast %30 : vector<32x1xf32> to vector<32x512xf32>
    %61 = arith.addf %59, %60 : vector<32x512xf32>
    %62 = arith.truncf %61 : vector<32x512xf32> to vector<32x512xbf16>
    %cst_29 = arith.constant dense<0.000000e+00> : vector<64x512xf32>
    %63 = tpu.matmul %32, %62, %cst_29 {dimension_numbers = #tpu.dot_dimension_numbers<[1], [0], [0], [1], [0, 0, 1, 1], [], []>} : vector<64x32xbf16>, vector<32x512xbf16>, vector<64x512xf32> -> vector<64x512xf32>
    %64 = vector.broadcast %33 : vector<64x1xf32> to vector<64x512xf32>
    %65 = arith.addf %63, %64 : vector<64x512xf32>
    %cst_30 = arith.constant 0.000000e+00 : f32
    %66 = vector.broadcast %cst_30 : f32 to vector<64x512xf32>
    %67 = arith.cmpf oge, %65, %66 : vector<64x512xf32>
    %cst_31 = arith.constant 0.00999999977 : f32
    %68 = vector.broadcast %cst_31 : f32 to vector<64x512xf32>
    %69 = arith.mulf %68, %65 : vector<64x512xf32>
    %70 = arith.select %67, %65, %69 : vector<64x512xi1>, vector<64x512xf32>
    %71 = arith.truncf %70 : vector<64x512xf32> to vector<64x512xbf16>
    %cst_32 = arith.constant dense<0.000000e+00> : vector<32x512xf32>
    %72 = tpu.matmul %35, %71, %cst_32 {dimension_numbers = #tpu.dot_dimension_numbers<[1], [0], [0], [1], [0, 0, 1, 1], [], []>} : vector<32x64xbf16>, vector<64x512xbf16>, vector<32x512xf32> -> vector<32x512xf32>
    %73 = vector.broadcast %36 : vector<32x1xf32> to vector<32x512xf32>
    %74 = arith.addf %72, %73 : vector<32x512xf32>
    %75 = arith.addf %61, %74 : vector<32x512xf32>
    %cst_33 = arith.constant dense<0.000000e+00> : vector<512xf32>
    %76 = vector.multi_reduction <add>, %75, %cst_33 [0] : vector<32x512xf32> to vector<512xf32>
    %77 = vector.shape_cast %76 : vector<512xf32> to vector<1x512xf32>
    %cst_34 = arith.constant 3.200000e+01 : f32
    %78 = vector.broadcast %cst_34 : f32 to vector<1x512xf32>
    %79 = arith.divf %77, %78 : vector<1x512xf32>
    %80 = arith.mulf %75, %75 : vector<32x512xf32>
    %cst_35 = arith.constant dense<0.000000e+00> : vector<512xf32>
    %81 = vector.multi_reduction <add>, %80, %cst_35 [0] : vector<32x512xf32> to vector<512xf32>
    %82 = vector.shape_cast %81 : vector<512xf32> to vector<1x512xf32>
    %cst_36 = arith.constant 3.200000e+01 : f32
    %83 = vector.broadcast %cst_36 : f32 to vector<1x512xf32>
    %84 = arith.divf %82, %83 : vector<1x512xf32>
    %85 = arith.mulf %79, %79 : vector<1x512xf32>
    %86 = arith.subf %84, %85 : vector<1x512xf32>
    %87 = vector.broadcast %79 : vector<1x512xf32> to vector<32x512xf32>
    %88 = arith.subf %75, %87 : vector<32x512xf32>
    %cst_37 = arith.constant 9.99999974E-6 : f32
    %89 = vector.broadcast %cst_37 : f32 to vector<1x512xf32>
    %90 = arith.addf %86, %89 : vector<1x512xf32>
    %91 = math.rsqrt %90 : vector<1x512xf32>
    %92 = vector.broadcast %91 : vector<1x512xf32> to vector<32x512xf32>
    %93 = arith.mulf %88, %92 : vector<32x512xf32>
    %94 = vector.broadcast %37 : vector<32x1xf32> to vector<32x512xf32>
    %95 = arith.mulf %93, %94 : vector<32x512xf32>
    %96 = vector.broadcast %38 : vector<32x1xf32> to vector<32x512xf32>
    %97 = arith.addf %95, %96 : vector<32x512xf32>
    %c0_38 = arith.constant 0 : index
    %c0_39 = arith.constant 0 : index
    %c0_40 = arith.constant 0 : index
    %98 = vector.load %arg2[%c0_38, %c0_39, %c0_40] : memref<2x32x64xf32, #tpu.memory_space<vmem>>, vector<1x32x64xf32>
    %99 = vector.shape_cast %98 : vector<1x32x64xf32> to vector<32x64xf32>
    %c1_41 = arith.constant 1 : index
    %c0_42 = arith.constant 0 : index
    %c0_43 = arith.constant 0 : index
    %100 = vector.load %arg2[%c1_41, %c0_42, %c0_43] : memref<2x32x64xf32, #tpu.memory_space<vmem>>, vector<1x32x64xf32>
    %101 = vector.shape_cast %100 : vector<1x32x64xf32> to vector<32x64xf32>
    %102 = tpu.concatenate %99, %101 in 1 : vector<32x64xf32>, vector<32x64xf32> -> vector<32x128xf32>
    %c1_44 = arith.constant 1 : index
    %c0_45 = arith.constant 0 : index
    %c0_46 = arith.constant 0 : index
    %103 = vector.load %arg5[%c1_44, %c0_45, %c0_46] : memref<2x32x32xf32, #tpu.memory_space<vmem>>, vector<1x32x32xf32>
    %104 = vector.shape_cast %103 : vector<1x32x32xf32> to vector<32x32xf32>
    %105 = vector.extract_strided_slice %0 {offsets = [0, 6], sizes = [32, 1], strides = [1, 1]} : vector<32x13xf32> to vector<32x1xf32>
    %c0_47 = arith.constant 0 : index
    %c0_48 = arith.constant 0 : index
    %c0_49 = arith.constant 0 : index
    %106 = vector.load %arg4[%c0_47, %c0_48, %c0_49] : memref<2x1x32xf32, #tpu.memory_space<vmem>>, vector<1x1x32xf32>
    %107 = vector.shape_cast %106 : vector<1x1x32xf32> to vector<1x32xf32>
    %108 = vector.broadcast %107 : vector<1x32xf32> to vector<32x32xf32>
    %109 = arith.mulf %104, %108 : vector<32x32xf32>
    %cst_50 = arith.constant dense<0.000000e+00> : vector<32xf32>
    %110 = vector.multi_reduction <add>, %109, %cst_50 [1] : vector<32x32xf32> to vector<32xf32>
    %111 = vector.shape_cast %110 : vector<32xf32> to vector<32x1xf32>
    %112 = arith.addf %111, %105 : vector<32x1xf32>
    %113 = vector.shape_cast %112 : vector<32x1xf32> to vector<32x1xf32>
    %114 = vector.broadcast %113 : vector<32x1xf32> to vector<32x64xf32>
    %c1_51 = arith.constant 1 : index
    %c0_52 = arith.constant 0 : index
    %c0_53 = arith.constant 0 : index
    %115 = vector.load %arg4[%c1_51, %c0_52, %c0_53] : memref<2x1x32xf32, #tpu.memory_space<vmem>>, vector<1x1x32xf32>
    %116 = vector.shape_cast %115 : vector<1x1x32xf32> to vector<1x32xf32>
    %117 = vector.broadcast %116 : vector<1x32xf32> to vector<32x32xf32>
    %118 = arith.mulf %104, %117 : vector<32x32xf32>
    %cst_54 = arith.constant dense<0.000000e+00> : vector<32xf32>
    %119 = vector.multi_reduction <add>, %118, %cst_54 [1] : vector<32x32xf32> to vector<32xf32>
    %120 = vector.shape_cast %119 : vector<32xf32> to vector<32x1xf32>
    %121 = arith.addf %120, %105 : vector<32x1xf32>
    %122 = vector.shape_cast %121 : vector<32x1xf32> to vector<32x1xf32>
    %123 = vector.broadcast %122 : vector<32x1xf32> to vector<32x64xf32>
    %124 = tpu.concatenate %114, %123 in 1 : vector<32x64xf32>, vector<32x64xf32> -> vector<32x128xf32>
    %125 = vector.extract_strided_slice %0 {offsets = [0, 7], sizes = [32, 1], strides = [1, 1]} : vector<32x13xf32> to vector<32x1xf32>
    %126 = vector.extract_strided_slice %0 {offsets = [0, 8], sizes = [32, 1], strides = [1, 1]} : vector<32x13xf32> to vector<32x1xf32>
    %c1_55 = arith.constant 1 : index
    %c0_56 = arith.constant 0 : index
    %c0_57 = arith.constant 0 : index
    %127 = vector.load %arg6[%c1_55, %c0_56, %c0_57] : memref<2x64x32xbf16, #tpu.memory_space<vmem>>, vector<1x64x32xbf16>
    %128 = vector.shape_cast %127 : vector<1x64x32xbf16> to vector<64x32xbf16>
    %129 = vector.extract_strided_slice %1 {offsets = [0, 1], sizes = [64, 1], strides = [1, 1]} : vector<64x2xf32> to vector<64x1xf32>
    %c1_58 = arith.constant 1 : index
    %c0_59 = arith.constant 0 : index
    %c0_60 = arith.constant 0 : index
    %130 = vector.load %arg7[%c1_58, %c0_59, %c0_60] : memref<2x32x64xbf16, #tpu.memory_space<vmem>>, vector<1x32x64xbf16>
    %131 = vector.shape_cast %130 : vector<1x32x64xbf16> to vector<32x64xbf16>
    %132 = vector.extract_strided_slice %0 {offsets = [0, 9], sizes = [32, 1], strides = [1, 1]} : vector<32x13xf32> to vector<32x1xf32>
    %133 = vector.extract_strided_slice %0 {offsets = [0, 10], sizes = [32, 1], strides = [1, 1]} : vector<32x13xf32> to vector<32x1xf32>
    %134 = vector.extract_strided_slice %0 {offsets = [0, 11], sizes = [32, 1], strides = [1, 1]} : vector<32x13xf32> to vector<32x1xf32>
    %135 = arith.addf %102, %124 : vector<32x128xf32>
    %cst_61 = arith.constant dense<0.000000e+00> : vector<128xf32>
    %136 = vector.multi_reduction <add>, %135, %cst_61 [0] : vector<32x128xf32> to vector<128xf32>
    %137 = vector.shape_cast %136 : vector<128xf32> to vector<1x128xf32>
    %cst_62 = arith.constant 3.200000e+01 : f32
    %138 = vector.broadcast %cst_62 : f32 to vector<1x128xf32>
    %139 = arith.divf %137, %138 : vector<1x128xf32>
    %140 = arith.mulf %135, %135 : vector<32x128xf32>
    %cst_63 = arith.constant dense<0.000000e+00> : vector<128xf32>
    %141 = vector.multi_reduction <add>, %140, %cst_63 [0] : vector<32x128xf32> to vector<128xf32>
    %142 = vector.shape_cast %141 : vector<128xf32> to vector<1x128xf32>
    %cst_64 = arith.constant 3.200000e+01 : f32
    %143 = vector.broadcast %cst_64 : f32 to vector<1x128xf32>
    %144 = arith.divf %142, %143 : vector<1x128xf32>
    %145 = arith.mulf %139, %139 : vector<1x128xf32>
    %146 = arith.subf %144, %145 : vector<1x128xf32>
    %147 = vector.broadcast %139 : vector<1x128xf32> to vector<32x128xf32>
    %148 = arith.subf %135, %147 : vector<32x128xf32>
    %cst_65 = arith.constant 9.99999974E-6 : f32
    %149 = vector.broadcast %cst_65 : f32 to vector<1x128xf32>
    %150 = arith.addf %146, %149 : vector<1x128xf32>
    %151 = math.rsqrt %150 : vector<1x128xf32>
    %152 = vector.broadcast %151 : vector<1x128xf32> to vector<32x128xf32>
    %153 = arith.mulf %148, %152 : vector<32x128xf32>
    %154 = vector.broadcast %125 : vector<32x1xf32> to vector<32x128xf32>
    %155 = arith.mulf %153, %154 : vector<32x128xf32>
    %156 = vector.broadcast %126 : vector<32x1xf32> to vector<32x128xf32>
    %157 = arith.addf %155, %156 : vector<32x128xf32>
    %158 = arith.truncf %157 : vector<32x128xf32> to vector<32x128xbf16>
    %cst_66 = arith.constant dense<0.000000e+00> : vector<64x128xf32>
    %159 = tpu.matmul %128, %158, %cst_66 {dimension_numbers = #tpu.dot_dimension_numbers<[1], [0], [0], [1], [0, 0, 1, 1], [], []>} : vector<64x32xbf16>, vector<32x128xbf16>, vector<64x128xf32> -> vector<64x128xf32>
    %160 = vector.broadcast %129 : vector<64x1xf32> to vector<64x128xf32>
    %161 = arith.addf %159, %160 : vector<64x128xf32>
    %cst_67 = arith.constant 0.000000e+00 : f32
    %162 = vector.broadcast %cst_67 : f32 to vector<64x128xf32>
    %163 = arith.cmpf oge, %161, %162 : vector<64x128xf32>
    %cst_68 = arith.constant 0.00999999977 : f32
    %164 = vector.broadcast %cst_68 : f32 to vector<64x128xf32>
    %165 = arith.mulf %164, %161 : vector<64x128xf32>
    %166 = arith.select %163, %161, %165 : vector<64x128xi1>, vector<64x128xf32>
    %167 = arith.truncf %166 : vector<64x128xf32> to vector<64x128xbf16>
    %cst_69 = arith.constant dense<0.000000e+00> : vector<32x128xf32>
    %168 = tpu.matmul %131, %167, %cst_69 {dimension_numbers = #tpu.dot_dimension_numbers<[1], [0], [0], [1], [0, 0, 1, 1], [], []>} : vector<32x64xbf16>, vector<64x128xbf16>, vector<32x128xf32> -> vector<32x128xf32>
    %169 = vector.broadcast %132 : vector<32x1xf32> to vector<32x128xf32>
    %170 = arith.addf %168, %169 : vector<32x128xf32>
    %171 = arith.addf %157, %170 : vector<32x128xf32>
    %cst_70 = arith.constant dense<0.000000e+00> : vector<128xf32>
    %172 = vector.multi_reduction <add>, %171, %cst_70 [0] : vector<32x128xf32> to vector<128xf32>
    %173 = vector.shape_cast %172 : vector<128xf32> to vector<1x128xf32>
    %cst_71 = arith.constant 3.200000e+01 : f32
    %174 = vector.broadcast %cst_71 : f32 to vector<1x128xf32>
    %175 = arith.divf %173, %174 : vector<1x128xf32>
    %176 = arith.mulf %171, %171 : vector<32x128xf32>
    %cst_72 = arith.constant dense<0.000000e+00> : vector<128xf32>
    %177 = vector.multi_reduction <add>, %176, %cst_72 [0] : vector<32x128xf32> to vector<128xf32>
    %178 = vector.shape_cast %177 : vector<128xf32> to vector<1x128xf32>
    %cst_73 = arith.constant 3.200000e+01 : f32
    %179 = vector.broadcast %cst_73 : f32 to vector<1x128xf32>
    %180 = arith.divf %178, %179 : vector<1x128xf32>
    %181 = arith.mulf %175, %175 : vector<1x128xf32>
    %182 = arith.subf %180, %181 : vector<1x128xf32>
    %183 = vector.broadcast %175 : vector<1x128xf32> to vector<32x128xf32>
    %184 = arith.subf %171, %183 : vector<32x128xf32>
    %cst_74 = arith.constant 9.99999974E-6 : f32
    %185 = vector.broadcast %cst_74 : f32 to vector<1x128xf32>
    %186 = arith.addf %182, %185 : vector<1x128xf32>
    %187 = math.rsqrt %186 : vector<1x128xf32>
    %188 = vector.broadcast %187 : vector<1x128xf32> to vector<32x128xf32>
    %189 = arith.mulf %184, %188 : vector<32x128xf32>
    %190 = vector.broadcast %133 : vector<32x1xf32> to vector<32x128xf32>
    %191 = arith.mulf %189, %190 : vector<32x128xf32>
    %192 = vector.broadcast %134 : vector<32x1xf32> to vector<32x128xf32>
    %193 = arith.addf %191, %192 : vector<32x128xf32>
    %194 = arith.truncf %193 : vector<32x128xf32> to vector<32x128xbf16>
    %c0_75 = arith.constant 0 : index
    %c0_76 = arith.constant 0 : index
    %195 = vector.load %arg11[%c0_75, %c0_76] : memref<128x512xbf16, #tpu.memory_space<vmem>>, vector<128x512xbf16>
    %cst_77 = arith.constant dense<0.000000e+00> : vector<32x512xf32>
    %196 = tpu.matmul %194, %195, %cst_77 {dimension_numbers = #tpu.dot_dimension_numbers<[1], [0], [0], [1], [0, 0, 1, 1], [], []>} : vector<32x128xbf16>, vector<128x512xbf16>, vector<32x512xf32> -> vector<32x512xf32>
    %c0_78 = arith.constant 0 : index
    %c0_79 = arith.constant 0 : index
    %c0_80 = arith.constant 0 : index
    %197 = vector.load %arg8[%c0_78, %c0_79, %c0_80] : memref<2x32x32xbf16, #tpu.memory_space<vmem>>, vector<1x32x32xbf16>
    %198 = vector.shape_cast %197 : vector<1x32x32xbf16> to vector<32x32xbf16>
    %199 = arith.truncf %97 : vector<32x512xf32> to vector<32x512xbf16>
    %cst_81 = arith.constant dense<0.000000e+00> : vector<32x512xf32>
    %200 = tpu.matmul %198, %199, %cst_81 {dimension_numbers = #tpu.dot_dimension_numbers<[1], [0], [0], [1], [0, 0, 1, 1], [], []>} : vector<32x32xbf16>, vector<32x512xbf16>, vector<32x512xf32> -> vector<32x512xf32>
    %c1_82 = arith.constant 1 : index
    %c0_83 = arith.constant 0 : index
    %c0_84 = arith.constant 0 : index
    %201 = vector.load %arg8[%c1_82, %c0_83, %c0_84] : memref<2x32x32xbf16, #tpu.memory_space<vmem>>, vector<1x32x32xbf16>
    %202 = vector.shape_cast %201 : vector<1x32x32xbf16> to vector<32x32xbf16>
    %203 = arith.truncf %196 : vector<32x512xf32> to vector<32x512xbf16>
    %cst_85 = arith.constant dense<0.000000e+00> : vector<32x512xf32>
    %204 = tpu.matmul %202, %203, %cst_85 {dimension_numbers = #tpu.dot_dimension_numbers<[1], [0], [0], [1], [0, 0, 1, 1], [], []>} : vector<32x32xbf16>, vector<32x512xbf16>, vector<32x512xf32> -> vector<32x512xf32>
    %205 = arith.addf %200, %204 : vector<32x512xf32>
    %206 = vector.extract_strided_slice %0 {offsets = [0, 12], sizes = [32, 1], strides = [1, 1]} : vector<32x13xf32> to vector<32x1xf32>
    %207 = vector.broadcast %206 : vector<32x1xf32> to vector<32x512xf32>
    %208 = arith.addf %205, %207 : vector<32x512xf32>
    %209 = arith.truncf %208 : vector<32x512xf32> to vector<32x512xbf16>
    %210 = vector.extract_strided_slice %209 {offsets = [0, 0], sizes = [32, 256], strides = [1, 1]} : vector<32x512xbf16> to vector<32x256xbf16>
    %c0_86 = arith.constant 0 : index
    %c0_87 = arith.constant 0 : index
    %c0_88 = arith.constant 0 : index
    %211 = vector.load %arg12[%c0_86, %c0_87, %c0_88] : memref<2x32x256xbf16, #tpu.memory_space<vmem>>, vector<1x32x256xbf16>
    %212 = vector.shape_cast %211 : vector<1x32x256xbf16> to vector<32x256xbf16>
    %213 = vector.shape_cast %210 : vector<32x256xbf16> to vector<1x32x256xbf16>
    tpu.vector_store %arg12[%c0_86, %c0_87, %c0_88], %213 {strides = array<i32>} : memref<2x32x256xbf16, #tpu.memory_space<vmem>>, vector<1x32x256xbf16>,
    %214 = vector.extract_strided_slice %209 {offsets = [0, 256], sizes = [32, 256], strides = [1, 1]} : vector<32x512xbf16> to vector<32x256xbf16>
    %c1_89 = arith.constant 1 : index
    %c0_90 = arith.constant 0 : index
    %c0_91 = arith.constant 0 : index
    %215 = vector.load %arg12[%c1_89, %c0_90, %c0_91] : memref<2x32x256xbf16, #tpu.memory_space<vmem>>, vector<1x32x256xbf16>
    %216 = vector.shape_cast %215 : vector<1x32x256xbf16> to vector<32x256xbf16>
    %217 = vector.shape_cast %214 : vector<32x256xbf16> to vector<1x32x256xbf16>
    tpu.vector_store %arg12[%c1_89, %c0_90, %c0_91], %217 {strides = array<i32>} : memref<2x32x256xbf16, #tpu.memory_space<vmem>>, vector<1x32x256xbf16>,
    return
  }
  func.func @transform_0(%arg0: i32) -> (i32, i32, i32) {
    %c0_i32 = arith.constant 0 : i32
    %c0_i32_0 = arith.constant 0 : i32
    %c0_i32_1 = arith.constant 0 : i32
    return %arg0, %c0_i32, %c0_i32_0 : i32, i32, i32
  }
  func.func @transform_1(%arg0: i32) -> (i32, i32, i32) {
    %c0_i32 = arith.constant 0 : i32
    %c0_i32_0 = arith.constant 0 : i32
    %c0_i32_1 = arith.constant 0 : i32
    return %arg0, %c0_i32, %c0_i32_0 : i32, i32, i32
  }
  func.func @transform_2(%arg0: i32) -> (i32, i32, i32) {
    %c0_i32 = arith.constant 0 : i32
    %c0_i32_0 = arith.constant 0 : i32
    %c0_i32_1 = arith.constant 0 : i32
    return %arg0, %c0_i32, %c0_i32_0 : i32, i32, i32
  }
  func.func @transform_3(%arg0: i32) -> (i32, i32, i32) {
    %c0_i32 = arith.constant 0 : i32
    %c0_i32_0 = arith.constant 0 : i32
    %c0_i32_1 = arith.constant 0 : i32
    return %arg0, %c0_i32, %c0_i32_0 : i32, i32, i32
  }
  func.func @transform_4(%arg0: i32) -> (i32, i32, i32) {
    %c0_i32 = arith.constant 0 : i32
    %c0_i32_0 = arith.constant 0 : i32
    %c0_i32_1 = arith.constant 0 : i32
    %c0_i32_2 = arith.constant 0 : i32
    return %c0_i32, %c0_i32_0, %c0_i32_1 : i32, i32, i32
  }
  func.func @transform_5(%arg0: i32) -> (i32, i32, i32) {
    %c0_i32 = arith.constant 0 : i32
    %c0_i32_0 = arith.constant 0 : i32
    %c0_i32_1 = arith.constant 0 : i32
    %c0_i32_2 = arith.constant 0 : i32
    return %c0_i32, %c0_i32_0, %c0_i32_1 : i32, i32, i32
  }
  func.func @transform_6(%arg0: i32) -> (i32, i32, i32) {
    %c0_i32 = arith.constant 0 : i32
    %c0_i32_0 = arith.constant 0 : i32
    %c0_i32_1 = arith.constant 0 : i32
    %c0_i32_2 = arith.constant 0 : i32
    return %c0_i32, %c0_i32_0, %c0_i32_1 : i32, i32, i32
  }
  func.func @transform_7(%arg0: i32) -> (i32, i32, i32) {
    %c0_i32 = arith.constant 0 : i32
    %c0_i32_0 = arith.constant 0 : i32
    %c0_i32_1 = arith.constant 0 : i32
    %c0_i32_2 = arith.constant 0 : i32
    return %c0_i32, %c0_i32_0, %c0_i32_1 : i32, i32, i32
  }
  func.func @transform_8(%arg0: i32) -> (i32, i32) {
    %c0_i32 = arith.constant 0 : i32
    %c0_i32_0 = arith.constant 0 : i32
    %c0_i32_1 = arith.constant 0 : i32
    return %c0_i32, %c0_i32_0 : i32, i32
  }
  func.func @transform_9(%arg0: i32) -> (i32, i32) {
    %c0_i32 = arith.constant 0 : i32
    %c0_i32_0 = arith.constant 0 : i32
    %c0_i32_1 = arith.constant 0 : i32
    return %c0_i32, %c0_i32_0 : i32, i32
  }
  func.func @transform_10(%arg0: i32) -> (i32, i32) {
    %c0_i32 = arith.constant 0 : i32
    %c0_i32_0 = arith.constant 0 : i32
    %c0_i32_1 = arith.constant 0 : i32
    return %c0_i32, %c0_i32_0 : i32, i32
  }
  func.func @transform_11(%arg0: i32) -> (i32, i32, i32) {
    %c0_i32 = arith.constant 0 : i32
    %c0_i32_0 = arith.constant 0 : i32
    %c0_i32_1 = arith.constant 0 : i32
    return %arg0, %c0_i32, %c0_i32_0 : i32, i32, i32
  }
}

</mosaic_0001>

<bundles_post_ra>
// kernel: xboundlearnerv2_forward.1
= control target key start
LH: loop header
LB: loop body
LE: loop exit
PB: predicated region body
PF: predicated region fallthrough
CT: control target
= control target key end

     0   :  { %vm80_vm0 = vcmask 261120   ;;  %v2583_v13 = vmov 0   ;;  %v2584_v26 = vmov 2   ;;  %v4155_v27 = vmov 1   ;;  %s2587_s13 = smov 64   ;;  %s4143_s2 = inlined_call_operand.vmem [shape: f32[2,1,32], index: 2, kind: input, shape index: {}]   ;;  %s4144_s4 = inlined_call_operand.vmem [shape: f32[2,32,32], index: 4, kind: input, shape index: {}]   ;;  %s4145_s3 = inlined_call_operand.vmem [shape: f32[2,1,32], index: 3, kind: input, shape index: {}]   ;;  %s4146_s8 = inlined_call_operand.vmem [shape: f32[32,13], index: 8, kind: input, shape index: {}]   ;;  %s4147_s1 = inlined_call_operand.vmem [shape: f32[2,32,64], index: 1, kind: input, shape index: {}]   ;;  %s4148_s0 = inlined_call_operand.vmem [shape: f32[2,32,256], index: 0, kind: input, shape index: {}]   ;;  %s4149_s5 = inlined_call_operand.vmem [shape: bf16[2,64,32], index: 5, kind: input, shape index: {}]   ;;  %s4150_s9 = inlined_call_operand.vmem [shape: f32[64,2], index: 9, kind: input, shape index: {}]   ;;  %s4151_s6 = inlined_call_operand.vmem [shape: bf16[2,32,64], index: 6, kind: input, shape index: {}]   ;;  %s4152_s10 = inlined_call_operand.vmem [shape: bf16[128,512], index: 10, kind: input, shape index: {}]   ;;  %s4153_s7 = inlined_call_operand.vmem [shape: bf16[2,32,32], index: 7, kind: input, shape index: {}]   ;;  %s4154_s11 = inlined_call_operand.vmem [shape: bf16[2,32,256], index: 11, kind: output, shape index: {}]  }
   0x1   :  { %v2661_v0 = vld [vmem:[%s4144_s4 + $0x10] sm:$0xff]  ;;  %v2543_v1 = vld [vmem:[%s4143_s2] ss:$0 sm:$0xff]  ;;  %v2676_v5 = vld [vmem:[%s4144_s4 + $0x18] sm:$0xff]  ;;  %2491 = vset.pattern.permute.xlu0 %v2583_v13  ;;  %2490 = vset.pattern.permute.xlu2 %v2583_v13  ;;  %v2586_v54 = vmov 32.0   ;;  %vm779_vm8 = vcmask 523264  }
   0x2   :  { %v2669_v2 = vld [vmem:[%s4144_s4] sm:$0xff]  ;;  %v78_v3 = vmul.f32 %v2543_v1, %v2661_v0  ;;  %v2681_v6 = vld [vmem:[%s4144_s4 + $0x8] sm:$0xff]  ;;  %v79_v9 = vmul.f32 %v2543_v1, %v2676_v5  ;;  %2492 = vset.pattern.permute.xlu1 %v2583_v13  ;;  %v2695_v14 = vld [vmem:[%s4146_s8 + $0x10] sm:$0xff]  ;;  %2547 = vrcp.f32 %v2586_v54 }
   0x3   :  { %v76_v4 = vmul.f32 %v2543_v1, %v2669_v2  ;;  %v77_v10 = vmul.f32 %v2543_v1, %v2681_v6  ;;  %v2700_v15 = vld [vmem:[%s4146_s8] sm:$0xff]  ;;  %v2707_v20 = vld [vmem:[%s4146_s8 + $0x18] sm:$0xff]  ;;  %v2712_v21 = vld [vmem:[%s4146_s8 + $0x8] sm:$0xff] }
   0x4   :  { %v87_v7 = vsel %vm80_vm0, %v78_v3, 0.0  ;;  %v90_v11 = vsel %vm80_vm0, %v79_v9, 0.0  ;;  %v2544_v28 = vld [vmem:[%s4145_s3 + $0x1] ss:$0 sm:$0xff]  ;;  %v2545_v32 = vld [vmem:[%s4145_s3] ss:$0 sm:$0xff] }
   0x5   :  { %v81_v8 = vsel %vm80_vm0, %v76_v4, 0.0  ;;  %88 = vadd.xlane.f32.xlu1 %v87_v7  ;;  %v84_v12 = vsel %vm80_vm0, %v77_v10, 0.0  ;;  %v2208_v29 = vld [vmem:[%s4144_s4 + $0x20] sm:$0xff]  ;;  %v2209_v33 = vld [vmem:[%s4144_s4 + $0x28] sm:$0xff]  ;;  %v2210_v36 = vld [vmem:[%s4144_s4 + $0x30] sm:$0xff] }
   0x6   :  { %82 = vadd.xlane.f32.xlu0 %v81_v8  ;;  %v1205_v30 = vmul.f32 %v2544_v28, %v2208_v29  ;;  %v1161_v34 = vmul.f32 %v2545_v32, %v2209_v33  ;;  %v1162_v37 = vmul.f32 %v2545_v32, %v2210_v36  ;;  %v2211_v39 = vld [vmem:[%s4144_s4 + $0x38] sm:$0xff]  ;;  %v1160_v42 = vmul.f32 %v2545_v32, %v2208_v29  ;;  %v2205_v50 = vld [vmem:[%s4147_s1 + $0x28] sm:$0xff]  ;;  %v53_v52 = vld [vmem:[%s4148_s0 + $0x10] sm:$0xff] }
   0x7   :  { %v1163_v40 = vmul.f32 %v2545_v32, %v2211_v39  ;;  %v1206_v44 = vmul.f32 %v2544_v28, %v2209_v33  ;;  %v1207_v47 = vmul.f32 %v2544_v28, %v2210_v36  ;;  %v1208_v49 = vmul.f32 %v2544_v28, %v2211_v39  ;;  %v54_v53 = vld [vmem:[%s4148_s0 + $0x18] sm:$0xff]  ;;  %v51_v55 = vld [vmem:[%s4148_s0] sm:$0xff]  ;;  %v52_v56 = vld [vmem:[%s4148_s0 + $0x8] sm:$0xff] }
   0x8   :  { %v1209_v31 = vsel %vm80_vm0, %v1205_v30, 0.0  ;;  %v1167_v35 = vsel %vm80_vm0, %v1161_v34, 0.0  ;;  %v1170_v38 = vsel %vm80_vm0, %v1162_v37, 0.0  ;;  %v1164_v43 = vsel %vm80_vm0, %v1160_v42, 0.0  ;;  %v55_v57 = vld [vmem:[%s4148_s0 + $0x20] sm:$0xff]  ;;  %v56_v58 = vld [vmem:[%s4148_s0 + $0x28] sm:$0xff]  ;;  %v2548_v7 = vpop.eup %2547 }
   0x9   :  { %v1173_v41 = vsel %vm80_vm0, %v1163_v40, 0.0  ;;  %v1212_v45 = vsel %vm80_vm0, %v1206_v44, 0.0  ;;  %v1215_v48 = vsel %vm80_vm0, %v1207_v47, 0.0  ;;  %v1218_v62 = vsel %vm80_vm0, %v1208_v49, 0.0 }
   0xa   :  { %vm231_vm1 = vweird.f32 %v2548_v7 }
   0xd   :  { %91 = vadd.xlane.f32.xlu1 %v90_v11 }
   0xe   :  { %85 = vadd.xlane.f32.xlu0 %v84_v12 }
  0x78   :  { %v89_v16 = vpop.xlane.xlu1 %88 }
  0x79   :  { %v83_v17 = vpop.xlane.xlu0 %82  ;;  %v95_v18 = vadd.f32 %v89_v16, %v2695_v14 }
  0x7a   :  { %v93_v19 = vadd.f32 %v83_v17, %v2700_v15  ;;  %v227_v17 = vmul.f32 32.0, %v2548_v7 }
  0x7b   :  { %109 = vperm.xlu0 %2491, %v95_v18   ;;  %v57_v18 = vld [vmem:[%s4148_s0 + $0x30] sm:$0xff] }
  0x7c   :  { %99 = vperm.xlu2 %2490, %v93_v19   ;;  %v58_v19 = vld [vmem:[%s4148_s0 + $0x38] sm:$0xff]  ;;  %v228_v34 = vsub.f32 1.0, %v227_v17  ;;  %v2588_v17 = vmov 6  }
  0x7e   :  { %v229_v44 = vmul.f32 %v2548_v7, %v228_v34 }
  0x80   :  { %v92_v22 = vpop.xlane.xlu1 %91 }
  0x81   :  { %v86_v23 = vpop.xlane.xlu0 %85  ;;  %v96_v24 = vadd.f32 %v92_v22, %v2707_v20 }
  0x82   :  { %v94_v25 = vadd.f32 %v86_v23, %v2712_v21 }
  0x83   :  { %114 = vperm.xlu1 %2492, %v96_v24   ;;  %2498 = vset.pattern.permute.xlu0 %v2584_v26 }
  0x84   :  { %104 = vperm.xlu2 %2490, %v94_v25   ;;  %418 = vperm.xlu0 %2498, %v2712_v21  }
  0x8b   :  { %2495 = vset.pattern.permute.xlu1 %v4155_v27 }
  0x8c   :  { %2493 = vset.pattern.permute.xlu2 %v4155_v27  ;;  %379 = vperm.xlu1 %2495, %v2700_v15  }
  0x8d   :  { %389 = vperm.xlu2 %2493, %v2695_v14   ;;  %2500 = vset.pattern.permute.xlu0 %v2588_v17 }
  0x94   :  { %2497 = vset.pattern.permute.xlu1 %v2584_v26 }
  0x95   :  { %394 = vperm.xlu2 %2493, %v2707_v20   ;;  %414 = vperm.xlu1 %2497, %v2700_v15  }
  0x9d   :  { %2494 = vset.pattern.permute.xlu2 %v2584_v26  ;;  %2501 = vset.pattern.permute.xlu1 %v2588_v17 }
  0x9e   :  { %422 = vperm.xlu2 %2494, %v2695_v14  }
  0xa6   :  { %426 = vperm.xlu2 %2494, %v2707_v20  }
  0xae   :  { %2496 = vset.pattern.permute.xlu2 %v4155_v27  ;;  %1210 = vadd.xlane.f32.xlu0 %v1209_v31 }
  0xaf   :  { %384 = vperm.xlu2 %2496, %v2712_v21  }
  0xb7   :  { %2499 = vset.pattern.permute.xlu2 %v2588_v17 }
  0xbf   :  { %1168 = vadd.xlane.f32.xlu1 %v1167_v35 }
  0xc7   :  { %1171 = vadd.xlane.f32.xlu1 %v1170_v38 }
  0xcf   :  { %1174 = vadd.xlane.f32.xlu1 %v1173_v41 }
  0xd6   :  { %v100_v46 = vpop.permute.xlu2 %99 }
  0xd7   :  { %v2779_v63 = vadd.f32 %v100_v46, %v51_v55  ;;  %v2781_v1 = vadd.f32 %v100_v46, %v52_v56 }
  0xd8   :  { %1165 = vadd.xlane.f32.xlu2 %v1164_v43 }
  0xd9   :  { %v237_v10 = vmul.f32 %v2779_v63, %v2779_v63  ;;  %v238_v11 = vmul.f32 %v2781_v1, %v2781_v1 }
  0xde   :  { %v105_v51 = vpop.permute.xlu2 %104 }
  0xdf   :  { %v2774_v59 = vadd.f32 %v105_v51, %v53_v52  ;;  %v2776_v60 = vadd.f32 %v105_v51, %v54_v53  ;;  %v230_v53 = vadd.f32 %v2548_v7, %v229_v44 }
  0xe0   :  { %1213 = vadd.xlane.f32.xlu2 %v1212_v45 }
  0xe1   :  { %v241_v8 = vmul.f32 %v2774_v59, %v2774_v59  ;;  %v242_v9 = vmul.f32 %v2776_v60, %v2776_v60  ;;  %v190_v22 = vadd.f32 %v2774_v59, %v2779_v63  ;;  %v199_v23 = vadd.f32 %v2776_v60, %v2781_v1 }
  0xe3   :  { %v253_v24 = vadd.f32 %v241_v8, %v237_v10  ;;  %v262_v25 = vadd.f32 %v242_v9, %v238_v11  ;;  %v2823_v9 = vsel %vm231_vm1, %v2548_v7, %v230_v53 }
  0xe7   :  { %v2821_v43 = vpop.permute.xlu2 %389 }
  0xe8   :  { %1216 = vadd.xlane.f32.xlu2 %v1215_v48  ;;  %1137 = vrot.lane.b32.xlu1 %v2205_v50, %s2587_s13 }
  0xed   :  { %v110_v61 = vpop.permute.xlu0 %109 }
  0xee   :  { %v2783_v3 = vadd.f32 %v110_v61, %v55_v57  ;;  %v2785_v4 = vadd.f32 %v110_v61, %v56_v58 }
  0xf0   :  { %1219 = vadd.xlane.f32.xlu2 %v1218_v62  ;;  %v245_v12 = vmul.f32 %v2783_v3, %v2783_v3  ;;  %v246_v16 = vmul.f32 %v2785_v4, %v2785_v4  ;;  %v191_v28 = vadd.f32 %v190_v22, %v2783_v3  ;;  %v200_v29 = vadd.f32 %v199_v23, %v2785_v4 }
  0xf2   :  { %v254_v32 = vadd.f32 %v253_v24, %v245_v12  ;;  %v263_v33 = vadd.f32 %v262_v25, %v246_v16 }
  0xf5   :  { %v115_v26 = vpop.permute.xlu1 %114 }
  0xf6   :  { %v2811_v30 = vadd.f32 %v115_v26, %v57_v18  ;;  %v2813_v31 = vadd.f32 %v115_v26, %v58_v19  ;;  %v2825_v18 = vpop.permute.xlu2 %394 }
  0xf8   :  { %v192_v35 = vadd.f32 %v191_v28, %v2811_v30  ;;  %v201_v36 = vadd.f32 %v200_v29, %v2813_v31  ;;  %v249_v37 = vmul.f32 %v2811_v30, %v2811_v30  ;;  %v250_v38 = vmul.f32 %v2813_v31, %v2813_v31 }
  0xfa   :  { %v193_v39 = vrot.slane %v192_v35, 4  ;;  %v202_v40 = vrot.slane %v201_v36, 4  ;;  %v255_v41 = vadd.f32 %v254_v32, %v249_v37  ;;  %v264_v42 = vadd.f32 %v263_v33, %v250_v38 }
  0xfc   :  { %v194_v45 = vadd.f32 %v193_v39, %v192_v35  ;;  %v203_v46 = vadd.f32 %v202_v40, %v201_v36  ;;  %v256_v47 = vrot.slane %v255_v41, 4  ;;  %v265_v48 = vrot.slane %v264_v42, 4  ;;  %v2204_v35 = vld [vmem:[%s4147_s1 + $0x20] sm:$0xff]  ;;  %v2841_v40 = vpop.permute.xlu0 %418 }
  0xfd   :  { %1135 = vrot.lane.b32.xlu0 %v2204_v35, %s2587_s13  ;;  %4194 = vst [vmem:[#allocation3_spill] sm:$0xff] %v2841_v40 }
  0xfe   :  { %v195_v49 = vrot.slane %v194_v45, 2  ;;  %v204_v50 = vrot.slane %v203_v46, 2  ;;  %v257_v51 = vadd.f32 %v256_v47, %v255_v41  ;;  %v266_v52 = vadd.f32 %v265_v48, %v264_v42  ;;  %v2838_v36 = vpop.permute.xlu2 %422 }
  0xff   :  { %4193 = vst [vmem:[#allocation2_spill] sm:$0xff] %v2838_v36 }
 0x100   :  { %v196_v54 = vadd.f32 %v195_v49, %v194_v45  ;;  %v205_v55 = vadd.f32 %v204_v50, %v203_v46  ;;  %v258_v56 = vrot.slane %v257_v51, 2  ;;  %v267_v57 = vrot.slane %v266_v52, 2  ;;  %v2845_v46 = vpop.permute.xlu1 %379 }
 0x102   :  { %v197_v58 = vrot.slane %v196_v54, 1  ;;  %v206_v61 = vrot.slane %v205_v55, 1  ;;  %v259_v62 = vadd.f32 %v258_v56, %v257_v51  ;;  %v268_v8 = vadd.f32 %v267_v57, %v266_v52 }
 0x104   :  { %v198_v10 = vadd.f32 %v197_v58, %v196_v54  ;;  %v207_v11 = vadd.f32 %v206_v61, %v205_v55  ;;  %v260_v12 = vrot.slane %v259_v62, 1  ;;  %v269_v16 = vrot.slane %v268_v8, 1 }
 0x106   :  { %v233_v19 = vmul.f32 %v2823_v9, %v198_v10  ;;  %v2829_v22 = vmul.f32 %v2823_v9, %v207_v11  ;;  %v261_v23 = vadd.f32 %v260_v12, %v259_v62  ;;  %v270_v24 = vadd.f32 %v269_v16, %v268_v8  ;;  %v2843_v44 = vpop.permute.xlu2 %426 }
 0x107   :  { %4195 = vst [vmem:[#allocation4_spill] sm:$0xff] %v2843_v44 }
 0x108   :  { %v289_v7 = vmul.f32 %v261_v23, %v2823_v9  ;;  %v290_v25 = vmul.f32 %v270_v24, %v2823_v9  ;;  %v293_v26 = vmul.f32 %v233_v19, %v233_v19  ;;  %v294_v28 = vmul.f32 %v2829_v22, %v2829_v22 }
 0x109   :  { %v313_v50 = vsub.f32 %v2811_v30, %v233_v19  ;;  %v314_v52 = vsub.f32 %v2813_v31, %v2829_v22  ;;  %v309_v53 = vsub.f32 %v2783_v3, %v233_v19  ;;  %v310_v55 = vsub.f32 %v2785_v4, %v2829_v22 }
 0x10a   :  { %v297_v29 = vsub.f32 %v289_v7, %v293_v26  ;;  %v298_v32 = vsub.f32 %v290_v25, %v294_v28  ;;  %v301_v57 = vsub.f32 %v2779_v63, %v233_v19  ;;  %v305_v30 = vsub.f32 %v2774_v59, %v233_v19 }
 0x10b   :  { %v302_v61 = vsub.f32 %v2781_v1, %v2829_v22  ;;  %v306_v3 = vsub.f32 %v2776_v60, %v2829_v22  ;;  %v2865_v60 = vpop.permute.xlu1 %414 }
 0x10c   :  { %v317_v33 = vadd.f32 1e-05, %v297_v29  ;;  %v318_v34 = vadd.f32 1e-05, %v298_v32  ;;  %4196 = vst [vmem:[#allocation5_spill] sm:$0xff] %v2865_v60 }
 0x10e   :  { %2549 = vrsqrt.f32 %v317_v33  ;;  %vm327_vm4 = vweird.f32 %v317_v33  ;;  %vm337_vm6 = vweird.f32 %v318_v34  ;;  %v2860_v17 = vpop.permute.xlu2 %384 }
 0x10f   :  { %2551 = vrsqrt.f32 %v318_v34 }
 0x114   :  { %v2550_v37 = vpop.eup %2549 }
 0x115   :  { %v2552_v38 = vpop.eup %2551  ;;  %v322_v39 = vmul.f32 %v2550_v37, %v317_v33  ;;  %vm328_vm2 = vweird.f32 %v2550_v37 }
 0x116   :  { %v332_v41 = vmul.f32 %v2552_v38, %v318_v34  ;;  %vm338_vm3 = vweird.f32 %v2552_v38  ;;  %vm329_vm5 = vmor %vm327_vm4, %vm328_vm2 }
 0x117   :  { %v323_v42 = vmul.f32 %v2550_v37, %v322_v39  ;;  %vm339_vm7 = vmor %vm337_vm6, %vm338_vm3 }
 0x118   :  { %v333_v45 = vmul.f32 %v2552_v38, %v332_v41 }
 0x119   :  { %v324_v47 = vmul.f32 0.5, %v323_v42 }
 0x11a   :  { %v334_v48 = vmul.f32 0.5, %v333_v45  ;;  %v2206_v45 = vld [vmem:[%s4147_s1 + $0x30] sm:$0xff] }
 0x11b   :  { %v325_v49 = vsub.f32 1.5, %v324_v47 }
 0x11c   :  { %v335_v51 = vsub.f32 1.5, %v334_v48 }
 0x11d   :  { %v326_v54 = vmul.f32 %v2550_v37, %v325_v49  ;;  %v2423_v49 = vld [vmem:[%s4149_s5] sm:$0xff] }
 0x11e   :  { %v336_v56 = vmul.f32 %v2552_v38, %v335_v51 }
 0x11f   :  { %v330_v58 = vsel %vm329_vm5, %v2550_v37, %v326_v54 }
 0x120   :  { %v369_v62 = vmul.f32 %v330_v58, %v309_v53  ;;  %v373_v8 = vmul.f32 %v330_v58, %v313_v50  ;;  %v340_v10 = vsel %vm339_vm7, %v2552_v38, %v336_v56  ;;  %v361_v11 = vmul.f32 %v330_v58, %v301_v57  ;;  %v2207_v50 = vld [vmem:[%s4147_s1 + $0x38] sm:$0xff]  ;;  %v2922_v53 = vld [vmem:[%s4150_s9 + $0x30] sm:$0xff]  ;;  %v2424_v56 = vld [vmem:[%s4149_s5 + $0x8] sm:$0xff] }
 0x121   :  { %v1211_v31 = vpop.xlane.xlu0 %1210  ;;  %v370_v12 = vmul.f32 %v340_v10, %v310_v55  ;;  %v374_v16 = vmul.f32 %v340_v10, %v314_v52  ;;  %v365_v63 = vmul.f32 %v330_v58, %v305_v30  ;;  %v362_v23 = vmul.f32 %v340_v10, %v302_v61  ;;  %v2934_v57 = vld [vmem:[%s4150_s9 + $0x28] sm:$0xff]  ;;  %v2941_v61 = vld [vmem:[%s4150_s9 + $0x18] sm:$0xff] }
 0x122   :  { %v1221_v4 = vadd.f32 %v1211_v31, %v2700_v15  ;;  %v405_v59 = vmul.f32 %v2821_v43, %v369_v62  ;;  %v409_v19 = vmul.f32 %v2825_v18, %v373_v8  ;;  %v397_v1 = vmul.f32 %v2845_v46, %v361_v11  ;;  %v2946_v31 = vld [vmem:[%s4150_s9 + $0x38] sm:$0xff]  ;;  %v2425_v8 = vld [vmem:[%s4149_s5 + $0x10] sm:$0xff]  ;;  %v2960_v11 = vld [vmem:[%s4150_s9] sm:$0xff] }
 0x123   :  { %v406_v22 = vmul.f32 %v2821_v43, %v370_v12  ;;  %v410_v24 = vmul.f32 %v2825_v18, %v374_v16  ;;  %v401_v7 = vmul.f32 %v2860_v17, %v365_v63  ;;  %v366_v25 = vmul.f32 %v340_v10, %v306_v3 }
 0x124   :  { %1227 = vperm.xlu1 %2501, %v1221_v4   ;;  %v2871_v26 = vadd.f32 %v2838_v36, %v405_v59  ;;  %v2874_v28 = vadd.f32 %v2843_v44, %v409_v19  ;;  %v398_v29 = vmul.f32 %v2845_v46, %v362_v23  ;;  %v2887_v37 = vadd.f32 %v2865_v60, %v397_v1  ;;  %v2426_v59 = vld [vmem:[%s4149_s5 + $0x18] sm:$0xff] }
 0x125   :  { %v2878_v32 = vadd.f32 %v2838_v36, %v406_v22  ;;  %v2881_v33 = vadd.f32 %v2843_v44, %v410_v24  ;;  %v402_v34 = vmul.f32 %v2860_v17, %v366_v25  ;;  %v2890_v38 = vadd.f32 %v2841_v40, %v401_v7  ;;  %v2979_v22 = vld [vmem:[%s4150_s9 + $0x20] sm:$0xff]  ;;  %v2994_v24 = vld [vmem:[%s4150_s9 + $0x8] sm:$0xff] }
 0x126   :  { %4197 = vst [vmem:[#allocation6_spill] sm:$0xff] %v2871_v26  ;;  %v449_v35 = vpack.c.bf16 %v2874_v28, %v2871_v26  ;;  %v2895_v41 = vadd.f32 %v2865_v60, %v398_v29  ;;  %v2589_v12 = vmov 7   ;;  %v2590_v19 = vmov 8   ;;  %v2546_v7 = vld [vmem:[%s4143_s2 + $0x1] ss:$0 sm:$0xff] }
 0x127   :  { %4198 = vst [vmem:[#allocation7_spill] sm:$0xff] %v2874_v28  ;;  %v450_v39 = vpack.c.bf16 %v2881_v33, %v2878_v32  ;;  %v2898_v42 = vadd.f32 %v2841_v40, %v402_v34  ;;  %v445_v47 = vpack.c.bf16 %v2890_v38, %v2887_v37  ;;  %v122_v25 = vmul.f32 %v2546_v7, %v2669_v2 }
 0x128   :  { %4199 = vst [vmem:[#allocation8_spill] sm:$0xff] %v2878_v32  ;;  %531 = vmatpush.bf16.msra.mxu0 %v449_v35  ;;  %v124_v29 = vmul.f32 %v2546_v7, %v2661_v0 }
 0x129   :  { %4200 = vst [vmem:[#allocation9_spill] sm:$0xff] %v2881_v33  ;;  %560 = vmatpush.bf16.msra.mxu1 %v450_v39  ;;  %v446_v48 = vpack.c.bf16 %v2898_v42, %v2895_v41  ;;  %v126_v34 = vsel %vm80_vm0, %v122_v25, 0.0  ;;  %v125_v39 = vmul.f32 %v2546_v7, %v2676_v5 }
 0x12a   :  { %v132_v35 = vsel %vm80_vm0, %v124_v29, 0.0 }
 0x12c   :  { %1139 = vrot.lane.b32.xlu1 %v2206_v45, %s2587_s13  ;;  %532 = vmatpush.bf16.msra.mxu0 %v445_v47  ;;  %v135_v45 = vsel %vm80_vm0, %v125_v39, 0.0 }
 0x12d   :  { %2502 = vset.pattern.permute.xlu1 %v2583_v13  ;;  %561 = vmatpush.bf16.msra.mxu1 %v446_v48 }
 0x12f   :  { %2172 = vmatmul.msk.bf16.vlgmr.msra.gmra.mxu0 %vm80_vm0, %v2423_v49 }
 0x130   :  { %2176 = vmatmul.msk.bf16.vlgmr.msra.gmra.mxu1 %vm80_vm0, %v2423_v49 }
 0x132   :  { %v1169_v51 = vpop.xlane.xlu1 %1168 }
 0x133   :  { %v1177_v52 = vadd.f32 %v1169_v51, %v2712_v21  ;;  %v1123_v51 = vld [vmem:[%s4147_s1 + $0x8] sm:$0xff] }
 0x134   :  { %1141 = vrot.lane.b32.xlu1 %v2207_v50, %s2587_s13 }
 0x135   :  { %1187 = vperm.xlu0 %2500, %v1177_v52  }
 0x13a   :  { %v1172_v54 = vpop.xlane.xlu1 %1171 }
 0x13b   :  { %v1178_v55 = vadd.f32 %v1172_v54, %v2695_v14 }
 0x13c   :  { %485 = vperm.xlu1 %2502, %v2922_v53  }
 0x13d   :  { %1192 = vperm.xlu0 %2500, %v1178_v55  }
 0x13f   :  { %2173 = vmatmul.msk.bf16.gmra.mxu0 %vm80_vm0, %v2424_v56 }
 0x140   :  { %2177 = vmatmul.msk.bf16.gmra.mxu1 %vm80_vm0, %v2424_v56 }
 0x142   :  { %v1175_v58 = vpop.xlane.xlu1 %1174 }
 0x143   :  { %v1179_v30 = vadd.f32 %v1175_v58, %v2707_v20 }
 0x144   :  { %480 = vperm.xlu1 %2502, %v2934_v57  }
 0x145   :  { %1197 = vperm.xlu0 %2500, %v1179_v30  }
 0x14b   :  { %v1166_v3 = vpop.xlane.xlu2 %1165 }
 0x14c   :  { %v1176_v62 = vadd.f32 %v1166_v3, %v2700_v15  ;;  %470 = vperm.xlu1 %2502, %v2941_v61  }
 0x14d   :  { %2503 = vset.pattern.permute.xlu0 %v2583_v13 }
 0x14e   :  { %1182 = vperm.xlu2 %2499, %v1176_v62   ;;  %490 = vperm.xlu0 %2503, %v2946_v31  }
 0x14f   :  { %2174 = vmatmul.msk.bf16.gmra.mxu0 %vm80_vm0, %v2425_v8 }
 0x150   :  { %2178 = vmatmul.msk.bf16.gmra.mxu1 %vm80_vm0, %v2425_v8 }
 0x153   :  { %v1214_v10 = vpop.xlane.xlu2 %1213 }
 0x154   :  { %v1222_v4 = vadd.f32 %v1214_v10, %v2712_v21  ;;  %2505 = vset.pattern.permute.xlu1 %v2589_v12 }
 0x155   :  { %1321 = vperm.xlu1 %2505, %v2695_v14  }
 0x156   :  { %1232 = vperm.xlu2 %2499, %v1222_v4   ;;  %455 = vperm.xlu0 %2503, %v2960_v11  }
 0x15a   :  { %v1138_v2 = vpop.permute.xlu1 %1137 }
 0x15b   :  { %v1217_v16 = vpop.xlane.xlu2 %1216  ;;  %v1148_v56 = vsel %vm779_vm8, %v1123_v51, %v1138_v2 }
 0x15c   :  { %v1223_v63 = vadd.f32 %v1217_v16, %v2695_v14 }
 0x15d   :  { %2508 = vset.pattern.permute.xlu1 %v2590_v19 }
 0x15e   :  { %1237 = vperm.xlu2 %2499, %v1223_v63   ;;  %1345 = vperm.xlu1 %2508, %v2707_v20  }
 0x15f   :  { %2506 = vset.pattern.permute.xlu0 %v2589_v12  ;;  %2175 = vmatmul.msk.bf16.gmra.mxu0 %vm80_vm0, %v2426_v59 }
 0x160   :  { %1325 = vperm.xlu0 %2506, %v2707_v20   ;;  %2179 = vmatmul.msk.bf16.gmra.mxu1 %vm80_vm0, %v2426_v59  ;;  %v1125_v59 = vld [vmem:[%s4147_s1 + $0x18] sm:$0xff] }
 0x163   :  { %v1220_v1 = vpop.xlane.xlu2 %1219 }
 0x164   :  { %v1224_v23 = vadd.f32 %v1220_v1, %v2707_v20  ;;  %v2988_v20 = vld [vmem:[%s4150_s9 + $0x10] sm:$0xff] }
 0x166   :  { %1242 = vperm.xlu2 %2499, %v1224_v23   ;;  %2510 = vset.pattern.permute.xlu1 %v2589_v12 }
 0x167   :  { %1317 = vperm.xlu1 %2510, %v2712_v21  }
 0x168   :  { %2511 = vset.pattern.permute.xlu0 %v2590_v19 }
 0x169   :  { %1333 = vperm.xlu0 %2511, %v2700_v15  }
 0x16e   :  { %2504 = vset.pattern.permute.xlu2 %v2583_v13 }
 0x16f   :  { %475 = vperm.xlu2 %2504, %v2979_v22   ;;  %2514 = vset.pattern.permute.xlu1 %v2583_v13 }
 0x171   :  { %2515 = vset.pattern.permute.xlu0 %v2583_v13 }
 0x177   :  { %465 = vperm.xlu2 %2504, %v2988_v20  }
 0x17f   :  { %460 = vperm.xlu2 %2504, %v2994_v24  }
 0x187   :  { %2507 = vset.pattern.permute.xlu2 %v2590_v19 }
 0x188   :  { %1341 = vperm.xlu2 %2507, %v2695_v14   ;;  %v1136_v14 = vpop.permute.xlu0 %1135 }
 0x190   :  { %2509 = vset.pattern.permute.xlu2 %v2589_v12 }
 0x191   :  { %1313 = vperm.xlu2 %2509, %v2700_v15   ;;  %127 = vadd.xlane.f32.xlu1 %v126_v34 }
 0x193   :  { %133 = vadd.xlane.f32.xlu0 %v132_v35 }
 0x196   :  { %v1228_v0 = vpop.permute.xlu1 %1227 }
 0x199   :  { %2512 = vset.pattern.permute.xlu2 %v2590_v19  ;;  %136 = vadd.xlane.f32.xlu1 %v135_v45  ;;  %v123_v19 = vmul.f32 %v2546_v7, %v2681_v6 }
 0x19a   :  { %1337 = vperm.xlu2 %2512, %v2712_v21   ;;  %v1124_v21 = vld [vmem:[%s4147_s1 + $0x10] sm:$0xff] }
 0x19b   :  { %v129_v7 = vsel %vm80_vm0, %v123_v19, 0.0 }
 0x19e   :  { %v1140_v50 = vpop.permute.xlu1 %1139 }
 0x19f   :  { %v1149_v8 = vsel %vm779_vm8, %v1124_v21, %v1140_v50 }
 0x1a2   :  { %2513 = vset.pattern.permute.xlu2 %v2583_v13  ;;  %v1122_v13 = vld [vmem:[%s4147_s1] sm:$0xff] }
 0x1a3   :  { %v1147_v62 = vsel %vm779_vm8, %v1122_v13, %v1136_v14 }
 0x1a6   :  { %v1142_v4 = vpop.permute.xlu1 %1141 }
 0x1a7   :  { %v1188_v48 = vpop.permute.xlu0 %1187  ;;  %v1150_v34 = vsel %vm779_vm8, %v1125_v59, %v1142_v4 }
 0x1a8   :  { %v1183_v47 = vpop.permute.xlu2 %1182 }
 0x1a9   :  { %v1245_v3 = vsel %vm779_vm8, %v1183_v47, %v1228_v0 }
 0x1aa   :  { %v3035_v16 = vadd.f32 %v1245_v3, %v1147_v62 }
 0x1ac   :  { %v3010_v49 = vpop.f32.mrf.mxu0  ;;  %v1277_v35 = vmul.f32 %v3035_v16, %v3035_v16 }
 0x1ad   :  { %v3012_v15 = vpop.f32.mrf.mxu1 }
 0x1af   :  { %v1193_v52 = vpop.permute.xlu0 %1192 }
 0x1b0   :  { %v1233_v5 = vpop.permute.xlu2 %1232 }
 0x1b1   :  { %v1246_v58 = vsel %vm779_vm8, %v1188_v48, %v1233_v5  ;;  %v3061_v48 = vpop.permute.xlu1 %485 }
 0x1b2   :  { %v3033_v12 = vadd.f32 %v1246_v58, %v1148_v56  ;;  %4201 = vst [vmem:[#allocation10_spill] sm:$0xff] %v3061_v48 }
 0x1b4   :  { %v3017_v54 = vpop.f32.mrf.mxu0  ;;  %v1278_v23 = vmul.f32 %v3033_v12, %v3033_v12  ;;  %v1267_v39 = vadd.f32 %v3033_v12, %v3035_v16 }
 0x1b5   :  { %v3025_v55 = vpop.f32.mrf.mxu1 }
 0x1b6   :  { %v1281_v14 = vadd.f32 %v1278_v23, %v1277_v35 }
 0x1b7   :  { %v1198_v29 = vpop.permute.xlu0 %1197 }
 0x1b8   :  { %v1238_v30 = vpop.permute.xlu2 %1237 }
 0x1b9   :  { %v1247_v10 = vsel %vm779_vm8, %v1193_v52, %v1238_v30  ;;  %v3068_v59 = vpop.permute.xlu1 %480 }
 0x1ba   :  { %v3037_v63 = vadd.f32 %v1247_v10, %v1149_v8  ;;  %4203 = vst [vmem:[#allocation12_spill] sm:$0xff] %v3068_v59 }
 0x1bc   :  { %v3043_v1 = vpop.f32.mrf.mxu0  ;;  %v1279_v45 = vmul.f32 %v3037_v63, %v3037_v63  ;;  %v1268_v0 = vadd.f32 %v1267_v39, %v3037_v63 }
 0x1bd   :  { %v3047_v25 = vpop.f32.mrf.mxu1 }
 0x1be   :  { %v1282_v50 = vadd.f32 %v1281_v14, %v1279_v45 }
 0x1c0   :  { %v1243_v6 = vpop.permute.xlu2 %1242 }
 0x1c1   :  { %v1248_v2 = vsel %vm779_vm8, %v1198_v29, %v1243_v6 }
 0x1c2   :  { %v3059_v47 = vadd.f32 %v1248_v2, %v1150_v34  ;;  %v3075_v2 = vpop.permute.xlu0 %490 }
 0x1c3   :  { %130 = vadd.xlane.f32.xlu2 %v129_v7  ;;  %4205 = vst [vmem:[#allocation14_spill] sm:$0xff] %v3075_v2 }
 0x1c4   :  { %v1269_v5 = vadd.f32 %v1268_v0, %v3059_v47  ;;  %v1280_v51 = vmul.f32 %v3059_v47, %v3059_v47  ;;  %v541_v52 = vpop.f32.mrf.mxu0 }
 0x1c5   :  { %v570_v56 = vpop.f32.mrf.mxu1 }
 0x1c6   :  { %v1270_v13 = vrot.slane %v1269_v5, 4  ;;  %v1283_v21 = vadd.f32 %v1282_v50, %v1280_v51 }
 0x1c8   :  { %v1271_v58 = vadd.f32 %v1270_v13, %v1269_v5  ;;  %v1284_v30 = vrot.slane %v1283_v21, 4  ;;  %v3080_v13 = vpop.permute.xlu1 %470 }
 0x1c9   :  { %v3066_v3 = vpop.permute.xlu2 %475  ;;  %4206 = vst [vmem:[#allocation15_spill] sm:$0xff] %v3080_v13 }
 0x1ca   :  { %4202 = vst [vmem:[#allocation11_spill] sm:$0xff] %v3066_v3  ;;  %v1272_v62 = vrot.slane %v1271_v58, 2  ;;  %v1285_v8 = vadd.f32 %v1284_v30, %v1283_v21  ;;  %v542_v30 = vadd.f32 %v541_v52, %v3080_v13 }
 0x1cc   :  { %v1273_v10 = vadd.f32 %v1272_v62, %v1271_v58  ;;  %v1286_v4 = vrot.slane %v1285_v8, 2  ;;  %v544_v19 = vpop.f32.mrf.mxu0  ;;  %v571_v62 = vadd.f32 %v570_v56, %v3080_v13  ;;  %vm653_vm9 = vcmp.ge.f32.partialorder %v542_v30, 0.0 }
 0x1cd   :  { %v573_v34 = vpop.f32.mrf.mxu1 }
 0x1ce   :  { %v1274_v23 = vrot.slane %v1273_v10, 1  ;;  %v1287_v29 = vadd.f32 %v1286_v4, %v1285_v8  ;;  %vm654_vm10 = vcmp.ge.f32.partialorder %v571_v62, 0.0 }
 0x1d0   :  { %v1275_v35 = vadd.f32 %v1274_v23, %v1273_v10  ;;  %v1288_v39 = vrot.slane %v1287_v29, 1  ;;  %v3086_v10 = vpop.permute.xlu0 %455  ;;  %v685_v23 = vmul.f32 0.01, %v542_v30 }
 0x1d1   :  { %v3070_v45 = vpop.permute.xlu2 %465  ;;  %4208 = vst [vmem:[#allocation17_spill] sm:$0xff] %v3086_v10 }
 0x1d2   :  { %4204 = vst [vmem:[#allocation13_spill] sm:$0xff] %v3070_v45  ;;  %v3073_v6 = vmul.f32 %v1275_v35, %v2823_v9  ;;  %v1289_v7 = vadd.f32 %v1288_v39, %v1287_v29  ;;  %v686_v29 = vmul.f32 0.01, %v571_v62  ;;  %v3089_v35 = vadd.f32 %v544_v19, %v3066_v3 }
 0x1d3   :  { %v3092_v39 = vadd.f32 %v573_v34, %v3066_v3  ;;  %v3109_v28 = vsel %vm653_vm9, %v542_v30, %v685_v23 }
 0x1d4   :  { %v1290_v14 = vmul.f32 %v1289_v7, %v2823_v9  ;;  %v1291_v0 = vmul.f32 %v3073_v6, %v3073_v6  ;;  %v546_v50 = vpop.f32.mrf.mxu0  ;;  %v3094_v7 = vpop.permute.xlu1 %1321  ;;  %v3111_v26 = vsel %vm654_vm10, %v571_v62, %v686_v29  ;;  %vm657_vm11 = vcmp.ge.f32.partialorder %v3089_v35, 0.0 }
 0x1d5   :  { %v575_v5 = vpop.f32.mrf.mxu1  ;;  %vm658_vm12 = vcmp.ge.f32.partialorder %v3092_v39, 0.0  ;;  %v1295_v30 = vsub.f32 %v3037_v63, %v3073_v6  ;;  %v1296_v29 = vsub.f32 %v3059_v47, %v3073_v6 }
 0x1d6   :  { %v1292_v51 = vsub.f32 %v1290_v14, %v1291_v0  ;;  %v3099_v14 = vadd.f32 %v3010_v49, %v3086_v10  ;;  %v3103_v0 = vadd.f32 %v3012_v15, %v3086_v10  ;;  %v690_v49 = vmul.f32 0.01, %v3092_v39 }
 0x1d7   :  { %v540_v15 = vadd.f32 %v3043_v1, %v3070_v45 }
 0x1d8   :  { %v1297_v21 = vadd.f32 1e-05, %v1292_v51  ;;  %v547_v51 = vadd.f32 %v546_v50, %v3068_v59  ;;  %v3120_v50 = vadd.f32 %v3047_v25, %v3070_v45  ;;  %vm641_vm10 = vcmp.ge.f32.partialorder %v3099_v14, 0.0 }
 0x1d9   :  { %v3082_v58 = vpop.permute.xlu2 %460  ;;  %vm649_vm7 = vcmp.ge.f32.partialorder %v540_v15, 0.0 }
 0x1da   :  { %4207 = vst [vmem:[#allocation16_spill] sm:$0xff] %v3082_v58  ;;  %2553 = vrsqrt.f32 %v1297_v21  ;;  %vm661_vm2 = vcmp.ge.f32.partialorder %v547_v51, 0.0  ;;  %vm1304_vm3 = vweird.f32 %v1297_v21  ;;  %vm650_vm9 = vcmp.ge.f32.partialorder %v3120_v50, 0.0 }
 0x1dc   :  { %v549_v8 = vpop.f32.mrf.mxu0  ;;  %v1346_v47 = vpop.permute.xlu1 %1345 }
 0x1dd   :  { %v578_v4 = vpop.f32.mrf.mxu1  ;;  %v550_v56 = vadd.f32 %v549_v8, %v3061_v48  ;;  %v689_v8 = vmul.f32 0.01, %v3089_v35 }
 0x1de   :  { %v579_v34 = vadd.f32 %v578_v4, %v3061_v48  ;;  %v576_v48 = vadd.f32 %v575_v5, %v3068_v59 }
 0x1df   :  { %v697_v4 = vmul.f32 0.01, %v550_v56  ;;  %vm665_vm13 = vcmp.ge.f32.partialorder %v550_v56, 0.0 }
 0x1e0   :  { %v2554_v52 = vpop.eup %2553  ;;  %v698_v1 = vmul.f32 0.01, %v579_v34  ;;  %vm666_vm15 = vcmp.ge.f32.partialorder %v579_v34, 0.0  ;;  %v694_v40 = vmul.f32 0.01, %v576_v48  ;;  %vm662_vm6 = vcmp.ge.f32.partialorder %v576_v48, 0.0 }
 0x1e1   :  { %v1299_v19 = vmul.f32 %v2554_v52, %v1297_v21  ;;  %vm1305_vm14 = vweird.f32 %v2554_v52  ;;  %v729_v63 = vsel %vm665_vm13, %v550_v56, %v697_v4  ;;  %v537_v56 = vadd.f32 %v3017_v54, %v3082_v58 }
 0x1e2   :  { %v3107_v27 = vpop.permute.xlu2 %1341  ;;  %vm1306_vm5 = vmor %vm1304_vm3, %vm1305_vm14  ;;  %v730_v59 = vsel %vm666_vm15, %v579_v34, %v698_v1  ;;  %v722_v54 = vsel %vm658_vm12, %v3092_v39, %v690_v49  ;;  %vm642_vm12 = vcmp.ge.f32.partialorder %v3103_v0, 0.0 }
 0x1e3   :  { %v1300_v3 = vmul.f32 %v2554_v52, %v1299_v19  ;;  %v693_v19 = vmul.f32 0.01, %v547_v51 }
 0x1e4   :  { %v551_v23 = vpop.f32.mrf.mxu0  ;;  %v1318_v39 = vpop.permute.xlu1 %1317 }
 0x1e5   :  { %v1301_v62 = vmul.f32 0.5, %v1300_v3  ;;  %v552_v13 = vadd.f32 %v551_v23, %v3075_v2  ;;  %v580_v25 = vpop.f32.mrf.mxu1  ;;  %v681_v23 = vmul.f32 0.01, %v540_v15  ;;  %v725_v21 = vsel %vm661_vm2, %v547_v51, %v693_v19 }
 0x1e6   :  { %v581_v10 = vadd.f32 %v580_v25, %v3075_v2  ;;  %v1326_v2 = vpop.permute.xlu0 %1325  ;;  %v1294_v51 = vsub.f32 %v3033_v12, %v3073_v6 }
 0x1e7   :  { %v1302_v45 = vsub.f32 1.5, %v1301_v62  ;;  %v701_v32 = vmul.f32 0.01, %v552_v13  ;;  %vm669_vm1 = vcmp.ge.f32.partialorder %v552_v13, 0.0 }
 0x1e8   :  { %v702_v33 = vmul.f32 0.01, %v581_v10  ;;  %vm670_vm4 = vcmp.ge.f32.partialorder %v581_v10, 0.0 }
 0x1e9   :  { %v1303_v3 = vmul.f32 %v2554_v52, %v1302_v45  ;;  %v733_v5 = vsel %vm669_vm1, %v552_v13, %v701_v32  ;;  %v721_v32 = vsel %vm657_vm11, %v3089_v35, %v689_v8  ;;  %v673_v13 = vmul.f32 0.01, %v3099_v14 }
 0x1ea   :  { %v3130_v44 = vpack.c.bf16 %v733_v5, %v729_v63  ;;  %v734_v25 = vsel %vm670_vm4, %v581_v10, %v702_v33  ;;  %v566_v33 = vadd.f32 %v3025_v55, %v3082_v58  ;;  %v726_v10 = vsel %vm662_vm6, %v576_v48, %v694_v40 }
 0x1eb   :  { %v1307_v60 = vsel %vm1306_vm5, %v2554_v52, %v1303_v3  ;;  %v1314_v62 = vpop.permute.xlu2 %1313  ;;  %v750_v36 = vpack.c.bf16 %v734_v25, %v730_v59  ;;  %v682_v52 = vmul.f32 0.01, %v3120_v50  ;;  %v1293_v59 = vsub.f32 %v3035_v16, %v3073_v6  ;;  %v3190_v25 = vld [vmem:[%s4146_s8] sm:$0xff] }
 0x1ec   :  { %v1310_v4 = vmul.f32 %v1307_v60, %v1295_v30  ;;  %v1311_v45 = vmul.f32 %v1307_v60, %v1296_v29  ;;  %790 = vmatpush.bf16.msrb.mxu0 %v3130_v44  ;;  %v3150_v35 = vpack.c.bf16 %v725_v21, %v721_v32  ;;  %v713_v8 = vsel %vm649_vm7, %v540_v15, %v681_v23  ;;  %v2429_v32 = vld [vmem:[%s4149_s5 + $0x20] sm:$0xff] }
 0x1ed   :  { %809 = vmatpush.bf16.msrb.mxu1 %v750_v36  ;;  %v677_v30 = vmul.f32 0.01, %v537_v56  ;;  %v746_v40 = vpack.c.bf16 %v726_v10, %v722_v54  ;;  %vm645_vm11 = vcmp.ge.f32.partialorder %v537_v56, 0.0  ;;  %v674_v16 = vmul.f32 0.01, %v3103_v0 }
 0x1ee   :  { %v1330_v55 = vmul.f32 %v3094_v7, %v1310_v4  ;;  %v1331_v34 = vmul.f32 %v1326_v2, %v1311_v45  ;;  %v1308_v48 = vmul.f32 %v1307_v60, %v1293_v59  ;;  %v1309_v12 = vmul.f32 %v1307_v60, %v1294_v51  ;;  %v1334_v3 = vpop.permute.xlu0 %1333  ;;  %v3196_v45 = vld [vmem:[%s4146_s8 + $0x10] sm:$0xff]  ;;  %v3219_v59 = vld [vmem:[%s4151_s6 + $0x8] sm:$0xff] }
 0x1ef   :  { %v714_v36 = vsel %vm650_vm9, %v3120_v50, %v682_v52  ;;  %v678_v6 = vmul.f32 0.01, %v566_v33  ;;  %v3159_v7 = vpack.c.bf16 %v3109_v28, %v713_v8  ;;  %vm646_vm13 = vcmp.ge.f32.partialorder %v566_v33, 0.0  ;;  %v2430_v52 = vld [vmem:[%s4149_s5 + $0x28] sm:$0xff] }
 0x1f0   :  { %791 = vmatpush.bf16.msrb.mxu0 %v3150_v35  ;;  %v3163_v2 = vadd.f32 %v3107_v27, %v1330_v55  ;;  %v3165_v49 = vadd.f32 %v1346_v47, %v1331_v34  ;;  %v705_v15 = vsel %vm641_vm10, %v3099_v14, %v673_v13  ;;  %v709_v29 = vsel %vm645_vm11, %v537_v56, %v677_v30  ;;  %v2427_v14 = vld [vmem:[%s4151_s6] sm:$0xff]  ;;  %v2431_v55 = vld [vmem:[%s4149_s5 + $0x30] sm:$0xff] }
 0x1f1   :  { %810 = vmatpush.bf16.msrb.mxu1 %v746_v40  ;;  %v742_v50 = vpack.c.bf16 %v3111_v26, %v714_v36  ;;  %v1328_v19 = vmul.f32 %v1314_v62, %v1308_v48  ;;  %v1329_v1 = vmul.f32 %v1318_v39, %v1309_v12  ;;  %v706_v28 = vsel %vm642_vm12, %v3103_v0, %v674_v16 }
 0x1f2   :  { %4209 = vst [vmem:[#allocation18_spill] sm:$0xff] %v3163_v2  ;;  %v710_v63 = vsel %vm646_vm13, %v566_v33, %v678_v6  ;;  %v3171_v5 = vpack.c.bf16 %v709_v29, %v705_v15  ;;  %v1353_v27 = vpack.c.bf16 %v3165_v49, %v3163_v2  ;;  %v3206_v33 = vld [vmem:[%s4146_s8 + $0x18] sm:$0xff]  ;;  %v4211_v10 = vmov 1  }
 0x1f3   :  { %4210 = vst [vmem:[#allocation19_spill] sm:$0xff] %v3165_v49  ;;  %v738_v26 = vpack.c.bf16 %v710_v63, %v706_v28  ;;  %v3181_v23 = vadd.f32 %v1334_v3, %v1328_v19  ;;  %v2591_v51 = vmov 9   ;;  %v2593_v34 = vmov 3  }
 0x1f4   :  { %v1338_v60 = vpop.permute.xlu2 %1337  ;;  %792 = vmatpush.bf16.msrb.mxu0 %v3159_v7  ;;  %v2594_v30 = vmov 10   ;;  %v2595_v15 = vmov 4   ;;  %v2596_v19 = vmov 5  }
 0x1f5   :  { %811 = vmatpush.bf16.msrb.mxu1 %v742_v50  ;;  %v3175_v47 = vadd.f32 %v1338_v60, %v1329_v1 }
 0x1f7   :  { %v1352_v0 = vpack.c.bf16 %v3175_v47, %v3181_v23 }
 0x1f8   :  { %793 = vmatpush.bf16.msrb.mxu0 %v3171_v5 }
 0x1f9   :  { %812 = vmatpush.bf16.msrb.mxu1 %v738_v26  ;;  %v2151_v26 = vld [vmem:[%s4148_s0 + $0x60] sm:$0xff] }
 0x1fb   :  { %2196 = vmatmul.msk.bf16.vlgmr.msrb.gmra.mxu0 %vm779_vm8, %v2427_v14 }
 0x1fc   :  { %1424 = vmatpush.bf16.msra.mxu0 %v1353_v27  ;;  %2198 = vmatmul.msk.bf16.vlgmr.msrb.gmra.mxu1 %vm779_vm8, %v2427_v14  ;;  %v2147_v27 = vld [vmem:[%s4148_s0 + $0x40] sm:$0xff]  ;;  %v2148_v14 = vld [vmem:[%s4148_s0 + $0x48] sm:$0xff] }
 0x200   :  { %1425 = vmatpush.bf16.msra.mxu0 %v1352_v0  ;;  %v2152_v0 = vld [vmem:[%s4148_s0 + $0x68] sm:$0xff] }
 0x204   :  { %v128_v62 = vpop.xlane.xlu1 %127 }
 0x205   :  { %v138_v56 = vadd.f32 %v3190_v25, %v128_v62 }
 0x206   :  { %v134_v4 = vpop.xlane.xlu0 %133 }
 0x207   :  { %v140_v21 = vadd.f32 %v3196_v45, %v134_v4  ;;  %144 = vperm.xlu2 %2513, %v138_v56  }
 0x209   :  { %154 = vperm.xlu0 %2515, %v140_v21  }
 0x20b   :  { %2241 = vmatmul.msk.bf16.vlgmr.msra.gmra.mxu0 %vm80_vm0, %v2429_v32  ;;  %v2149_v32 = vld [vmem:[%s4148_s0 + $0x50] sm:$0xff] }
 0x20c   :  { %v137_v13 = vpop.xlane.xlu1 %136  ;;  %2199 = vmatmul.msk.bf16.gmra.mxu1 %vm779_vm8, %v3219_v59 }
 0x20d   :  { %v141_v54 = vadd.f32 %v3206_v33, %v137_v13  ;;  %v2150_v13 = vld [vmem:[%s4148_s0 + $0x58] sm:$0xff] }
 0x20f   :  { %159 = vperm.xlu2 %2513, %v141_v54   ;;  %v2154_v54 = vld [vmem:[%s4148_s0 + $0x78] sm:$0xff] }
 0x211   :  { %2518 = vset.pattern.permute.xlu0 %v4211_v10 }
 0x212   :  { %1367 = vperm.xlu0 %2518, %v2941_v61   ;;  %v2592_v61 = vmov 11  }
 0x217   :  { %2517 = vset.pattern.permute.xlu2 %v4211_v10 }
 0x218   :  { %1383 = vperm.xlu2 %2517, %v2946_v31   ;;  %v3229_v31 = vld [vmem:[%s4146_s8 + $0x8] sm:$0xff] }
 0x21a   :  { %2521 = vset.pattern.permute.xlu0 %v2591_v51 }
 0x21b   :  { %1484 = vperm.xlu0 %2521, %v3196_v45   ;;  %2242 = vmatmul.msk.bf16.gmra.mxu0 %vm80_vm0, %v2430_v52 }
 0x220   :  { %1375 = vperm.xlu2 %2517, %v2934_v57  }
 0x223   :  { %2525 = vset.pattern.permute.xlu0 %v2592_v61 }
 0x224   :  { %1600 = vperm.xlu0 %2525, %v3229_v31  }
 0x228   :  { %1355 = vperm.xlu2 %2517, %v2960_v11   ;;  %v2432_v11 = vld [vmem:[%s4149_s5 + $0x38] sm:$0xff] }
 0x22b   :  { %2243 = vmatmul.msk.bf16.gmra.mxu0 %vm80_vm0, %v2431_v55 }
 0x22c   :  { %2529 = vset.pattern.permute.xlu0 %v2593_v34 }
 0x22d   :  { %754 = vperm.xlu0 %2529, %v3190_v25  }
 0x230   :  { %2519 = vset.pattern.permute.xlu2 %v2591_v51 }
 0x231   :  { %1476 = vperm.xlu2 %2519, %v3190_v25  }
 0x235   :  { %2533 = vset.pattern.permute.xlu0 %v2595_v15 }
 0x236   :  { %v131_v57 = vpop.xlane.xlu2 %130  ;;  %1071 = vperm.xlu0 %2533, %v3206_v33  }
 0x237   :  { %v139_v8 = vadd.f32 %v3229_v31, %v131_v57 }
 0x239   :  { %149 = vperm.xlu1 %2514, %v139_v8   ;;  %1488 = vperm.xlu2 %2519, %v3206_v33  }
 0x23b   :  { %2244 = vmatmul.msk.bf16.gmra.mxu0 %vm80_vm0, %v2432_v11 }
 0x23e   :  { %2538 = vset.pattern.permute.xlu0 %v2596_v19 }
 0x23f   :  { %1091 = vperm.xlu0 %2538, %v3190_v25  }
 0x241   :  { %2516 = vset.pattern.permute.xlu1 %v4211_v10  ;;  %2523 = vset.pattern.permute.xlu2 %v2594_v30 }
 0x242   :  { %1379 = vperm.xlu1 %2516, %v2922_v53   ;;  %1580 = vperm.xlu2 %2523, %v3229_v31  }
 0x24a   :  { %1371 = vperm.xlu1 %2516, %v2979_v22   ;;  %1584 = vperm.xlu2 %2523, %v3196_v45  }
 0x252   :  { %1363 = vperm.xlu1 %2516, %v2988_v20   ;;  %2527 = vset.pattern.permute.xlu2 %v2592_v61 }
 0x253   :  { %1604 = vperm.xlu2 %2527, %v3196_v45  }
 0x25a   :  { %1359 = vperm.xlu1 %2516, %v2994_v24  }
 0x25b   :  { %2530 = vset.pattern.permute.xlu2 %v2593_v34 }
 0x25c   :  { %758 = vperm.xlu2 %2530, %v3229_v31  }
 0x261   :  { %v145_v40 = vpop.permute.xlu2 %144 }
 0x262   :  { %2520 = vset.pattern.permute.xlu1 %v2591_v51  ;;  %v3313_v56 = vadd.f32 %v2147_v27, %v145_v40 }
 0x263   :  { %1480 = vperm.xlu1 %2520, %v3229_v31  }
 0x264   :  { %766 = vperm.xlu2 %2530, %v3206_v33   ;;  %v239_v52 = vmul.f32 %v3313_v56, %v3313_v56 }
 0x269   :  { %v3256_v53 = vpop.permute.xlu2 %159 }
 0x26a   :  { %v3348_v57 = vadd.f32 %v2154_v54, %v3256_v53 }
 0x26b   :  { %2522 = vset.pattern.permute.xlu1 %v2594_v30 }
 0x26c   :  { %1576 = vperm.xlu1 %2522, %v3190_v25   ;;  %2534 = vset.pattern.permute.xlu2 %v2596_v19 }
 0x26d   :  { %1099 = vperm.xlu2 %2534, %v3196_v45  }
 0x272   :  { %v3259_v22 = vpop.permute.xlu2 %1383 }
 0x274   :  { %2524 = vset.pattern.permute.xlu1 %v2592_v61 }
 0x275   :  { %1596 = vperm.xlu1 %2524, %v3190_v25   ;;  %2536 = vset.pattern.permute.xlu2 %v2595_v15 }
 0x276   :  { %1059 = vperm.xlu2 %2536, %v3190_v25   ;;  %v3315_v25 = vadd.f32 %v2148_v14, %v145_v40 }
 0x278   :  { %v3262_v20 = vpop.f32.mrf.mxu0  ;;  %v240_v51 = vmul.f32 %v3315_v25, %v3315_v25 }
 0x279   :  { %v814_v40 = vpop.f32.mrf.mxu1 }
 0x27a   :  { %v3264_v24 = vpop.permute.xlu2 %1375 }
 0x27b   :  { %v155_v12 = vpop.permute.xlu0 %154 }
 0x27c   :  { %v3317_v4 = vadd.f32 %v2151_v26, %v155_v12 }
 0x27d   :  { %2526 = vset.pattern.permute.xlu1 %v2594_v30 }
 0x27e   :  { %1588 = vperm.xlu1 %2526, %v3206_v33   ;;  %2539 = vset.pattern.permute.xlu2 %v2596_v19  ;;  %v247_v8 = vmul.f32 %v3317_v4, %v3317_v4 }
 0x27f   :  { %1095 = vperm.xlu2 %2539, %v3229_v31  }
 0x280   :  { %v3267_v16 = vpop.f32.mrf.mxu0 }
 0x281   :  { %v816_v2 = vpop.f32.mrf.mxu1 }
 0x282   :  { %v3269_v48 = vpop.permute.xlu2 %1355 }
 0x284   :  { %v3279_v29 = vpop.permute.xlu0 %1367 }
 0x286   :  { %2528 = vset.pattern.permute.xlu1 %v2592_v61 }
 0x287   :  { %1608 = vperm.xlu1 %2528, %v3206_v33  }
 0x288   :  { %v3272_v36 = vpop.f32.mrf.mxu0 }
 0x28b   :  { %v3274_v6 = vpop.permute.xlu2 %1476 }
 0x28d   :  { %v3289_v1 = vpop.permute.xlu0 %1484 }
 0x28f   :  { %2531 = vset.pattern.permute.xlu1 %v2593_v34 }
 0x290   :  { %762 = vperm.xlu1 %2531, %v3196_v45   ;;  %v3277_v39 = vpop.f32.mrf.mxu0 }
 0x293   :  { %v3282_v60 = vpop.permute.xlu2 %1488 }
 0x294   :  { %4212 = vst [vmem:[#allocation20_spill] sm:$0xff] %v3282_v60 }
 0x296   :  { %v3311_v62 = vpop.permute.xlu0 %1600 }
 0x297   :  { %4215 = vst [vmem:[#allocation23_spill] sm:$0xff] %v3311_v62 }
 0x298   :  { %2532 = vset.pattern.permute.xlu1 %v2595_v15  ;;  %v3284_v50 = vpop.f32.mrf.mxu0 }
 0x299   :  { %1067 = vperm.xlu1 %2532, %v3196_v45   ;;  %v3319_v45 = vadd.f32 %v2152_v0, %v155_v12 }
 0x29b   :  { %v248_v11 = vmul.f32 %v3319_v45, %v3319_v45 }
 0x29c   :  { %v3291_v28 = vpop.permute.xlu2 %1580 }
 0x29d   :  { %4213 = vst [vmem:[#allocation21_spill] sm:$0xff] %v3291_v28 }
 0x29f   :  { %v3365_v27 = vpop.permute.xlu0 %754 }
 0x2a0   :  { %v3293_v63 = vpop.f32.mrf.mxu0  ;;  %v815_v58 = vadd.f32 %v814_v40, %v3365_v27 }
 0x2a1   :  { %2535 = vset.pattern.permute.xlu1 %v2596_v19 }
 0x2a2   :  { %1103 = vperm.xlu1 %2535, %v3206_v33   ;;  %v2153_v33 = vld [vmem:[%s4148_s0 + $0x70] sm:$0xff] }
 0x2a3   :  { %v3345_v34 = vadd.f32 %v2153_v33, %v3256_v53 }
 0x2a4   :  { %v3296_v3 = vpop.permute.xlu2 %1584 }
 0x2a5   :  { %4214 = vst [vmem:[#allocation22_spill] sm:$0xff] %v3296_v3 }
 0x2a8   :  { %v3321_v21 = vpop.f32.mrf.mxu0 }
 0x2aa   :  { %2537 = vset.pattern.permute.xlu1 %v2595_v15 }
 0x2ab   :  { %v150_v10 = vpop.permute.xlu1 %149  ;;  %1063 = vperm.xlu1 %2537, %v3229_v31  }
 0x2ac   :  { %v3340_v61 = vadd.f32 %v2149_v32, %v150_v10  ;;  %v3342_v55 = vadd.f32 %v2150_v13, %v150_v10  ;;  %v251_v32 = vmul.f32 %v3345_v34, %v3345_v34  ;;  %v252_v13 = vmul.f32 %v3348_v57, %v3348_v57 }
 0x2ad   :  { %v3354_v30 = vpop.permute.xlu2 %1604 }
 0x2ae   :  { %4216 = vst [vmem:[#allocation24_spill] sm:$0xff] %v3354_v30  ;;  %v208_v12 = vadd.f32 %v3340_v61, %v3313_v56  ;;  %v217_v15 = vadd.f32 %v3342_v55, %v3315_v25  ;;  %v243_v53 = vmul.f32 %v3340_v61, %v3340_v61  ;;  %v244_v19 = vmul.f32 %v3342_v55, %v3342_v55 }
 0x2b0   :  { %v209_v14 = vadd.f32 %v208_v12, %v3317_v4  ;;  %v218_v26 = vadd.f32 %v217_v15, %v3319_v45  ;;  %v271_v31 = vadd.f32 %v243_v53, %v239_v52  ;;  %v280_v0 = vadd.f32 %v244_v19, %v240_v51  ;;  %v1439_v33 = vpop.f32.mrf.mxu0 }
 0x2b1   :  { %v796_v53 = vadd.f32 %v3262_v20, %v3365_v27 }
 0x2b2   :  { %v210_v54 = vadd.f32 %v209_v14, %v3345_v34  ;;  %v219_v10 = vadd.f32 %v218_v26, %v3348_v57  ;;  %v272_v30 = vadd.f32 %v271_v31, %v247_v8  ;;  %v281_v3 = vadd.f32 %v280_v0, %v248_v11 }
 0x2b3   :  { %v3381_v8 = vadd.f32 %v815_v58, %v2895_v41  ;;  %v3387_v20 = vadd.f32 %v796_v53, %v2887_v37 }
 0x2b4   :  { %v211_v12 = vrot.slane %v210_v54, 4  ;;  %v220_v62 = vrot.slane %v219_v10, 4  ;;  %v273_v15 = vadd.f32 %v272_v30, %v251_v32  ;;  %v282_v52 = vadd.f32 %v281_v3, %v252_v13  ;;  %v1380_v51 = vpop.permute.xlu1 %1379 }
 0x2b6   :  { %v212_v19 = vadd.f32 %v211_v12, %v210_v54  ;;  %v221_v28 = vadd.f32 %v220_v62, %v219_v10  ;;  %v274_v49 = vrot.slane %v273_v15, 4  ;;  %v283_v60 = vrot.slane %v282_v52, 4  ;;  %v3378_v14 = vpop.permute.xlu2 %758 }
 0x2b7   :  { %v798_v11 = vadd.f32 %v3267_v16, %v3378_v14  ;;  %v817_v30 = vadd.f32 %v816_v2, %v3378_v14  ;;  %v919_v2 = vmul.f32 %v3381_v8, %v3381_v8 }
 0x2b8   :  { %v213_v3 = vrot.slane %v212_v19, 2  ;;  %v222_v40 = vrot.slane %v221_v28, 2  ;;  %v275_v26 = vadd.f32 %v274_v49, %v273_v15  ;;  %v284_v31 = vadd.f32 %v283_v60, %v282_v52  ;;  %v1442_v41 = vpop.f32.mrf.mxu0 }
 0x2b9   :  { %v3390_v62 = vadd.f32 %v798_v11, %v2890_v38  ;;  %v3393_v0 = vadd.f32 %v817_v30, %v2898_v42  ;;  %v1443_v38 = vadd.f32 %v1442_v41, %v1380_v51  ;;  %v918_v51 = vmul.f32 %v3387_v20, %v3387_v20 }
 0x2ba   :  { %v214_v58 = vadd.f32 %v213_v3, %v212_v19  ;;  %v223_v32 = vadd.f32 %v222_v40, %v221_v28  ;;  %v276_v13 = vrot.slane %v275_v26, 2  ;;  %v285_v16 = vrot.slane %v284_v31, 2 }
 0x2bb   :  { %v3399_v49 = vadd.f32 %v3393_v0, %v3381_v8  ;;  %v923_v37 = vmul.f32 %v3393_v0, %v3393_v0  ;;  %v1440_v28 = vadd.f32 %v1439_v33, %v3264_v24  ;;  %v922_v15 = vmul.f32 %v3390_v62, %v3390_v62 }
 0x2bc   :  { %v215_v60 = vrot.slane %v214_v58, 1  ;;  %v224_v54 = vrot.slane %v223_v32, 1  ;;  %v277_v42 = vadd.f32 %v276_v13, %v275_v26  ;;  %v286_v10 = vadd.f32 %v285_v16, %v284_v31  ;;  %v1372_v12 = vpop.permute.xlu1 %1371 }
 0x2bd   :  { %v3406_v52 = vadd.f32 %v923_v37, %v919_v2  ;;  %v1438_v53 = vadd.f32 %v3321_v21, %v1372_v12  ;;  %v1435_v40 = vadd.f32 %v3293_v63, %v3279_v29  ;;  %v1461_v31 = vmul.f32 0.01, %v1443_v38 }
 0x2be   :  { %v216_v19 = vadd.f32 %v215_v60, %v214_v58  ;;  %v225_v11 = vadd.f32 %v224_v54, %v223_v32  ;;  %v278_v30 = vrot.slane %v277_v42, 1  ;;  %v287_v3 = vrot.slane %v286_v10, 1 }
 0x2bf   :  { %vm1453_vm14 = vcmp.ge.f32.partialorder %v1443_v38, 0.0  ;;  %v3421_v58 = vadd.f32 %v3390_v62, %v3387_v20  ;;  %v3423_v32 = vadd.f32 %v922_v15, %v918_v51  ;;  %v1460_v13 = vmul.f32 0.01, %v1440_v28 }
 0x2c0   :  { %v3414_v26 = vmul.f32 %v2823_v9, %v216_v19  ;;  %v279_v24 = vadd.f32 %v278_v30, %v277_v42  ;;  %v288_v33 = vadd.f32 %v287_v3, %v286_v10  ;;  %v3417_v41 = vmul.f32 %v2823_v9, %v225_v11  ;;  %v1444_v21 = vpop.f32.mrf.mxu0 }
 0x2c1   :  { %v1459_v16 = vmul.f32 0.01, %v1438_v53  ;;  %v1445_v29 = vadd.f32 %v1444_v21, %v3259_v22  ;;  %vm1452_vm15 = vcmp.ge.f32.partialorder %v1440_v28, 0.0  ;;  %vm1451_vm1 = vcmp.ge.f32.partialorder %v1438_v53, 0.0 }
 0x2c2   :  { %v291_v63 = vmul.f32 %v279_v24, %v2823_v9  ;;  %v295_v2 = vmul.f32 %v3414_v26, %v3414_v26  ;;  %v1469_v37 = vsel %vm1453_vm14, %v1443_v38, %v1461_v31  ;;  %v292_v42 = vmul.f32 %v288_v33, %v2823_v9 }
 0x2c3   :  { %vm1454_vm2 = vcmp.ge.f32.partialorder %v1445_v29, 0.0  ;;  %v1462_v60 = vmul.f32 0.01, %v1445_v29  ;;  %vm1450_vm3 = vcmp.ge.f32.partialorder %v1435_v40, 0.0  ;;  %v296_v22 = vmul.f32 %v3417_v41, %v3417_v41 }
 0x2c4   :  { %v1364_v54 = vpop.permute.xlu1 %1363  ;;  %v299_v12 = vsub.f32 %v291_v63, %v295_v2  ;;  %v1458_v15 = vmul.f32 0.01, %v1435_v40  ;;  %v1467_v11 = vsel %vm1451_vm1, %v1438_v53, %v1459_v16  ;;  %v1468_v30 = vsel %vm1452_vm15, %v1440_v28, %v1460_v13 }
 0x2c5   :  { %v1433_v10 = vadd.f32 %v3284_v50, %v1364_v54  ;;  %v1470_v19 = vsel %vm1454_vm2, %v1445_v29, %v1462_v60  ;;  %v300_v24 = vsub.f32 %v292_v42, %v296_v22  ;;  %v1428_v33 = vadd.f32 %v3272_v36, %v3269_v48 }
 0x2c6   :  { %v1474_v3 = vpack.c.bf16 %v1470_v19, %v1469_v37  ;;  %v319_v51 = vadd.f32 1e-05, %v299_v12  ;;  %v1473_v31 = vpack.c.bf16 %v1468_v30, %v1467_v11  ;;  %v1466_v21 = vsel %vm1450_vm3, %v1435_v40, %v1458_v15 }
 0x2c7   :  { %vm1449_vm4 = vcmp.ge.f32.partialorder %v1433_v10, 0.0  ;;  %v1457_v38 = vmul.f32 0.01, %v1433_v10  ;;  %v320_v63 = vadd.f32 1e-05, %v300_v24  ;;  %vm1447_vm5 = vcmp.ge.f32.partialorder %v1428_v33, 0.0 }
 0x2c8   :  { %1511 = vmatpush.bf16.msra.mxu1 %v1474_v3  ;;  %2555 = vrsqrt.f32 %v319_v51  ;;  %v1455_v53 = vmul.f32 0.01, %v1428_v33  ;;  %v311_v11 = vsub.f32 %v3317_v4, %v3414_v26  ;;  %vm347_vm9 = vweird.f32 %v319_v51 }
 0x2c9   :  { %v1465_v50 = vsel %vm1449_vm4, %v1433_v10, %v1457_v38  ;;  %2557 = vrsqrt.f32 %v320_v63  ;;  %v2433_v10 = vld [vmem:[%s4151_s6 + $0x10] sm:$0xff]  ;;  %v315_v3 = vsub.f32 %v3345_v34, %v3414_v26  ;;  %v303_v24 = vsub.f32 %v3313_v56, %v3414_v26 }
 0x2ca   :  { %v1472_v13 = vpack.c.bf16 %v1466_v21, %v1465_v50  ;;  %v1463_v48 = vsel %vm1447_vm5, %v1428_v33, %v1455_v53  ;;  %v307_v33 = vsub.f32 %v3340_v61, %v3414_v26  ;;  %vm357_vm12 = vweird.f32 %v320_v63 }
 0x2cb   :  { %v312_v34 = vsub.f32 %v3319_v45, %v3417_v41  ;;  %v316_v53 = vsub.f32 %v3348_v57, %v3417_v41  ;;  %v304_v61 = vsub.f32 %v3315_v25, %v3417_v41  ;;  %v4217_v57 = vld [vmem:[#allocation2_spill] sm:$0xff] }
 0x2cc   :  { %v1360_v2 = vpop.permute.xlu1 %1359  ;;  %1512 = vmatpush.bf16.msra.mxu1 %v1473_v31  ;;  %v308_v31 = vsub.f32 %v3342_v55, %v3417_v41 }
 0x2cd   :  { %v1430_v28 = vadd.f32 %v3277_v39, %v1360_v2 }
 0x2ce   :  { %v2556_v16 = vpop.eup %2555 }
 0x2cf   :  { %vm1448_vm6 = vcmp.ge.f32.partialorder %v1430_v28, 0.0  ;;  %v1456_v29 = vmul.f32 0.01, %v1430_v28  ;;  %v342_v37 = vmul.f32 %v2556_v16, %v319_v51  ;;  %v2558_v60 = vpop.eup %2557  ;;  %vm348_vm7 = vweird.f32 %v2556_v16 }
 0x2d0   :  { %1513 = vmatpush.bf16.msra.mxu1 %v1472_v13  ;;  %v352_v40 = vmul.f32 %v2558_v60, %v320_v63  ;;  %vm349_vm10 = vmor %vm347_vm9, %vm348_vm7  ;;  %vm358_vm11 = vweird.f32 %v2558_v60 }
 0x2d1   :  { %v1464_v36 = vsel %vm1448_vm6, %v1430_v28, %v1456_v29  ;;  %v343_v42 = vmul.f32 %v2556_v16, %v342_v37  ;;  %vm359_vm13 = vmor %vm357_vm12, %vm358_vm11 }
 0x2d2   :  { %v1471_v54 = vpack.c.bf16 %v1464_v36, %v1463_v48  ;;  %v353_v22 = vmul.f32 %v2558_v60, %v352_v40  ;;  %v4218_v36 = vld [vmem:[#allocation4_spill] sm:$0xff] }
 0x2d3   :  { %v344_v12 = vmul.f32 0.5, %v343_v42 }
 0x2d4   :  { %1514 = vmatpush.bf16.msra.mxu1 %v1471_v54  ;;  %v354_v19 = vmul.f32 0.5, %v353_v22  ;;  %v4221_v22 = vld [vmem:[#allocation3_spill] sm:$0xff] }
 0x2d5   :  { %v3441_v39 = vpop.permute.xlu1 %1480  ;;  %v345_v15 = vsub.f32 1.5, %v344_v12 }
 0x2d6   :  { %v355_v38 = vsub.f32 1.5, %v354_v19 }
 0x2d7   :  { %2253 = vmatmul.msk.bf16.vlgmr.msra.gmra.mxu1 %vm779_vm8, %v2433_v10  ;;  %v346_v30 = vmul.f32 %v2556_v16, %v345_v15  ;;  %v4220_v10 = vld [vmem:[#allocation5_spill] sm:$0xff] }
 0x2d8   :  { %v356_v51 = vmul.f32 %v2558_v60, %v355_v38 }
 0x2d9   :  { %v350_v50 = vsel %vm349_vm10, %v2556_v16, %v346_v30 }
 0x2da   :  { %v371_v4 = vmul.f32 %v350_v50, %v311_v11  ;;  %v375_v21 = vmul.f32 %v350_v50, %v315_v3  ;;  %v363_v2 = vmul.f32 %v350_v50, %v303_v24  ;;  %v367_v56 = vmul.f32 %v350_v50, %v307_v33  ;;  %v2573_v33 = vld [vmem:[%s4149_s5] sm:$0xff]  ;;  %v819_v50 = vpop.f32.mrf.mxu1 }
 0x2db   :  { %v360_v63 = vsel %vm359_vm13, %v2558_v60, %v356_v51 }
 0x2dc   :  { %v407_v26 = vmul.f32 %v2821_v43, %v371_v4  ;;  %v411_v55 = vmul.f32 %v2825_v18, %v375_v21  ;;  %v399_v28 = vmul.f32 %v2845_v46, %v363_v2  ;;  %v372_v16 = vmul.f32 %v360_v63, %v312_v34  ;;  %v2574_v21 = vld [vmem:[%s4149_s5 + $0x8] sm:$0xff] }
 0x2dd   :  { %v376_v29 = vmul.f32 %v360_v63, %v316_v53  ;;  %v403_v45 = vmul.f32 %v2860_v17, %v367_v56  ;;  %v364_v37 = vmul.f32 %v360_v63, %v304_v61  ;;  %v368_v25 = vmul.f32 %v360_v63, %v308_v31  ;;  %v4224_v53 = vld [vmem:[#allocation8_spill] sm:$0xff] }
 0x2de   :  { %v3463_v13 = vpop.permute.xlu1 %1576  ;;  %v3467_v48 = vadd.f32 %v4217_v57, %v407_v26  ;;  %v3470_v54 = vadd.f32 %v4218_v36, %v411_v55  ;;  %v408_v41 = vmul.f32 %v2821_v43, %v372_v16  ;;  %v3478_v12 = vadd.f32 %v4220_v10, %v399_v28  ;;  %v2575_v16 = vld [vmem:[%s4149_s5 + $0x10] sm:$0xff] }
 0x2df   :  { %v412_v60 = vmul.f32 %v2825_v18, %v376_v29  ;;  %v400_v42 = vmul.f32 %v2845_v46, %v364_v37  ;;  %v3481_v15 = vadd.f32 %v4221_v22, %v403_v45  ;;  %v404_v19 = vmul.f32 %v2860_v17, %v368_v25  ;;  %v2434_v17 = vld [vmem:[%s4151_s6 + $0x18] sm:$0xff] }
 0x2e0   :  { %4219 = vst [vmem:[#allocation2_spill] sm:$0xff] %v3470_v54  ;;  %v451_v40 = vpack.c.bf16 %v3470_v54, %v3467_v48  ;;  %v3485_v11 = vadd.f32 %v4217_v57, %v408_v41 }
 0x2e1   :  { %v3488_v43 = vadd.f32 %v4218_v36, %v412_v60  ;;  %v3493_v46 = vadd.f32 %v4220_v10, %v400_v42  ;;  %v3496_v30 = vadd.f32 %v4221_v22, %v404_v19  ;;  %v447_v3 = vpack.c.bf16 %v3481_v15, %v3478_v12 }
 0x2e2   :  { %589 = vmatpush.bf16.msra.mxu2 %v451_v40 }
 0x2e3   :  { %4222 = vst [vmem:[#allocation4_spill] sm:$0xff] %v3488_v43  ;;  %v452_v18 = vpack.c.bf16 %v3488_v43, %v3485_v11  ;;  %v448_v24 = vpack.c.bf16 %v3496_v30, %v3493_v46 }
 0x2e5   :  { %618 = vmatpush.bf16.msra.mxu3 %v452_v18 }
 0x2e6   :  { %590 = vmatpush.bf16.msra.mxu2 %v447_v3  ;;  %v2576_v3 = vld [vmem:[%s4149_s5 + $0x18] sm:$0xff] }
 0x2e7   :  { %v3503_v38 = vpop.permute.xlu1 %1596  ;;  %2254 = vmatmul.msk.bf16.gmra.mxu1 %vm779_vm8, %v2434_v17 }
 0x2e9   :  { %619 = vmatpush.bf16.msra.mxu3 %v448_v24  ;;  %2180 = vmatmul.msk.bf16.vlgmr.msra.gmra.mxu2 %vm80_vm0, %v2573_v33 }
 0x2ec   :  { %2184 = vmatmul.msk.bf16.vlgmr.msra.gmra.mxu3 %vm80_vm0, %v2573_v33 }
 0x2ed   :  { %2471 = vmatpush.bf16.msrb.mxu3 %v3130_v44  ;;  %v3526_v44 = vpop.permute.xlu2 %766 }
 0x2f0   :  { %v3515_v31 = vpop.permute.xlu1 %1588 }
 0x2f1   :  { %2472 = vmatpush.bf16.msrb.mxu3 %v3150_v35  ;;  %v821_v35 = vpop.f32.mrf.mxu1 }
 0x2f2   :  { %v822_v51 = vadd.f32 %v821_v35, %v3526_v44 }
 0x2f5   :  { %2473 = vmatpush.bf16.msrb.mxu3 %v3159_v7  ;;  %v3552_v35 = vpop.permute.xlu2 %1099 }
 0x2f9   :  { %2474 = vmatpush.bf16.msrb.mxu3 %v3171_v5  ;;  %v3519_v4 = vpop.permute.xlu1 %1608  ;;  %2181 = vmatmul.msk.bf16.gmra.mxu2 %vm80_vm0, %v2574_v21  ;;  %v4223_v5 = vld [vmem:[#allocation9_spill] sm:$0xff] }
 0x2fa   :  { %v875_v34 = vadd.f32 %v822_v51, %v4223_v5 }
 0x2fc   :  { %2185 = vmatmul.msk.bf16.gmra.mxu3 %vm80_vm0, %v2574_v21  ;;  %v931_v55 = vmul.f32 %v875_v34, %v875_v34 }
 0x302   :  { %v3529_v2 = vpop.permute.xlu1 %762 }
 0x303   :  { %v820_v7 = vadd.f32 %v819_v50, %v3529_v2 }
 0x305   :  { %v871_v56 = vadd.f32 %v820_v7, %v4224_v53  ;;  %v3556_v53 = vpop.permute.xlu2 %1059 }
 0x307   :  { %v888_v61 = vadd.f32 %v3399_v49, %v871_v56  ;;  %v927_v26 = vmul.f32 %v871_v56, %v871_v56 }
 0x309   :  { %v889_v63 = vadd.f32 %v888_v61, %v875_v34  ;;  %v944_v28 = vadd.f32 %v3406_v52, %v927_v26  ;;  %2182 = vmatmul.msk.bf16.gmra.mxu2 %vm80_vm0, %v2575_v16  ;;  %v3558_v61 = vpop.permute.xlu0 %1071 }
 0x30b   :  { %v890_v29 = vrot.slane %v889_v63, 4  ;;  %v945_v45 = vadd.f32 %v944_v28, %v931_v55  ;;  %v3549_v50 = vpop.permute.xlu1 %1067 }
 0x30c   :  { %2186 = vmatmul.msk.bf16.gmra.mxu3 %vm80_vm0, %v2575_v16 }
 0x30d   :  { %v891_v37 = vadd.f32 %v890_v29, %v889_v63  ;;  %v946_v57 = vrot.slane %v945_v45, 4 }
 0x30f   :  { %v892_v36 = vrot.slane %v891_v37, 2  ;;  %v947_v25 = vadd.f32 %v946_v57, %v945_v45 }
 0x311   :  { %v893_v49 = vadd.f32 %v892_v36, %v891_v37  ;;  %v948_v41 = vrot.slane %v947_v25, 2 }
 0x313   :  { %v894_v60 = vrot.slane %v893_v49, 1  ;;  %v949_v42 = vadd.f32 %v948_v41, %v947_v25  ;;  %v3564_v25 = vpop.permute.xlu2 %1095 }
 0x315   :  { %v895_v40 = vadd.f32 %v894_v60, %v893_v49  ;;  %v950_v52 = vrot.slane %v949_v42, 1  ;;  %v3566_v49 = vpop.permute.xlu0 %1091 }
 0x317   :  { %v951_v10 = vadd.f32 %v950_v52, %v949_v42  ;;  %v915_v22 = vmul.f32 %v895_v40, %v2823_v9 }
 0x319   :  { %v971_v19 = vmul.f32 %v951_v10, %v2823_v9  ;;  %v975_v18 = vmul.f32 %v915_v22, %v915_v22  ;;  %v983_v17 = vsub.f32 %v3381_v8, %v915_v22  ;;  %2183 = vmatmul.msk.bf16.gmra.mxu2 %vm80_vm0, %v2576_v3  ;;  %v987_v24 = vsub.f32 %v3393_v0, %v915_v22  ;;  %v3554_v8 = vpop.permute.xlu1 %1103  ;;  %v4232_v10 = vld [vmem:[#allocation21_spill] sm:$0xff] }
 0x31a   :  { %v991_v63 = vsub.f32 %v871_v56, %v915_v22  ;;  %v995_v28 = vsub.f32 %v875_v34, %v915_v22 }
 0x31b   :  { %v979_v33 = vsub.f32 %v971_v19, %v975_v18 }
 0x31c   :  { %2187 = vmatmul.msk.bf16.gmra.mxu3 %vm80_vm0, %v2576_v3 }
 0x31d   :  { %v999_v21 = vadd.f32 1e-05, %v979_v33  ;;  %v2377_v33 = vld [vmem:[%s4152_s10 + $0xe8] sm:$0xf] }
 0x31f   :  { %2559 = vrsqrt.f32 %v999_v21  ;;  %vm1018_vm15 = vweird.f32 %v999_v21 }
 0x321   :  { %v3562_v29 = vpop.permute.xlu1 %1063 }
 0x325   :  { %v2560_v51 = vpop.eup %2559 }
 0x326   :  { %v1013_v7 = vmul.f32 %v2560_v51, %v999_v21  ;;  %vm1019_vm14 = vweird.f32 %v2560_v51  ;;  %v2466_v21 = vld [vmem:[%s4152_s10 + $0xf4] sm:$0xf0] }
 0x327   :  { %vm1020_vm1 = vmor %vm1018_vm15, %vm1019_vm14 }
 0x328   :  { %v1014_v5 = vmul.f32 %v2560_v51, %v1013_v7  ;;  %v2378_v7 = vor.u32 %v2466_v21, %v2377_v33 }
 0x32a   :  { %v1015_v26 = vmul.f32 0.5, %v1014_v5  ;;  %1847 = vmatpush.bf16.msrb.mxu1 %v2378_v7 }
 0x32c   :  { %v1016_v0 = vsub.f32 1.5, %v1015_v26  ;;  %2197 = vmatmul.msk.bf16.vlgmr.msrb.gmra.mxu3 %vm779_vm8, %v3219_v59  ;;  %v2462_v26 = vld [vmem:[%s4152_s10 + $0xd4] sm:$0xf0] }
 0x32e   :  { %v1017_v55 = vmul.f32 %v2560_v51, %v1016_v0  ;;  %v4229_v0 = vld [vmem:[#allocation18_spill] sm:$0xff] }
 0x330   :  { %v1021_v16 = vsel %vm1020_vm1, %v2560_v51, %v1017_v55 }
 0x331   :  { %v1051_v45 = vmul.f32 %v1021_v16, %v991_v63  ;;  %v1043_v37 = vmul.f32 %v1021_v16, %v983_v17  ;;  %v1055_v57 = vmul.f32 %v1021_v16, %v995_v28  ;;  %v1047_v36 = vmul.f32 %v1021_v16, %v987_v24  ;;  %v2345_v16 = vld [vmem:[%s4152_s10 + $0xa8] sm:$0xf] }
 0x333   :  { %v1083_v41 = vmul.f32 %v3549_v50, %v1051_v45  ;;  %v1075_v59 = vmul.f32 %v3556_v53, %v1043_v37  ;;  %v1087_v60 = vmul.f32 %v3558_v61, %v1055_v57  ;;  %v1079_v56 = vmul.f32 %v3562_v29, %v1047_v36  ;;  %v2458_v45 = vld [vmem:[%s4152_s10 + $0xb4] sm:$0xf0]  ;;  %v4230_v36 = vld [vmem:[#allocation20_spill] sm:$0xff] }
 0x335   :  { %v3573_v34 = vadd.f32 %v3552_v35, %v1083_v41  ;;  %v3576_v42 = vadd.f32 %v3554_v8, %v1087_v60  ;;  %v3579_v40 = vadd.f32 %v3564_v25, %v1079_v56  ;;  %v3582_v52 = vadd.f32 %v3566_v49, %v1075_v59 }
 0x336   :  { %v2346_v59 = vor.u32 %v2458_v45, %v2345_v16 }
 0x337   :  { %4225 = vst [vmem:[#allocation5_spill] sm:$0xff] %v3573_v34 }
 0x338   :  { %4226 = vst [vmem:[#allocation3_spill] sm:$0xff] %v3576_v42 }
 0x339   :  { %4227 = vst [vmem:[#allocation9_spill] sm:$0xff] %v3579_v40 }
 0x33a   :  { %4228 = vst [vmem:[#allocation8_spill] sm:$0xff] %v3582_v52 }
 0x354   :  { %v1516_v19 = vpop.f32.mrf.mxu1 }
 0x355   :  { %v1517_v3 = vadd.f32 %v1516_v19, %v3274_v6  ;;  %v2361_v6 = vld [vmem:[%s4152_s10 + $0xc8] sm:$0xf] }
 0x35c   :  { %v1518_v18 = vpop.f32.mrf.mxu1 }
 0x35d   :  { %v1519_v17 = vadd.f32 %v1518_v18, %v3441_v39  ;;  %v3601_v39 = vadd.f32 %v1517_v3, %v3181_v23  ;;  %v4231_v18 = vld [vmem:[#allocation19_spill] sm:$0xff] }
 0x35e   :  { %v2329_v3 = vld [vmem:[%s4152_s10 + $0x88] sm:$0xf] }
 0x35f   :  { %v3598_v5 = vadd.f32 %v1519_v17, %v3175_v47  ;;  %v1540_v23 = vmul.f32 %v3601_v39, %v3601_v39 }
 0x361   :  { %v1541_v47 = vmul.f32 %v3598_v5, %v3598_v5  ;;  %v1530_v37 = vadd.f32 %v3598_v5, %v3601_v39 }
 0x363   :  { %v1544_v60 = vadd.f32 %v1541_v47, %v1540_v23  ;;  %v2450_v47 = vld [vmem:[%s4152_s10 + $0x74] sm:$0xf0] }
 0x364   :  { %v1521_v24 = vpop.f32.mrf.mxu1 }
 0x365   :  { %v1522_v51 = vadd.f32 %v1521_v24, %v3289_v1  ;;  %v2362_v1 = vor.u32 %v2462_v26, %v2361_v6  ;;  %v2454_v24 = vld [vmem:[%s4152_s10 + $0x94] sm:$0xf0] }
 0x366   :  { %v2330_v7 = vor.u32 %v2454_v24, %v2329_v3  ;;  %v2281_v24 = vld [vmem:[%s4152_s10 + $0x28] sm:$0xf] }
 0x367   :  { %v3610_v55 = vadd.f32 %v1522_v51, %v4229_v0  ;;  %1848 = vmatpush.bf16.msrb.mxu1 %v2362_v1  ;;  %v2313_v1 = vld [vmem:[%s4152_s10 + $0x68] sm:$0xf] }
 0x368   :  { %v2314_v16 = vor.u32 %v2450_v47, %v2313_v1 }
 0x369   :  { %v1542_v57 = vmul.f32 %v3610_v55, %v3610_v55  ;;  %v1531_v56 = vadd.f32 %v1530_v37, %v3610_v55 }
 0x36b   :  { %1849 = vmatpush.bf16.msrb.mxu1 %v2346_v59  ;;  %v1545_v33 = vadd.f32 %v1544_v60, %v1542_v57 }
 0x36c   :  { %v3616_v63 = vpop.f32.mrf.mxu2  ;;  %v1523_v28 = vpop.f32.mrf.mxu1 }
 0x36d   :  { %v1524_v41 = vadd.f32 %v1523_v28, %v4230_v36  ;;  %v2297_v36 = vld [vmem:[%s4152_s10 + $0x48] sm:$0xf] }
 0x36f   :  { %v3630_v19 = vpop.f32.mrf.mxu3  ;;  %v3633_v17 = vadd.f32 %v1524_v41, %v4231_v18  ;;  %1850 = vmatpush.bf16.msrb.mxu1 %v2330_v7  ;;  %v2446_v41 = vld [vmem:[%s4152_s10 + $0x54] sm:$0xf0] }
 0x371   :  { %v1532_v21 = vadd.f32 %v1531_v56, %v3633_v17  ;;  %v1543_v51 = vmul.f32 %v3633_v17, %v3633_v17  ;;  %v2298_v56 = vor.u32 %v2446_v41, %v2297_v36 }
 0x373   :  { %v1533_v6 = vrot.slane %v1532_v21, 4  ;;  %v1546_v26 = vadd.f32 %v1545_v33, %v1543_v51  ;;  %1851 = vmatpush.bf16.msrb.mxu1 %v2314_v16  ;;  %v2442_v33 = vld [vmem:[%s4152_s10 + $0x34] sm:$0xf0] }
 0x374   :  { %v3644_v0 = vpop.f32.mrf.mxu2  ;;  %v2282_v51 = vor.u32 %v2442_v33, %v2281_v24 }
 0x375   :  { %v1534_v23 = vadd.f32 %v1533_v6, %v1532_v21  ;;  %v1547_v28 = vrot.slane %v1546_v26, 4 }
 0x377   :  { %v1535_v45 = vrot.slane %v1534_v23, 2  ;;  %v1548_v37 = vadd.f32 %v1547_v28, %v1546_v26  ;;  %v3652_v57 = vpop.f32.mrf.mxu3  ;;  %1852 = vmatpush.bf16.msrb.mxu1 %v2298_v56  ;;  %v2438_v28 = vld [vmem:[%s4152_s10 + $0x14] sm:$0xf0] }
 0x379   :  { %v1536_v59 = vadd.f32 %v1535_v45, %v1534_v23  ;;  %v1549_v60 = vrot.slane %v1548_v37, 2  ;;  %v2265_v23 = vld [vmem:[%s4152_s10 + $0x8] sm:$0xf] }
 0x37b   :  { %v1537_v18 = vrot.slane %v1536_v59, 1  ;;  %v1550_v3 = vadd.f32 %v1549_v60, %v1548_v37  ;;  %1853 = vmatpush.bf16.msrb.mxu1 %v2282_v51  ;;  %v2266_v37 = vor.u32 %v2438_v28, %v2265_v23 }
 0x37c   :  { %v597_v21 = vpop.f32.mrf.mxu2 }
 0x37d   :  { %v1538_v7 = vadd.f32 %v1537_v18, %v1536_v59  ;;  %v1551_v6 = vrot.slane %v1550_v3, 1 }
 0x37f   :  { %v1539_v26 = vmul.f32 %v1538_v7, %v2823_v9  ;;  %v1552_v1 = vadd.f32 %v1551_v6, %v1550_v3  ;;  %v626_v47 = vpop.f32.mrf.mxu3  ;;  %1854 = vmatpush.bf16.msrb.mxu1 %v2266_v37 }
 0x381   :  { %v1553_v16 = vmul.f32 %v1552_v1, %v2823_v9  ;;  %v1554_v45 = vmul.f32 %v1539_v26, %v1539_v26  ;;  %v1556_v23 = vsub.f32 %v3601_v39, %v1539_v26  ;;  %v1557_v28 = vsub.f32 %v3598_v5, %v1539_v26  ;;  %v4235_v5 = vld [vmem:[#allocation15_spill] sm:$0xff] }
 0x383   :  { %v1555_v36 = vsub.f32 %v1553_v16, %v1554_v45 }
 0x384   :  { %v599_v41 = vpop.f32.mrf.mxu2 }
 0x385   :  { %v1560_v59 = vadd.f32 1e-05, %v1555_v36 }
 0x387   :  { %2561 = vrsqrt.f32 %v1560_v59  ;;  %v628_v60 = vpop.f32.mrf.mxu3  ;;  %vm1567_vm3 = vweird.f32 %v1560_v59 }
 0x38c   :  { %v602_v56 = vpop.f32.mrf.mxu2 }
 0x38d   :  { %v2562_v18 = vpop.eup %2561 }
 0x38e   :  { %v1562_v3 = vmul.f32 %v2562_v18, %v1560_v59  ;;  %vm1568_vm2 = vweird.f32 %v2562_v18 }
 0x38f   :  { %v631_v24 = vpop.f32.mrf.mxu3  ;;  %vm1569_vm4 = vmor %vm1567_vm3, %vm1568_vm2 }
 0x390   :  { %v1563_v33 = vmul.f32 %v2562_v18, %v1562_v3 }
 0x392   :  { %v1564_v51 = vmul.f32 0.5, %v1563_v33 }
 0x394   :  { %v1565_v7 = vsub.f32 1.5, %v1564_v51  ;;  %v604_v6 = vpop.f32.mrf.mxu2  ;;  %v4233_v51 = vld [vmem:[#allocation23_spill] sm:$0xff] }
 0x396   :  { %v1566_v22 = vmul.f32 %v2562_v18, %v1565_v7  ;;  %v4234_v7 = vld [vmem:[#allocation17_spill] sm:$0xff] }
 0x397   :  { %v633_v1 = vpop.f32.mrf.mxu3  ;;  %v3682_v59 = vadd.f32 %v3616_v63, %v4234_v7 }
 0x398   :  { %v1570_v16 = vsel %vm1569_vm4, %v2562_v18, %v1566_v22  ;;  %v1559_v22 = vsub.f32 %v3633_v17, %v1539_v26  ;;  %v3688_v18 = vadd.f32 %v599_v41, %v4235_v5  ;;  %v4239_v41 = vld [vmem:[#allocation16_spill] sm:$0xff] }
 0x399   :  { %v1571_v45 = vmul.f32 %v1570_v16, %v1556_v23  ;;  %v1572_v37 = vmul.f32 %v1570_v16, %v1557_v28  ;;  %v4238_v28 = vld [vmem:[#allocation12_spill] sm:$0xff]  ;;  %vm643_vm4 = vcmp.ge.f32.partialorder %v3682_v59, 0.0 }
 0x39a   :  { %v1574_v17 = vmul.f32 %v1570_v16, %v1559_v22  ;;  %vm655_vm13 = vcmp.ge.f32.partialorder %v3688_v18, 0.0 }
 0x39b   :  { %v1591_v36 = vmul.f32 %v3463_v13, %v1571_v45  ;;  %v1592_v52 = vmul.f32 %v4232_v10, %v1572_v37  ;;  %v4236_v13 = vld [vmem:[#allocation10_spill] sm:$0xff]  ;;  %v4237_v10 = vld [vmem:[#allocation11_spill] sm:$0xff]  ;;  %v605_v45 = vadd.f32 %v604_v6, %v4238_v28  ;;  %v3704_v37 = vadd.f32 %v3644_v0, %v4239_v41 }
 0x39c   :  { %v607_v3 = vpop.f32.mrf.mxu2  ;;  %v603_v63 = vadd.f32 %v602_v56, %v4237_v10  ;;  %v4241_v0 = vld [vmem:[#allocation14_spill] sm:$0xff] }
 0x39d   :  { %v1611_v33 = vadd.f32 %v3503_v38, %v1591_v36  ;;  %v1612_v40 = vadd.f32 %v4233_v51, %v1592_v52  ;;  %v608_v23 = vadd.f32 %v607_v3, %v4236_v13  ;;  %v1558_v38 = vsub.f32 %v3610_v55, %v1539_v26  ;;  %v4240_v26 = vld [vmem:[#allocation13_spill] sm:$0xff] }
 0x39e   :  { %v3694_v52 = vmul.f32 0.01, %v3682_v59  ;;  %v3708_v55 = vadd.f32 %v3652_v57, %v4239_v41  ;;  %v598_v3 = vadd.f32 %v597_v21, %v4240_v26  ;;  %v3712_v56 = vadd.f32 %v626_v47, %v4240_v26  ;;  %v4242_v26 = vld [vmem:[#allocation22_spill] sm:$0xff] }
 0x39f   :  { %v636_v34 = vpop.f32.mrf.mxu3  ;;  %v3684_v39 = vpack.c.bf16 %v1612_v40, %v1611_v33  ;;  %v3700_v40 = vadd.f32 %v3630_v19, %v4234_v7  ;;  %v1573_v36 = vmul.f32 %v1570_v16, %v1558_v38  ;;  %v687_v19 = vmul.f32 0.01, %v3688_v18 }
 0x3a0   :  { %v637_v6 = vadd.f32 %v636_v34, %v4236_v13  ;;  %v629_v51 = vadd.f32 %v628_v60, %v4235_v5  ;;  %v699_v7 = vmul.f32 0.01, %v608_v23  ;;  %v691_v16 = vmul.f32 0.01, %v603_v63 }
 0x3a1   :  { %1855 = vmatmul.bf16.vlgmr.msrb.gmra.mxu1 %v3684_v39  ;;  %v695_v38 = vmul.f32 0.01, %v605_v45  ;;  %v634_v57 = vadd.f32 %v633_v1, %v4238_v28  ;;  %vm667_vm5 = vcmp.ge.f32.partialorder %v608_v23, 0.0  ;;  %v1594_v21 = vmul.f32 %v3515_v31, %v1574_v17  ;;  %v4243_v17 = vld [vmem:[#allocation24_spill] sm:$0xff] }
 0x3a2   :  { %v1593_v34 = vmul.f32 %v4242_v26, %v1573_v36  ;;  %v632_v13 = vadd.f32 %v631_v24, %v4237_v10  ;;  %v700_v42 = vmul.f32 0.01, %v637_v6  ;;  %vm663_vm7 = vcmp.ge.f32.partialorder %v605_v45, 0.0 }
 0x3a3   :  { %vm668_vm9 = vcmp.ge.f32.partialorder %v637_v6, 0.0  ;;  %v731_v5 = vsel %vm667_vm5, %v608_v23, %v699_v7  ;;  %vm659_vm10 = vcmp.ge.f32.partialorder %v603_v63, 0.0  ;;  %v696_v43 = vmul.f32 0.01, %v634_v57 }
 0x3a4   :  { %v609_v33 = vpop.f32.mrf.mxu2  ;;  %vm664_vm12 = vcmp.ge.f32.partialorder %v634_v57, 0.0  ;;  %v727_v31 = vsel %vm663_vm7, %v605_v45, %v695_v38  ;;  %v1613_v54 = vadd.f32 %v4243_v17, %v1593_v34  ;;  %v1614_v36 = vadd.f32 %v3519_v4, %v1594_v21  ;;  %v2465_v34 = vld [vmem:[%s4152_s10 + $0xec] sm:$0xf0] }
 0x3a5   :  { %v610_v22 = vadd.f32 %v609_v33, %v4241_v0  ;;  %v692_v26 = vmul.f32 0.01, %v632_v13  ;;  %v732_v24 = vsel %vm668_vm9, %v637_v6, %v700_v42  ;;  %vm660_vm14 = vcmp.ge.f32.partialorder %v632_v13, 0.0 }
 0x3a6   :  { %v723_v7 = vsel %vm659_vm10, %v603_v63, %v691_v16  ;;  %vm651_vm15 = vcmp.ge.f32.partialorder %v598_v3, 0.0  ;;  %v679_v45 = vmul.f32 0.01, %v3704_v37  ;;  %vm656_vm1 = vcmp.ge.f32.partialorder %v629_v51, 0.0 }
 0x3a7   :  { %v703_v41 = vmul.f32 0.01, %v610_v22  ;;  %v638_v47 = vpop.f32.mrf.mxu3  ;;  %vm671_vm6 = vcmp.ge.f32.partialorder %v610_v22, 0.0  ;;  %v3728_v4 = vpack.c.bf16 %v1614_v36, %v1613_v54  ;;  %v719_v42 = vsel %vm655_vm13, %v3688_v18, %v687_v19 }
 0x3a8   :  { %v639_v60 = vadd.f32 %v638_v47, %v4241_v0  ;;  %v683_v0 = vmul.f32 0.01, %v598_v3  ;;  %v728_v47 = vsel %vm664_vm12, %v634_v57, %v696_v43  ;;  %v684_v6 = vmul.f32 0.01, %v3712_v56  ;;  %v2369_v57 = vld [vmem:[%s4152_s10 + $0xe0] sm:$0xf] }
 0x3a9   :  { %v735_v33 = vsel %vm671_vm6, %v610_v22, %v703_v41  ;;  %v688_v22 = vmul.f32 0.01, %v629_v51  ;;  %v747_v41 = vpack.c.bf16 %v727_v31, %v723_v7  ;;  %v724_v63 = vsel %vm660_vm14, %v632_v13, %v692_v26  ;;  %v2371_v31 = vld [vmem:[%s4152_s10 + $0xf0] sm:$0xf0]  ;;  %v2459_v7 = vld [vmem:[%s4152_s10 + $0xc4] sm:$0xf] }
 0x3aa   :  { %vm672_vm11 = vcmp.ge.f32.partialorder %v639_v60, 0.0  ;;  %v704_v1 = vmul.f32 0.01, %v639_v60  ;;  %v751_v28 = vpack.c.bf16 %v735_v33, %v731_v5  ;;  %vm647_vm2 = vcmp.ge.f32.partialorder %v3704_v37, 0.0 }
 0x3ab   :  { %vm652_vm3 = vcmp.ge.f32.partialorder %v3712_v56, 0.0  ;;  %v748_v43 = vpack.c.bf16 %v728_v47, %v724_v63  ;;  %v715_v16 = vsel %vm651_vm15, %v598_v3, %v683_v0  ;;  %v680_v54 = vmul.f32 0.01, %v3708_v55  ;;  %v4245_v47 = vld [vmem:[#allocation7_spill] sm:$0xff] }
 0x3ac   :  { %v736_v10 = vsel %vm672_vm11, %v639_v60, %v704_v1  ;;  %828 = vmatpush.bf16.msrb.mxu2 %v751_v28  ;;  %v743_v18 = vpack.c.bf16 %v719_v42, %v715_v16  ;;  %v720_v19 = vsel %vm656_vm1, %v629_v51, %v688_v22  ;;  %vm648_vm5 = vcmp.ge.f32.partialorder %v3708_v55, 0.0  ;;  %v4244_v60 = vld [vmem:[#allocation6_spill] sm:$0xff]  ;;  %v2355_v22 = vld [vmem:[%s4152_s10 + $0xd0] sm:$0xf0] }
 0x3ad   :  { %v752_v23 = vpack.c.bf16 %v736_v10, %v732_v24  ;;  %v711_v3 = vsel %vm647_vm2, %v3704_v37, %v679_v45  ;;  %v676_v13 = vmul.f32 0.01, %v3700_v40  ;;  %v716_v51 = vsel %vm652_vm3, %v3712_v56, %v684_v6  ;;  %v2463_v37 = vld [vmem:[%s4152_s10 + $0xe4] sm:$0xf]  ;;  %v2353_v56 = vld [vmem:[%s4152_s10 + $0xc0] sm:$0xf] }
 0x3ae   :  { %vm644_vm6 = vcmp.ge.f32.partialorder %v3700_v40, 0.0  ;;  %v744_v33 = vpack.c.bf16 %v720_v19, %v716_v51  ;;  %v707_v1 = vsel %vm643_vm4, %v3682_v59, %v3694_v52  ;;  %v2370_v28 = vor.u32 %v2465_v34, %v2369_v57  ;;  %v2461_v59 = vld [vmem:[%s4152_s10 + $0xcc] sm:$0xf0]  ;;  %v2577_v42 = vld [vmem:[%s4151_s6] sm:$0xff] }
 0x3af   :  { %v800_v38 = vpop.f32.mrf.mxu3  ;;  %847 = vmatpush.bf16.msra.mxu3 %v752_v23  ;;  %v739_v17 = vpack.c.bf16 %v711_v3, %v707_v1  ;;  %v712_v36 = vsel %vm648_vm5, %v3708_v55, %v680_v54  ;;  %v708_v10 = vsel %vm644_vm6, %v3700_v40, %v676_v13  ;;  %v2374_v0 = vor.u32 %v2463_v37, %v2371_v31  ;;  %v2337_v40 = vld [vmem:[%s4152_s10 + $0xa0] sm:$0xf]  ;;  %v2455_v16 = vld [vmem:[%s4152_s10 + $0xa4] sm:$0xf]  ;;  %v2339_v54 = vld [vmem:[%s4152_s10 + $0xb0] sm:$0xf0] }
 0x3b0   :  { %v801_v21 = vadd.f32 %v800_v38, %v3529_v2  ;;  %829 = vmatpush.bf16.msrb.mxu2 %v747_v41  ;;  %v740_v55 = vpack.c.bf16 %v712_v36, %v708_v10  ;;  %v2354_v23 = vor.u32 %v2461_v59, %v2353_v56  ;;  %v2457_v38 = vld [vmem:[%s4152_s10 + $0xac] sm:$0xf0]  ;;  %v2358_v63 = vor.u32 %v2459_v7, %v2355_v22  ;;  %v2451_v51 = vld [vmem:[%s4152_s10 + $0x84] sm:$0xf]  ;;  %v2305_v37 = vld [vmem:[%s4152_s10 + $0x60] sm:$0xf] }
 0x3b1   :  { %1860 = vmatmul.bf16.gmra.mxu1 %v3728_v4  ;;  %v2453_v57 = vld [vmem:[%s4152_s10 + $0x8c] sm:$0xf0]  ;;  %v2342_v13 = vor.u32 %v2455_v16, %v2339_v54 }
 0x3b2   :  { %v3750_v5 = vadd.f32 %v801_v21, %v4244_v60  ;;  %v2449_v31 = vld [vmem:[%s4152_s10 + $0x6c] sm:$0xf0] }
 0x3b3   :  { %848 = vmatpush.bf16.msra.mxu3 %v748_v43  ;;  %v2338_v43 = vor.u32 %v2457_v38, %v2337_v40  ;;  %v2306_v59 = vor.u32 %v2449_v31, %v2305_v37  ;;  %v2291_v40 = vld [vmem:[%s4152_s10 + $0x50] sm:$0xf0]  ;;  %v2460_v31 = vld [vmem:[%s4152_s10 + $0xcc] sm:$0xf] }
 0x3b4   :  { %830 = vmatpush.bf16.msrb.mxu2 %v743_v18  ;;  %v926_v26 = vmul.f32 %v3750_v5, %v3750_v5  ;;  %v879_v41 = vadd.f32 %v3421_v58, %v3750_v5 }
 0x3b6   :  { %v935_v58 = vadd.f32 %v3423_v32, %v926_v26  ;;  %v2321_v32 = vld [vmem:[%s4152_s10 + $0x80] sm:$0xf]  ;;  %v2307_v26 = vld [vmem:[%s4152_s10 + $0x70] sm:$0xf0] }
 0x3b7   :  { %v802_v52 = vpop.f32.mrf.mxu3  ;;  %849 = vmatpush.bf16.msra.mxu3 %v744_v33  ;;  %v2322_v60 = vor.u32 %v2453_v57, %v2321_v32  ;;  %v2323_v33 = vld [vmem:[%s4152_s10 + $0x90] sm:$0xf0] }
 0x3b8   :  { %v803_v24 = vadd.f32 %v802_v52, %v3526_v44  ;;  %831 = vmatpush.bf16.msrb.mxu2 %v739_v17  ;;  %v2326_v56 = vor.u32 %v2451_v51, %v2323_v33  ;;  %v2447_v52 = vld [vmem:[%s4152_s10 + $0x64] sm:$0xf] }
 0x3b9   :  { %v2310_v22 = vor.u32 %v2447_v52, %v2307_v26  ;;  %v2347_v52 = vld [vmem:[%s4152_s10 + $0xb8] sm:$0xf0] }
 0x3ba   :  { %v3784_v45 = vadd.f32 %v803_v24, %v4245_v47  ;;  %v2443_v47 = vld [vmem:[%s4152_s10 + $0x44] sm:$0xf] }
 0x3bb   :  { %850 = vmatpush.bf16.msra.mxu3 %v740_v55  ;;  %2200 = vmatmul.msk.bf16.vlgmr.msrb.gmra.mxu2 %vm779_vm8, %v2577_v42  ;;  %v2445_v55 = vld [vmem:[%s4152_s10 + $0x4c] sm:$0xf0]  ;;  %v2294_v16 = vor.u32 %v2443_v47, %v2291_v40  ;;  %v2448_v47 = vld [vmem:[%s4152_s10 + $0x6c] sm:$0xf]  ;;  %v2315_v40 = vld [vmem:[%s4152_s10 + $0x78] sm:$0xf0] }
 0x3bc   :  { %1809 = vmatpush.bf16.msra.mxu2 %v2370_v28  ;;  %v880_v6 = vadd.f32 %v879_v41, %v3784_v45  ;;  %v930_v21 = vmul.f32 %v3784_v45, %v3784_v45 }
 0x3be   :  { %v881_v18 = vrot.slane %v880_v6, 4  ;;  %v936_v19 = vadd.f32 %v935_v58, %v930_v21  ;;  %2202 = vmatmul.msk.bf16.vlgmr.msra.gmra.mxu3 %vm779_vm8, %v2577_v42  ;;  %v2273_v58 = vld [vmem:[%s4152_s10 + $0x20] sm:$0xf]  ;;  %v2578_v21 = vld [vmem:[%s4151_s6 + $0x8] sm:$0xff] }
 0x3bf   :  { %1828 = vmatpush.bf16.msrb.mxu3 %v2374_v0  ;;  %v2289_v0 = vld [vmem:[%s4152_s10 + $0x40] sm:$0xf] }
 0x3c0   :  { %1810 = vmatpush.bf16.msra.mxu2 %v2354_v23  ;;  %v882_v34 = vadd.f32 %v881_v18, %v880_v6  ;;  %v937_v3 = vrot.slane %v936_v19, 4  ;;  %v2290_v41 = vor.u32 %v2445_v55, %v2289_v0  ;;  %v2441_v6 = vld [vmem:[%s4152_s10 + $0x2c] sm:$0xf0]  ;;  %v2439_v18 = vld [vmem:[%s4152_s10 + $0x24] sm:$0xf] }
 0x3c1   :  { %v2274_v54 = vor.u32 %v2441_v6, %v2273_v58  ;;  %v2452_v55 = vld [vmem:[%s4152_s10 + $0x8c] sm:$0xf]  ;;  %v2318_v6 = vor.u32 %v2448_v47, %v2315_v40 }
 0x3c2   :  { %v883_v1 = vrot.slane %v882_v34, 2  ;;  %v938_v28 = vadd.f32 %v937_v3, %v936_v19  ;;  %v2275_v19 = vld [vmem:[%s4152_s10 + $0x30] sm:$0xf0]  ;;  %v2257_v3 = vld [vmem:[%s4152_s10] sm:$0xf] }
 0x3c3   :  { %1829 = vmatpush.bf16.msrb.mxu3 %v2358_v63  ;;  %v2278_v51 = vor.u32 %v2439_v18, %v2275_v19 }
 0x3c4   :  { %1811 = vmatpush.bf16.msra.mxu2 %v2338_v43  ;;  %v884_v17 = vadd.f32 %v883_v1, %v882_v34  ;;  %v939_v36 = vrot.slane %v938_v28, 2  ;;  %v2435_v1 = vld [vmem:[%s4152_s10 + $0x4] sm:$0xf] }
 0x3c6   :  { %v885_v24 = vrot.slane %v884_v17, 1  ;;  %v940_v10 = vadd.f32 %v939_v36, %v938_v28  ;;  %v2259_v28 = vld [vmem:[%s4152_s10 + $0x10] sm:$0xf0] }
 0x3c7   :  { %1830 = vmatpush.bf16.msrb.mxu3 %v2342_v13  ;;  %v2437_v13 = vld [vmem:[%s4152_s10 + $0xc] sm:$0xf0]  ;;  %v2262_v36 = vor.u32 %v2435_v1, %v2259_v28 }
 0x3c8   :  { %1812 = vmatpush.bf16.msra.mxu2 %v2322_v60  ;;  %v886_v23 = vadd.f32 %v885_v24, %v884_v17  ;;  %v941_v7 = vrot.slane %v940_v10, 1  ;;  %v2464_v60 = vld [vmem:[%s4152_s10 + $0xec] sm:$0xf]  ;;  %v2258_v33 = vor.u32 %v2437_v13, %v2257_v3  ;;  %v2363_v17 = vld [vmem:[%s4152_s10 + $0xd8] sm:$0xf0] }
 0x3ca   :  { %v3844_v38 = vmul.f32 %v886_v23, %v2823_v9  ;;  %v942_v42 = vadd.f32 %v941_v7, %v940_v10  ;;  %v2331_v23 = vld [vmem:[%s4152_s10 + $0x98] sm:$0xf0] }
 0x3cb   :  { %1831 = vmatpush.bf16.msrb.mxu3 %v2326_v56  ;;  %2201 = vmatmul.msk.bf16.gmra.mxu2 %vm779_vm8, %v2578_v21  ;;  %v2366_v56 = vor.u32 %v2460_v31, %v2363_v17  ;;  %v2267_v31 = vld [vmem:[%s4152_s10 + $0x18] sm:$0xf0] }
 0x3cc   :  { %1813 = vmatpush.bf16.msra.mxu2 %v2306_v59  ;;  %v970_v63 = vmul.f32 %v942_v42, %v2823_v9  ;;  %v974_v43 = vmul.f32 %v3844_v38, %v3844_v38  ;;  %v982_v32 = vsub.f32 %v3387_v20, %v3844_v38  ;;  %v986_v57 = vsub.f32 %v3390_v62, %v3844_v38  ;;  %v2379_v20 = vld [vmem:[%s4152_s10 + $0xf8] sm:$0xf0]  ;;  %v2456_v59 = vld [vmem:[%s4152_s10 + $0xac] sm:$0xf] }
 0x3cd   :  { %v2382_v37 = vor.u32 %v2464_v60, %v2379_v20  ;;  %v2350_v10 = vor.u32 %v2456_v59, %v2347_v52  ;;  %v994_v58 = vsub.f32 %v3784_v45, %v3844_v38 }
 0x3ce   :  { %v978_v34 = vsub.f32 %v970_v63, %v974_v43  ;;  %2203 = vmatmul.msk.bf16.gmra.mxu3 %vm779_vm8, %v2578_v21  ;;  %v2444_v21 = vld [vmem:[%s4152_s10 + $0x4c] sm:$0xf]  ;;  %v2299_v63 = vld [vmem:[%s4152_s10 + $0x58] sm:$0xf0]  ;;  %v990_v43 = vsub.f32 %v3750_v5, %v3844_v38 }
 0x3cf   :  { %1832 = vmatpush.bf16.msrb.mxu3 %v2310_v22  ;;  %v2334_v22 = vor.u32 %v2452_v55, %v2331_v23  ;;  %v2302_v45 = vor.u32 %v2444_v21, %v2299_v63  ;;  %v2283_v5 = vld [vmem:[%s4152_s10 + $0x38] sm:$0xf0] }
 0x3d0   :  { %1814 = vmatpush.bf16.msra.mxu2 %v2290_v41  ;;  %v998_v62 = vadd.f32 1e-05, %v978_v34 }
 0x3d2   :  { %2563 = vrsqrt.f32 %v998_v62  ;;  %vm1008_vm7 = vweird.f32 %v998_v62 }
 0x3d3   :  { %1833 = vmatpush.bf16.msrb.mxu3 %v2294_v16 }
 0x3d4   :  { %1815 = vmatpush.bf16.msra.mxu2 %v2274_v54 }
 0x3d7   :  { %1834 = vmatpush.bf16.msrb.mxu3 %v2278_v51 }
 0x3d8   :  { %1816 = vmatpush.bf16.msra.mxu2 %v2258_v33  ;;  %v2564_v26 = vpop.eup %2563 }
 0x3d9   :  { %v1003_v24 = vmul.f32 %v2564_v26, %v998_v62  ;;  %vm1009_vm8 = vweird.f32 %v2564_v26  ;;  %v2440_v62 = vld [vmem:[%s4152_s10 + $0x2c] sm:$0xf] }
 0x3da   :  { %vm1010_vm9 = vmor %vm1008_vm7, %vm1009_vm8  ;;  %v2286_v33 = vor.u32 %v2440_v62, %v2283_v5 }
 0x3db   :  { %1835 = vmatpush.bf16.msrb.mxu3 %v2262_v36  ;;  %v1004_v0 = vmul.f32 %v2564_v26, %v1003_v24  ;;  %1817 = vmatmul.bf16.vlgmr.msra.gmra.mxu2 %v3684_v39 }
 0x3dc   :  { %1866 = vmatpush.bf16.msrb.mxu2 %v2382_v37  ;;  %v2436_v37 = vld [vmem:[%s4152_s10 + $0xc] sm:$0xf] }
 0x3dd   :  { %v1005_v7 = vmul.f32 0.5, %v1004_v0  ;;  %v2270_v17 = vor.u32 %v2436_v37, %v2267_v31  ;;  %v4247_v37 = vld [vmem:[#allocation4_spill] sm:$0xff] }
 0x3de   :  { %1836 = vmatmul.bf16.vlgmr.msrb.gmra.mxu3 %v3684_v39 }
 0x3df   :  { %v1006_v41 = vsub.f32 1.5, %v1005_v7 }
 0x3e0   :  { %1867 = vmatpush.bf16.msrb.mxu2 %v2366_v56 }
 0x3e1   :  { %v1007_v42 = vmul.f32 %v2564_v26, %v1006_v41 }
 0x3e3   :  { %v1011_v16 = vsel %vm1010_vm9, %v2564_v26, %v1007_v42 }
 0x3e4   :  { %1868 = vmatpush.bf16.msrb.mxu2 %v2350_v10  ;;  %v1054_v54 = vmul.f32 %v1011_v16, %v994_v58  ;;  %v1050_v18 = vmul.f32 %v1011_v16, %v990_v43  ;;  %v1042_v19 = vmul.f32 %v1011_v16, %v982_v32  ;;  %v1046_v34 = vmul.f32 %v1011_v16, %v986_v57 }
 0x3e6   :  { %v1086_v3 = vmul.f32 %v3558_v61, %v1054_v54  ;;  %v1082_v13 = vmul.f32 %v3549_v50, %v1050_v18  ;;  %v1074_v60 = vmul.f32 %v3556_v53, %v1042_v19  ;;  %v1078_v20 = vmul.f32 %v3562_v29, %v1046_v34 }
 0x3e8   :  { %1869 = vmatpush.bf16.msrb.mxu2 %v2334_v22  ;;  %v3935_v38 = vadd.f32 %v3552_v35, %v1082_v13  ;;  %v3938_v32 = vadd.f32 %v3554_v8, %v1086_v3  ;;  %v3941_v57 = vadd.f32 %v3566_v49, %v1074_v60  ;;  %v3944_v51 = vadd.f32 %v3564_v25, %v1078_v20 }
 0x3ea   :  { %v1893_v1 = vpack.c.bf16 %v3938_v32, %v3935_v38  ;;  %v1889_v28 = vpack.c.bf16 %v3944_v51, %v3941_v57 }
 0x3eb   :  { %1822 = vmatmul.bf16.gmra.mxu2 %v3728_v4 }
 0x3ec   :  { %1870 = vmatpush.bf16.msrb.mxu2 %v2318_v6 }
 0x3ee   :  { %1841 = vmatmul.bf16.gmra.mxu3 %v3728_v4 }
 0x3f0   :  { %1871 = vmatpush.bf16.msrb.mxu2 %v2302_v45 }
 0x3f4   :  { %1872 = vmatpush.bf16.msrb.mxu2 %v2286_v33 }
 0x3f8   :  { %1873 = vmatpush.bf16.msrb.mxu2 %v2270_v17 }
 0x3fb   :  { %1874 = vmatmul.bf16.vlgmr.msrb.gmra.mxu2 %v3684_v39 }
 0x40b   :  { %1879 = vmatmul.bf16.gmra.mxu2 %v3728_v4 }
 0x41e   :  { %v1856_v36 = vpop.f32.mrf.mxu1 }
 0x426   :  { %v1858_v56 = vpop.f32.mrf.mxu1 }
 0x427   :  { %v1904_v24 = vpack.c.bf16 %v1858_v56, %v1856_v36 }
 0x42e   :  { %v1861_v59 = vpop.f32.mrf.mxu1 }
 0x436   :  { %v1863_v52 = vpop.f32.mrf.mxu1 }
 0x437   :  { %v1908_v26 = vpack.c.bf16 %v1863_v52, %v1861_v59 }
 0x439   :  { %1970 = vmatpush.bf16.msra.mxu1 %v1908_v26 }
 0x43d   :  { %1971 = vmatpush.bf16.msra.mxu1 %v1904_v24 }
 0x43e   :  { %v833_v10 = vpop.f32.mrf.mxu2 }
 0x43f   :  { %v834_v41 = vadd.f32 %v833_v10, %v3365_v27 }
 0x441   :  { %v852_v0 = vpop.f32.mrf.mxu3  ;;  %v3970_v6 = vadd.f32 %v834_v41, %v3478_v12 }
 0x442   :  { %v853_v42 = vadd.f32 %v852_v0, %v3365_v27 }
 0x443   :  { %v920_v12 = vmul.f32 %v3970_v6, %v3970_v6 }
 0x446   :  { %v835_v55 = vpop.f32.mrf.mxu2 }
 0x447   :  { %v836_v7 = vadd.f32 %v835_v55, %v3378_v14 }
 0x449   :  { %v854_v23 = vpop.f32.mrf.mxu3  ;;  %v3965_v47 = vadd.f32 %v836_v7, %v3481_v15  ;;  %v3981_v15 = vadd.f32 %v853_v42, %v3493_v46 }
 0x44a   :  { %v855_v4 = vadd.f32 %v854_v23, %v3378_v14 }
 0x44b   :  { %v924_v14 = vmul.f32 %v3965_v47, %v3965_v47  ;;  %v921_v34 = vmul.f32 %v3981_v15, %v3981_v15 }
 0x44c   :  { %v3976_v63 = vadd.f32 %v855_v4, %v3496_v30 }
 0x44d   :  { %v952_v46 = vadd.f32 %v924_v14, %v920_v12 }
 0x44e   :  { %v838_v22 = vpop.f32.mrf.mxu2  ;;  %v925_v16 = vmul.f32 %v3976_v63, %v3976_v63  ;;  %v905_v45 = vadd.f32 %v3976_v63, %v3981_v15 }
 0x44f   :  { %v839_v39 = vadd.f32 %v838_v22, %v3529_v2  ;;  %v4019_v22 = vld [vmem:[%s4153_s7 + $0x10] sm:$0xff] }
 0x450   :  { %v961_v5 = vadd.f32 %v925_v16, %v921_v34  ;;  %2399 = vmatmul.msk.bf16.vlgmr.msra.gmra.mxu1 %vm80_vm0, %v4019_v22 }
 0x451   :  { %v857_v40 = vpop.f32.mrf.mxu3  ;;  %v3973_v21 = vadd.f32 %v839_v39, %v3467_v48  ;;  %v896_v48 = vadd.f32 %v3965_v47, %v3970_v6 }
 0x452   :  { %v858_v58 = vadd.f32 %v857_v40, %v3529_v2 }
 0x453   :  { %v928_v30 = vmul.f32 %v3973_v21, %v3973_v21  ;;  %v897_v54 = vadd.f32 %v896_v48, %v3973_v21 }
 0x454   :  { %v3984_v43 = vadd.f32 %v858_v58, %v3485_v11  ;;  %v4246_v11 = vld [vmem:[#allocation2_spill] sm:$0xff] }
 0x455   :  { %v953_v60 = vadd.f32 %v952_v46, %v928_v30 }
 0x456   :  { %v840_v27 = vpop.f32.mrf.mxu2  ;;  %v929_v3 = vmul.f32 %v3984_v43, %v3984_v43  ;;  %v906_v33 = vadd.f32 %v905_v45, %v3984_v43 }
 0x457   :  { %v841_v2 = vadd.f32 %v840_v27, %v3526_v44 }
 0x458   :  { %v962_v56 = vadd.f32 %v961_v5, %v929_v3 }
 0x459   :  { %v3997_v18 = vadd.f32 %v841_v2, %v4246_v11  ;;  %v859_v19 = vpop.f32.mrf.mxu3 }
 0x45a   :  { %v860_v13 = vadd.f32 %v859_v19, %v3526_v44 }
 0x45b   :  { %v898_v20 = vadd.f32 %v897_v54, %v3997_v18  ;;  %v932_v62 = vmul.f32 %v3997_v18, %v3997_v18 }
 0x45c   :  { %v4011_v31 = vadd.f32 %v860_v13, %v4247_v37 }
 0x45d   :  { %v899_v17 = vrot.slane %v898_v20, 4  ;;  %v954_v36 = vadd.f32 %v953_v60, %v932_v62 }
 0x45e   :  { %v907_v59 = vadd.f32 %v906_v33, %v4011_v31  ;;  %v933_v44 = vmul.f32 %v4011_v31, %v4011_v31  ;;  %v1818_v52 = vpop.f32.mrf.mxu2 }
 0x45f   :  { %v900_v26 = vadd.f32 %v899_v17, %v898_v20  ;;  %v955_v24 = vrot.slane %v954_v36, 4 }
 0x460   :  { %v908_v10 = vrot.slane %v907_v59, 4  ;;  %v963_v0 = vadd.f32 %v962_v56, %v933_v44  ;;  %v4034_v44 = vld [vmem:[%s4153_s7 + $0x18] sm:$0xff] }
 0x461   :  { %v901_v55 = vrot.slane %v900_v26, 2  ;;  %v956_v23 = vadd.f32 %v955_v24, %v954_v36  ;;  %v1837_v7 = vpop.f32.mrf.mxu3  ;;  %2400 = vmatmul.msk.bf16.gmra.mxu1 %vm80_vm0, %v4034_v44 }
 0x462   :  { %v909_v41 = vadd.f32 %v908_v10, %v907_v59  ;;  %v964_v39 = vrot.slane %v963_v0, 4 }
 0x463   :  { %v902_v4 = vadd.f32 %v901_v55, %v900_v26  ;;  %v957_v40 = vrot.slane %v956_v23, 2 }
 0x464   :  { %v910_v42 = vrot.slane %v909_v41, 2  ;;  %v965_v58 = vadd.f32 %v964_v39, %v963_v0 }
 0x465   :  { %v903_v14 = vrot.slane %v902_v4, 1  ;;  %v958_v27 = vadd.f32 %v957_v40, %v956_v23 }
 0x466   :  { %v911_v12 = vadd.f32 %v910_v42, %v909_v41  ;;  %v966_v48 = vrot.slane %v965_v58, 2  ;;  %v1820_v30 = vpop.f32.mrf.mxu2 }
 0x467   :  { %v904_v2 = vadd.f32 %v903_v14, %v902_v4  ;;  %v959_v16 = vrot.slane %v958_v27, 1  ;;  %v1902_v40 = vpack.c.bf16 %v1820_v30, %v1818_v52 }
 0x468   :  { %v912_v46 = vrot.slane %v911_v12, 1  ;;  %v967_v54 = vadd.f32 %v966_v48, %v965_v58 }
 0x469   :  { %v916_v11 = vmul.f32 %v904_v2, %v2823_v9  ;;  %v960_v19 = vadd.f32 %v959_v16, %v958_v27  ;;  %v1839_v34 = vpop.f32.mrf.mxu3  ;;  %v4248_v2 = vld [vmem:[#allocation3_spill] sm:$0xff]  ;;  %v4249_v16 = vld [vmem:[#allocation5_spill] sm:$0xff] }
 0x46a   :  { %v913_v45 = vadd.f32 %v912_v46, %v911_v12  ;;  %v968_v3 = vrot.slane %v967_v54, 1  ;;  %v1903_v27 = vpack.c.bf16 %v1839_v34, %v1837_v7  ;;  %v4250_v46 = vpack.c.bf16 %v4248_v2, %v4249_v16 }
 0x46b   :  { %v972_v13 = vmul.f32 %v960_v19, %v2823_v9  ;;  %v976_v60 = vmul.f32 %v916_v11, %v916_v11  ;;  %v996_v52 = vsub.f32 %v3997_v18, %v916_v11  ;;  %v992_v7 = vsub.f32 %v3973_v21, %v916_v11  ;;  %v4251_v21 = vld [vmem:[#allocation9_spill] sm:$0xff] }
 0x46c   :  { %v4026_v20 = vmul.f32 %v913_v45, %v2823_v9  ;;  %v969_v62 = vadd.f32 %v968_v3, %v967_v54  ;;  %v984_v54 = vsub.f32 %v3970_v6, %v916_v11  ;;  %v988_v32 = vsub.f32 %v3965_v47, %v916_v11 }
 0x46d   :  { %v980_v5 = vsub.f32 %v972_v13, %v976_v60  ;;  %v4252_v13 = vld [vmem:[#allocation8_spill] sm:$0xff] }
 0x46e   :  { %v973_v33 = vmul.f32 %v969_v62, %v2823_v9  ;;  %v977_v37 = vmul.f32 %v4026_v20, %v4026_v20  ;;  %v1823_v17 = vpop.f32.mrf.mxu2  ;;  %v4253_v6 = vpack.c.bf16 %v4251_v21, %v4252_v13 }
 0x46f   :  { %v1000_v36 = vadd.f32 1e-05, %v980_v5 }
 0x470   :  { %v981_v56 = vsub.f32 %v973_v33, %v977_v37 }
 0x471   :  { %2565 = vrsqrt.f32 %v1000_v36  ;;  %v1842_v59 = vpop.f32.mrf.mxu3  ;;  %vm1028_vm11 = vweird.f32 %v1000_v36 }
 0x472   :  { %v1001_v26 = vadd.f32 1e-05, %v981_v56  ;;  %v997_v56 = vsub.f32 %v4011_v31, %v4026_v20  ;;  %v989_v31 = vsub.f32 %v3976_v63, %v4026_v20 }
 0x474   :  { %2567 = vrsqrt.f32 %v1001_v26  ;;  %vm1038_vm14 = vweird.f32 %v1001_v26 }
 0x476   :  { %v1825_v24 = vpop.f32.mrf.mxu2 }
 0x477   :  { %v2566_v9 = vpop.eup %2565  ;;  %v1906_v10 = vpack.c.bf16 %v1825_v24, %v1823_v17  ;;  %v993_v24 = vsub.f32 %v3984_v43, %v4026_v20 }
 0x478   :  { %v1023_v0 = vmul.f32 %v2566_v9, %v1000_v36  ;;  %vm1029_vm10 = vweird.f32 %v2566_v9 }
 0x479   :  { %v1844_v55 = vpop.f32.mrf.mxu3  ;;  %1932 = vmatpush.bf16.msra.mxu3 %v1906_v10  ;;  %vm1030_vm12 = vmor %vm1028_vm11, %vm1029_vm10 }
 0x47a   :  { %v2568_v23 = vpop.eup %2567  ;;  %v1024_v41 = vmul.f32 %v2566_v9, %v1023_v0  ;;  %v1907_v39 = vpack.c.bf16 %v1844_v55, %v1842_v59 }
 0x47b   :  { %v1033_v4 = vmul.f32 %v2568_v23, %v1001_v26  ;;  %vm1039_vm13 = vweird.f32 %v2568_v23  ;;  %v985_v26 = vsub.f32 %v3981_v15, %v4026_v20 }
 0x47c   :  { %v1025_v42 = vmul.f32 0.5, %v1024_v41  ;;  %1951 = vmatpush.bf16.msrb.mxu0 %v1907_v39  ;;  %vm1040_vm15 = vmor %vm1038_vm14, %vm1039_vm13 }
 0x47d   :  { %v1034_v58 = vmul.f32 %v2568_v23, %v1033_v4  ;;  %1933 = vmatpush.bf16.msra.mxu3 %v1902_v40 }
 0x47e   :  { %v1026_v14 = vsub.f32 1.5, %v1025_v42  ;;  %v4038_v12 = vpop.f32.mrf.mxu2  ;;  %v2597_v42 = vmov 12  }
 0x47f   :  { %v1035_v30 = vmul.f32 0.5, %v1034_v58  ;;  %2540 = vset.pattern.permute.xlu1 %v2597_v42  ;;  %2542 = vset.pattern.permute.xlu0 %v2597_v42 }
 0x480   :  { %v1027_v48 = vmul.f32 %v2566_v9, %v1026_v14  ;;  %1952 = vmatpush.bf16.msrb.mxu0 %v1903_v27  ;;  %2395 = vmatmul.msk.bf16.vlgmr.msra.gmra.mxu3 %vm80_vm0, %v4019_v22  ;;  %v2468_v14 = vld [vmem:[%s4153_s7 + $0x8] sm:$0xff] }
 0x481   :  { %2024 = vmatpush.bf16.msrb.mxu3 %v1893_v1  ;;  %v1036_v3 = vsub.f32 1.5, %v1035_v30  ;;  %2541 = vset.pattern.permute.xlu2 %v2597_v42 }
 0x482   :  { %v1031_v38 = vsel %vm1030_vm12, %v2566_v9, %v1027_v48  ;;  %v2467_v9 = vld [vmem:[%s4153_s7] sm:$0xff] }
 0x483   :  { %v1056_v1 = vmul.f32 %v1031_v38, %v996_v52  ;;  %v1052_v19 = vmul.f32 %v1031_v38, %v992_v7  ;;  %v1044_v18 = vmul.f32 %v1031_v38, %v984_v54  ;;  %2397 = vmatmul.msk.bf16.vlgmr.msrb.gmra.mxu0 %vm80_vm0, %v4019_v22  ;;  %v1048_v34 = vmul.f32 %v1031_v38, %v988_v32 }
 0x484   :  { %2043 = vmatpush.bf16.msra.mxu0 %v4250_v46  ;;  %v1037_v62 = vmul.f32 %v2568_v23, %v1036_v3 }
 0x485   :  { %2025 = vmatpush.bf16.msrb.mxu3 %v1889_v28  ;;  %v1088_v45 = vmul.f32 %v3558_v61, %v1056_v1  ;;  %v1084_v60 = vmul.f32 %v3549_v50, %v1052_v19  ;;  %v1076_v57 = vmul.f32 %v3556_v53, %v1044_v18  ;;  %v1080_v28 = vmul.f32 %v3562_v29, %v1048_v34 }
 0x486   :  { %v1877_v51 = vpop.f32.mrf.mxu2  ;;  %v1041_v17 = vsel %vm1040_vm15, %v2568_v23, %v1037_v62 }
 0x487   :  { %v1116_v47 = vadd.f32 %v3552_v35, %v1084_v60  ;;  %v1120_v11 = vadd.f32 %v3554_v8, %v1088_v45  ;;  %v1108_v33 = vadd.f32 %v3566_v49, %v1076_v57  ;;  %v1112_v37 = vadd.f32 %v3564_v25, %v1080_v28 }
 0x488   :  { %2044 = vmatpush.bf16.msra.mxu0 %v4253_v6  ;;  %v1057_v10 = vmul.f32 %v1041_v17, %v997_v56  ;;  %v1053_v0 = vmul.f32 %v1041_v17, %v993_v24  ;;  %v1045_v55 = vmul.f32 %v1041_v17, %v985_v26  ;;  %v1049_v41 = vmul.f32 %v1041_v17, %v989_v31 }
 0x489   :  { %v1895_v5 = vpack.c.bf16 %v1120_v11, %v1116_v47  ;;  %v1891_v36 = vpack.c.bf16 %v1112_v37, %v1108_v33 }
 0x48a   :  { %v1089_v43 = vmul.f32 %v3558_v61, %v1057_v10  ;;  %v1085_v23 = vmul.f32 %v3549_v50, %v1053_v0  ;;  %v1077_v40 = vmul.f32 %v3556_v53, %v1045_v55  ;;  %v1081_v20 = vmul.f32 %v3562_v29, %v1049_v41  ;;  %v2579_v61 = vld [vmem:[%s4146_s8] sm:$0xff]  ;;  %v2580_v50 = vld [vmem:[%s4146_s8 + $0x18] sm:$0xff] }
 0x48b   :  { %2062 = vmatpush.bf16.msrb.mxu1 %v1895_v5  ;;  %2095 = vperm.xlu1 %2540, %v2579_v61  }
 0x48c   :  { %v1117_v63 = vadd.f32 %v3552_v35, %v1085_v23  ;;  %v1121_v15 = vadd.f32 %v3554_v8, %v1089_v43  ;;  %2107 = vperm.xlu0 %2542, %v2580_v50   ;;  %v2581_v35 = vld [vmem:[%s4146_s8 + $0x8] sm:$0xff]  ;;  %v1905_v8 = vpack.c.bf16 %v1877_v51, %v4038_v12  ;;  %v1109_v29 = vadd.f32 %v3566_v49, %v1077_v40  ;;  %v2582_v12 = vld [vmem:[%s4146_s8 + $0x10] sm:$0xff] }
 0x48d   :  { %2099 = vperm.xlu2 %2541, %v2581_v35   ;;  %v1113_v58 = vadd.f32 %v3564_v25, %v1081_v20 }
 0x48e   :  { %v1880_v59 = vpop.f32.mrf.mxu2  ;;  %v1896_v53 = vpack.c.bf16 %v1121_v15, %v1117_v63 }
 0x48f   :  { %2063 = vmatpush.bf16.msrb.mxu1 %v1891_v36  ;;  %v1892_v27 = vpack.c.bf16 %v1113_v58, %v1109_v29 }
 0x490   :  { %2396 = vmatmul.msk.bf16.gmra.mxu3 %vm80_vm0, %v4034_v44 }
 0x492   :  { %2415 = vmatmul.msk.bf16.vlgmr.msrb.gmra.mxu1 %vm80_vm0, %v2467_v9 }
 0x493   :  { %2398 = vmatmul.msk.bf16.gmra.mxu0 %vm80_vm0, %v4034_v44  ;;  %2103 = vperm.xlu1 %2540, %v2582_v12  }
 0x496   :  { %v1882_v39 = vpop.f32.mrf.mxu2 }
 0x497   :  { %v1909_v4 = vpack.c.bf16 %v1882_v39, %v1880_v59 }
 0x499   :  { %1989 = vmatpush.bf16.msra.mxu2 %v1909_v4 }
 0x49d   :  { %1990 = vmatpush.bf16.msra.mxu2 %v1905_v8 }
 0x4a0   :  { %2401 = vmatmul.msk.bf16.vlgmr.msra.gmra.mxu2 %vm80_vm0, %v4019_v22  ;;  %2411 = vmatmul.msk.bf16.vlgmr.msrb.gmra.mxu3 %vm80_vm0, %v2467_v9 }
 0x4a1   :  { %2081 = vmatpush.bf16.msrb.mxu2 %v1896_v53 }
 0x4a2   :  { %2416 = vmatmul.msk.bf16.gmra.mxu1 %vm80_vm0, %v2468_v14 }
 0x4a3   :  { %2413 = vmatmul.msk.bf16.vlgmr.msra.gmra.mxu0 %vm80_vm0, %v2467_v9 }
 0x4a5   :  { %2082 = vmatpush.bf16.msrb.mxu2 %v1892_v27 }
 0x4b0   :  { %2402 = vmatmul.msk.bf16.gmra.mxu2 %vm80_vm0, %v4034_v44  ;;  %2412 = vmatmul.msk.bf16.gmra.mxu3 %vm80_vm0, %v2468_v14 }
 0x4b3   :  { %2414 = vmatmul.msk.bf16.gmra.mxu0 %vm80_vm0, %v2468_v14 }
 0x4c0   :  { %2417 = vmatmul.msk.bf16.vlgmr.msrb.gmra.mxu2 %vm80_vm0, %v2467_v9 }
 0x4cd   :  { %v1973_v30 = vpop.f32.mrf.mxu1 }
 0x4d0   :  { %2418 = vmatmul.msk.bf16.gmra.mxu2 %vm80_vm0, %v2468_v14 }
 0x4d5   :  { %v1975_v46 = vpop.f32.mrf.mxu1 }
 0x4de   :  { %v1978_v34 = vpop.f32.mrf.mxu1 }
 0x4e6   :  { %v1980_v11 = vpop.f32.mrf.mxu1 }
 0x4e7   :  { %v2100_v51 = vpop.permute.xlu2 %2099 }
 0x4fd   :  { %v2096_v38 = vpop.permute.xlu1 %2095 }
 0x4fe   :  { %v2108_v23 = vpop.permute.xlu0 %2107 }
 0x500   :  { %v1954_v25 = vpop.f32.mrf.mxu0 }
 0x503   :  { %v1935_v49 = vpop.f32.mrf.mxu3 }
 0x505   :  { %v2104_v37 = vpop.permute.xlu1 %2103 }
 0x508   :  { %v1956_v22 = vpop.f32.mrf.mxu0 }
 0x50b   :  { %v1937_v48 = vpop.f32.mrf.mxu3 }
 0x50f   :  { %v2065_v0 = vpop.f32.mrf.mxu1 }
 0x510   :  { %v1959_v52 = vpop.f32.mrf.mxu0  ;;  %v2066_v40 = vadd.f32 %v2065_v0, %v1973_v30 }
 0x512   :  { %v2112_v20 = vadd.f32 %v2096_v38, %v2066_v40 }
 0x513   :  { %v1940_v2 = vpop.f32.mrf.mxu3 }
 0x517   :  { %v2067_v63 = vpop.f32.mrf.mxu1 }
 0x518   :  { %v1961_v16 = vpop.f32.mrf.mxu0  ;;  %v2068_v35 = vadd.f32 %v2067_v63, %v1975_v46 }
 0x51a   :  { %v2116_v58 = vadd.f32 %v2100_v51, %v2068_v35 }
 0x51b   :  { %v1942_v7 = vpop.f32.mrf.mxu3 }
 0x51f   :  { %v2070_v29 = vpop.f32.mrf.mxu1 }
 0x520   :  { %v2046_v54 = vpop.f32.mrf.mxu0  ;;  %v2071_v12 = vadd.f32 %v2070_v29, %v1978_v34 }
 0x521   :  { %v2047_v44 = vadd.f32 %v2046_v54, %v1954_v25 }
 0x523   :  { %v1992_v32 = vpop.f32.mrf.mxu2  ;;  %v2027_v1 = vpop.f32.mrf.mxu3  ;;  %v2111_v18 = vadd.f32 %v2096_v38, %v2047_v44 }
 0x524   :  { %v2028_v19 = vadd.f32 %v2027_v1, %v1935_v49 }
 0x526   :  { %v2110_v45 = vadd.f32 %v2096_v38, %v2028_v19 }
 0x528   :  { %v2048_v3 = vpop.f32.mrf.mxu0  ;;  %v2126_v21 = vpack.c.bf16 %v2111_v18, %v2110_v45 }
 0x529   :  { %v2049_v13 = vadd.f32 %v2048_v3, %v1956_v22  ;;  %v2120_v22 = vadd.f32 %v2104_v37, %v2071_v12 }
 0x52a   :  { %2134 = vst [vmem:[%s4154_s11] sm:$0xff] %v2126_v21 }
 0x52b   :  { %v1994_v6 = vpop.f32.mrf.mxu2  ;;  %v2029_v60 = vpop.f32.mrf.mxu3  ;;  %v2115_v47 = vadd.f32 %v2100_v51, %v2049_v13 }
 0x52c   :  { %v2030_v57 = vadd.f32 %v2029_v60, %v1937_v48 }
 0x52e   :  { %v2114_v28 = vadd.f32 %v2100_v51, %v2030_v57 }
 0x530   :  { %v2128_v62 = vpack.c.bf16 %v2115_v47, %v2114_v28  ;;  %v2051_v5 = vpop.f32.mrf.mxu0 }
 0x531   :  { %v2052_v33 = vadd.f32 %v2051_v5, %v1959_v52  ;;  %v2072_v52 = vpop.f32.mrf.mxu1 }
 0x532   :  { %2135 = vst [vmem:[%s4154_s11 + $0x8] sm:$0xff] %v2128_v62 }
 0x533   :  { %v1997_v17 = vpop.f32.mrf.mxu2  ;;  %v2032_v36 = vpop.f32.mrf.mxu3  ;;  %v2119_v59 = vadd.f32 %v2104_v37, %v2052_v33 }
 0x534   :  { %v2033_v56 = vadd.f32 %v2032_v36, %v1940_v2  ;;  %v2073_v2 = vadd.f32 %v2072_v52, %v1980_v11 }
 0x536   :  { %v2118_v24 = vadd.f32 %v2104_v37, %v2033_v56 }
 0x538   :  { %v2053_v9 = vpop.f32.mrf.mxu0  ;;  %v2130_v10 = vpack.c.bf16 %v2119_v59, %v2118_v24 }
 0x539   :  { %v2054_v26 = vadd.f32 %v2053_v9, %v1961_v16 }
 0x53a   :  { %2136 = vst [vmem:[%s4154_s11 + $0x10] sm:$0xff] %v2130_v10 }
 0x53b   :  { %v1999_v31 = vpop.f32.mrf.mxu2  ;;  %v2034_v55 = vpop.f32.mrf.mxu3  ;;  %v2123_v39 = vadd.f32 %v2108_v23, %v2054_v26 }
 0x53c   :  { %v2035_v43 = vadd.f32 %v2034_v55, %v1942_v7  ;;  %v2124_v7 = vadd.f32 %v2108_v23, %v2073_v2 }
 0x53e   :  { %v2122_v41 = vadd.f32 %v2108_v23, %v2035_v43 }
 0x540   :  { %v2132_v4 = vpack.c.bf16 %v2123_v39, %v2122_v41 }
 0x542   :  { %2137 = vst [vmem:[%s4154_s11 + $0x18] sm:$0xff] %v2132_v4 }
 0x543   :  { %v2084_v42 = vpop.f32.mrf.mxu2 }
 0x544   :  { %v2085_v15 = vadd.f32 %v2084_v42, %v1992_v32 }
 0x546   :  { %v2113_v61 = vadd.f32 %v2096_v38, %v2085_v15 }
 0x548   :  { %v2127_v50 = vpack.c.bf16 %v2113_v61, %v2112_v20 }
 0x54a   :  { %2419 = vst [vmem:[%s4154_s11 + $0x20] sm:$0xff] %v2127_v50 }
 0x54b   :  { %v2086_v8 = vpop.f32.mrf.mxu2 }
 0x54c   :  { %v2087_v53 = vadd.f32 %v2086_v8, %v1994_v6 }
 0x54e   :  { %v2117_v14 = vadd.f32 %v2100_v51, %v2087_v53 }
 0x550   :  { %v2129_v27 = vpack.c.bf16 %v2117_v14, %v2116_v58 }
 0x552   :  { %2420 = vst [vmem:[%s4154_s11 + $0x28] sm:$0xff] %v2129_v27 }
 0x553   :  { %v2089_v25 = vpop.f32.mrf.mxu2 }
 0x554   :  { %v2090_v49 = vadd.f32 %v2089_v25, %v1997_v17 }
 0x556   :  { %v2121_v48 = vadd.f32 %v2104_v37, %v2090_v49 }
 0x558   :  { %v2131_v30 = vpack.c.bf16 %v2121_v48, %v2120_v22 }
 0x55a   :  { %2421 = vst [vmem:[%s4154_s11 + $0x30] sm:$0xff] %v2131_v30 }
 0x55b   :  { %v2091_v16 = vpop.f32.mrf.mxu2 }
 0x55c   :  { %v2092_v46 = vadd.f32 %v2091_v16, %v1999_v31 }
 0x55e   :  { %v2125_v54 = vadd.f32 %v2108_v23, %v2092_v46 }
 0x560   :  { %v2133_v44 = vpack.c.bf16 %v2125_v54, %v2124_v7 }
 0x562   :  { %2422 = vst [vmem:[%s4154_s11 + $0x38] sm:$0xff] %v2133_v44 }

</bundles_post_ra>
